<compile_context>
chip_gen: v7x
topology: tpu7x:2x2x1
jax: 0.10.0
libtpu: 0.0.40
codegen_flags: <defaults>
</compile_context>

<pallas_src>
import numpy as np
import jax
import jax.numpy as jnp
from jax.experimental import pallas as pl
from jax.experimental.pallas import tpu as pltpu

NUM_CLASSES = 4
X1_INCH = 64          # x1_inchannel in the PyTorch module
UP_SIZE = 56          # nn.Upsample(56, mode='bilinear', align_corners=False)
_PIX_CHUNK = 512      # 128-aligned pixel chunk for the fused conv2+pool branch


# ---------------------------------------------------------------------------
# Bilinear-upsample operator (PyTorch align_corners=False, half-pixel with edge
# clamping), built in numpy at trace time.  The kernel only consumes its
# column-mean; the full matrix is used by the pure-JAX reference check.
# ---------------------------------------------------------------------------
def _bilinear_matrix(out_size, in_size):
    m = np.zeros((out_size, in_size), dtype=np.float32)
    if in_size == 1:
        m[:, 0] = 1.0
        return m
    scale = in_size / out_size
    for o in range(out_size):
        src = (o + 0.5) * scale - 0.5
        src = max(src, 0.0)
        i0 = min(int(np.floor(src)), in_size - 1)
        i1 = min(i0 + 1, in_size - 1)
        lam = src - i0
        m[o, i0] += 1.0 - lam
        m[o, i1] += lam
    return m


def make_resize_matrix(h_in, w_in, out_size=UP_SIZE):
    # R[(o*W+p), (h*w_in+w)] = RH[o,h] * RW[p,w]
    rh = _bilinear_matrix(out_size, h_in)
    rw = _bilinear_matrix(out_size, w_in)
    return np.kron(rh, rw).astype(np.float32)        # (out*out, h_in*w_in)


def _bf16(v):
    return v if v.dtype == jnp.bfloat16 else v.astype(jnp.bfloat16)


# ---------------------------------------------------------------------------
# Fused Pallas kernel: conv2 + conv1_up + (mean-hoisted) bilinear upsample +
# add + attention branch + per-class heads, for a block of Bt batch elements.
# All weights arrive in PyTorch-native (out, in) layout.
# ---------------------------------------------------------------------------
def _basecnn_kernel(x1_ref, x4_ref, rbar_ref,
                    w2_ref, b2_ref, w1up_ref, b1up_ref,
                    wah_ref, batt_ref, bhead_ref, o_ref):
    bt, _, hw = x1_ref.shape
    hw4 = x4_ref.shape[2]
    nc = batt_ref.shape[0]
    inv_hw = 1.0 / hw

    # Small operands: load once per grid step, reuse across the sub-batch loop.
    w2 = w2_ref[...]          # (64, 256)   bf16
    b2 = b2_ref[...]          # (64, 1)     f32
    w1up = w1up_ref[...]      # (64, 2048)  bf16
    b1up = b1up_ref[...]      # (64, 1)     f32
    rbar = rbar_ref[...]      # (1, hw4)    f32
    wah = wah_ref[...]        # (2*nc, 64)  f32   [attention W ; stacked head W]
    batt = batt_ref[...]      # (nc, 1)     f32
    bhead = bhead_ref[...]    # (nc, 1)     f32

    # 128-aligned pixel chunks (3136 = 6*512 + 64); all starts are lane-aligned.
    n_full = hw // _PIX_CHUNK
    rem = hw - n_full * _PIX_CHUNK
    chunks = [(c * _PIX_CHUNK, _PIX_CHUNK) for c in range(n_full)]
    if rem:
        chunks.append((n_full * _PIX_CHUNK, rem))

    for t in range(bt):  # static (unrolled) loop over the sub-batch
        # conv2: 1x1 Conv(256->64) + ReLU + AdaptiveAvgPool, fused per pixel
        # chunk so the (64, hw) f32 intermediate is never materialized.
        pooled = jnp.zeros((w2.shape[0], 1), jnp.float32)
        for (start, width) in chunks:
            xc = _bf16(x1_ref[t, :, start:start + width])            # (256, w)
            yc = jnp.dot(w2, xc, preferred_element_type=jnp.float32) # (64, w)
            yc = jnp.maximum(yc + b2, 0.0)
            pooled = pooled + jnp.sum(yc, axis=1, keepdims=True)
        pooled = pooled * inv_hw                                     # mean over HW

        # conv1_up: 1x1 Conv(2048->64) + ReLU; AdaptiveAvgPool hoisted through
        # the (linear) bilinear upsample:  mean_hw(Up(y4)) == y4 @ mean(R, 0).
        y4 = jnp.dot(w1up, _bf16(x4_ref[t]), preferred_element_type=jnp.float32)
        y4 = jnp.maximum(y4 + b1up, 0.0)                             # (64, hw4)
        pooled = pooled + jnp.sum(y4 * rbar, axis=1, keepdims=True)  # (64, 1)

        # Attention + per-class heads collapse onto the pooled vector (avgpool
        # and the 1x1 convs are linear, att_i is a per-class scalar):
        #   head_i(att_i * fused) = att_i * (w_head_i . pooled) + b_head_i
        ah = jnp.dot(wah, pooled, preferred_element_type=jnp.float32)  # (2nc, 1)
        att = ah[:nc, :] + batt
        head = ah[nc:, :]
        o_ref[0, :, t:t + 1] = att * head + bhead


def _pick_block_batch(B, per_elem_bytes, budget_bytes=20 * 2**20):
    """Largest batch tile that divides B, keeps >=2 grid steps when B>=2 (so
    both v7x TensorCores get work), and keeps double-buffered streamed inputs
    under `budget_bytes` of VMEM (safe on v7x's 64 MiB physical VMEM)."""
    if B <= 1:
        return 1
    cap = max(1, min(B // 2, budget_bytes // (2 * per_elem_bytes)))
    for d in range(int(cap), 0, -1):
        if B % d == 0:
            return d
    return 1


def base_cnn_forward(params, x1_nchw, x4_nchw):
    """x1_nchw: (B, 256, 56, 56), x4_nchw: (B, 2048, h4, w4) -> (B, num_classes)."""
    B, c1, H, W = x1_nchw.shape
    _, c4, h4, w4 = x4_nchw.shape
    assert (H, W) == (UP_SIZE, UP_SIZE), "conv2(x1) must be 56x56 to match Upsample(56)"
    nc = params["att_b"].shape[0]
    hw, hw4 = H * W, h4 * w4

    # NCHW -> (B, C, H*W): pure reshape, no transpose, and NO dtype pass here —
    # inputs stream at the backbone's dtype (bf16 preferred); any cast happens
    # inside the kernel after the DMA.
    x1 = x1_nchw.reshape(B, c1, hw)
    x4 = x4_nchw.reshape(B, c4, hw4)

    bytes_per_elem = c1 * hw * x1.dtype.itemsize + c4 * hw4 * x4.dtype.itemsize
    bt = _pick_block_batch(B, bytes_per_elem)
    n_blocks = B // bt

    # Column-mean of the bilinear resize operator (mean hoisted through upsample).
    rbar = jnp.asarray(
        make_resize_matrix(h4, w4).mean(axis=0, dtype=np.float64).astype(np.float32)
    ).reshape(1, hw4)

    w2 = params["conv2_w"].astype(jnp.bfloat16)        # (64, 256)
    w1up = params["conv1up_w"].astype(jnp.bfloat16)    # (64, 2048)
    b2 = params["conv2_b"].reshape(-1, 1)              # (64, 1)  f32
    b1up = params["conv1up_b"].reshape(-1, 1)          # (64, 1)  f32
    wah = jnp.concatenate([params["att_w"], params["head_w"]], axis=0)  # (2nc, 64) f32
    batt = params["att_b"].reshape(-1, 1)              # (nc, 1)  f32
    bhead = params["head_b"].reshape(-1, 1)            # (nc, 1)  f32

    rep = lambda b: (0, 0)

    flops = 2 * B * (X1_INCH * c1 * hw + X1_INCH * c4 * hw4 + 2 * nc * X1_INCH)
    bytes_accessed = int(
        B * bytes_per_elem + w2.size * 2 + w1up.size * 2
        + (b2.size + b1up.size + wah.size + batt.size + bhead.size + rbar.size
           + B * nc) * 4)
    # Generation-aware VMEM budget: enough for 2x double-buffered inputs plus
    # weights/temporaries, capped at 48 MiB so it always fits v7x (64 MiB phys).
    vmem_limit = int(min(48 * 2**20, max(32 * 2**20, 2 * bt * bytes_per_elem + 12 * 2**20)))

    out3 = pl.pallas_call(
        _basecnn_kernel,
        out_shape=jax.ShapeDtypeStruct((n_blocks, nc, bt), jnp.float32),
        grid_spec=pltpu.PrefetchScalarGridSpec(
            num_scalar_prefetch=0,
            grid=(n_blocks,),
            in_specs=[
                pl.BlockSpec((bt, c1, hw), lambda b: (b, 0, 0)),     # x1 stream
                pl.BlockSpec((bt, c4, hw4), lambda b: (b, 0, 0)),    # x4 stream
                pl.BlockSpec((1, hw4), rep),                         # rbar
                pl.BlockSpec((X1_INCH, c1), rep),                    # conv2 W
                pl.BlockSpec((X1_INCH, 1), rep),                     # conv2 b
                pl.BlockSpec((X1_INCH, c4), rep),                    # conv1_up W
                pl.BlockSpec((X1_INCH, 1), rep),                     # conv1_up b
                pl.BlockSpec((2 * nc, X1_INCH), rep),                # [att; head] W
                pl.BlockSpec((nc, 1), rep),                          # attention b
                pl.BlockSpec((nc, 1), rep),                          # head b
            ],
            out_specs=pl.BlockSpec((1, nc, bt), lambda b: (b, 0, 0)),
        ),
        compiler_params=pltpu.CompilerParams(
            dimension_semantics=("parallel",),
            vmem_limit_bytes=vmem_limit,
        ),
        cost_estimate=pl.CostEstimate(flops=flops, transcendentals=0,
                                      bytes_accessed=bytes_accessed),
    )(x1, x4, rbar, w2, b2, w1up, b1up, wah, batt, bhead)

    # (n_blocks, nc, bt) -> (B, nc): tiny reorder of B*nc scalars, negligible.
    return out3.transpose(0, 2, 1).reshape(B, nc)


# ---------------------------------------------------------------------------
# Deterministic synthetic parameters in PyTorch-native (out_ch, in_ch) layout.
# ---------------------------------------------------------------------------
def init_params(key, num_classes=NUM_CLASSES):
    ks = jax.random.split(key, 8)

    def w(k, shape, fan_in):
        return (jax.random.normal(k, shape, jnp.float32) / np.sqrt(fan_in)).astype(jnp.float32)

    return {
        "conv2_w":   w(ks[0], (X1_INCH, 256), 256),               # Conv2d(256, 64, 1)
        "conv2_b":   w(ks[1], (X1_INCH,), 256),
        "conv1up_w": w(ks[2], (X1_INCH, 2048), 2048),             # Conv2d(2048, 64, 1)
        "conv1up_b": w(ks[3], (X1_INCH,), 2048),
        "att_w":     w(ks[4], (num_classes, X1_INCH), X1_INCH),   # Conv2d(64, nc, 1)
        "att_b":     w(ks[5], (num_classes,), X1_INCH),
        "head_w":    w(ks[6], (num_classes, X1_INCH), X1_INCH),   # nc x Conv2d(64, 1, 1), stacked
        "head_b":    w(ks[7], (num_classes,), X1_INCH),
    }


# ---------------------------------------------------------------------------
# Pure-JAX reference: direct translation of BaseCNNModel.forward with the
# dense bilinear-resize matrix (no mean hoisting), f32 throughout.
# ---------------------------------------------------------------------------
def reference_forward(params, x1_nchw, x4_nchw):
    B, c1, H, W = x1_nchw.shape
    _, c4, h4, w4 = x4_nchw.shape
    hp = jax.lax.Precision.HIGHEST
    x1 = x1_nchw.astype(jnp.float32).reshape(B, c1, H * W)
    x4 = x4_nchw.astype(jnp.float32).reshape(B, c4, h4 * w4)
    y1 = jax.nn.relu(jnp.einsum("oc,bcp->bop", params["conv2_w"], x1, precision=hp)
                     + params["conv2_b"][None, :, None])
    y4 = jax.nn.relu(jnp.einsum("oc,bck->bok", params["conv1up_w"], x4, precision=hp)
                     + params["conv1up_b"][None, :, None])
    r = jnp.asarray(make_resize_matrix(h4, w4))                      # (HW, hw4)
    fused = y1 + jnp.einsum("pk,bok->bop", r, y4, precision=hp)      # (B, 64, HW)
    pooled = jnp.mean(fused, axis=2)                                 # (B, 64)
    att = jnp.einsum("bc,oc->bo", pooled, params["att_w"], precision=hp) + params["att_b"]
    head = jnp.einsum("bc,oc->bo", pooled, params["head_w"], precision=hp)
    return att * head + params["head_b"]


if __name__ == "__main__":
    key = jax.random.PRNGKey(0)
    kp, k1, k4 = jax.random.split(key, 3)

    B = 2
    params = init_params(kp, NUM_CLASSES)

    # ResNet50 stage outputs the head consumes: x1 (256ch, 56x56), x4 (2048ch, 7x7).
    # Delivered in bf16 so the kernel streams them without any extra HBM pass.
    x1 = jax.random.normal(k1, (B, 256, 56, 56), jnp.float32).astype(jnp.bfloat16)
    x4 = jax.random.normal(k4, (B, 2048, 7, 7), jnp.float32).astype(jnp.bfloat16)

    out = jax.block_until_ready(base_cnn_forward(params, x1, x4))
    assert out.shape == (B, NUM_CLASSES) and out.dtype == jnp.float32
    assert bool(jnp.all(jnp.isfinite(out)))

    ref = jax.block_until_ready(reference_forward(params, x1, x4))
    np.testing.assert_allclose(np.asarray(out), np.asarray(ref), rtol=2e-2, atol=2e-2)

    print("KERNEL_OK")
</pallas_src>

<mosaic_0001>
module attributes {stable_mosaic.version = 11 : i64} {
  func.func @_basecnn_kernel(%arg0: i32, %arg1: memref<1x256x3136xbf16, #tpu.memory_space<vmem>>, %arg2: memref<1x2048x49xbf16, #tpu.memory_space<vmem>>, %arg3: memref<1x49xf32, #tpu.memory_space<vmem>>, %arg4: memref<64x256xbf16, #tpu.memory_space<vmem>>, %arg5: memref<64x1xf32, #tpu.memory_space<vmem>>, %arg6: memref<64x2048xbf16, #tpu.memory_space<vmem>>, %arg7: memref<64x1xf32, #tpu.memory_space<vmem>>, %arg8: memref<8x64xf32, #tpu.memory_space<vmem>>, %arg9: memref<4x1xf32, #tpu.memory_space<vmem>>, %arg10: memref<4x1xf32, #tpu.memory_space<vmem>>, %arg11: memref<1x4x1xf32, #tpu.memory_space<vmem>>) attributes {dimension_semantics = [#tpu.dimension_semantics<parallel>], iteration_bounds = array<i64: 2>, scalar_prefetch = 0 : i64, scratch_operands = 0 : i64, tpu.core_type = #tpu.core_type<tc>, window_params = [{transform_indices = @transform_0, window_bounds = array<i64: 1, 256, 3136>}, {transform_indices = @transform_1, window_bounds = array<i64: 1, 2048, 49>}, {pipeline_mode = #tpu.pipeline_mode<synchronous>, transform_indices = @transform_2, window_bounds = array<i64: 1, 49>}, {pipeline_mode = #tpu.pipeline_mode<synchronous>, transform_indices = @transform_3, window_bounds = array<i64: 64, 256>}, {pipeline_mode = #tpu.pipeline_mode<synchronous>, transform_indices = @transform_4, window_bounds = array<i64: 64, 1>}, {pipeline_mode = #tpu.pipeline_mode<synchronous>, transform_indices = @transform_5, window_bounds = array<i64: 64, 2048>}, {pipeline_mode = #tpu.pipeline_mode<synchronous>, transform_indices = @transform_6, window_bounds = array<i64: 64, 1>}, {pipeline_mode = #tpu.pipeline_mode<synchronous>, transform_indices = @transform_7, window_bounds = array<i64: 8, 64>}, {pipeline_mode = #tpu.pipeline_mode<synchronous>, transform_indices = @transform_8, window_bounds = array<i64: 4, 1>}, {pipeline_mode = #tpu.pipeline_mode<synchronous>, transform_indices = @transform_9, window_bounds = array<i64: 4, 1>}, {transform_indices = @transform_10, window_bounds = array<i64: 1, 4, 1>}]} {
    %c0 = arith.constant 0 : index
    %c0_0 = arith.constant 0 : index
    %0 = vector.load %arg4[%c0, %c0_0] : memref<64x256xbf16, #tpu.memory_space<vmem>>, vector<64x256xbf16>
    %c0_1 = arith.constant 0 : index
    %c0_2 = arith.constant 0 : index
    %1 = vector.load %arg5[%c0_1, %c0_2] : memref<64x1xf32, #tpu.memory_space<vmem>>, vector<64x1xf32>
    %c0_3 = arith.constant 0 : index
    %c0_4 = arith.constant 0 : index
    %2 = vector.load %arg6[%c0_3, %c0_4] : memref<64x2048xbf16, #tpu.memory_space<vmem>>, vector<64x2048xbf16>
    %c0_5 = arith.constant 0 : index
    %c0_6 = arith.constant 0 : index
    %3 = vector.load %arg7[%c0_5, %c0_6] : memref<64x1xf32, #tpu.memory_space<vmem>>, vector<64x1xf32>
    %c0_7 = arith.constant 0 : index
    %c0_8 = arith.constant 0 : index
    %4 = vector.load %arg3[%c0_7, %c0_8] : memref<1x49xf32, #tpu.memory_space<vmem>>, vector<1x49xf32>
    %c0_9 = arith.constant 0 : index
    %c0_10 = arith.constant 0 : index
    %5 = vector.load %arg8[%c0_9, %c0_10] : memref<8x64xf32, #tpu.memory_space<vmem>>, vector<8x64xf32>
    %c0_11 = arith.constant 0 : index
    %c0_12 = arith.constant 0 : index
    %6 = vector.load %arg9[%c0_11, %c0_12] : memref<4x1xf32, #tpu.memory_space<vmem>>, vector<4x1xf32>
    %c0_13 = arith.constant 0 : index
    %c0_14 = arith.constant 0 : index
    %7 = vector.load %arg10[%c0_13, %c0_14] : memref<4x1xf32, #tpu.memory_space<vmem>>, vector<4x1xf32>
    %cst = arith.constant 0.000000e+00 : f32
    %8 = vector.broadcast %cst : f32 to vector<64x1xf32>
    %c0_15 = arith.constant 0 : index
    %c0_16 = arith.constant 0 : index
    %c0_17 = arith.constant 0 : index
    %9 = vector.load %arg1[%c0_15, %c0_16, %c0_17] : memref<1x256x3136xbf16, #tpu.memory_space<vmem>>, vector<1x256x512xbf16>
    %10 = vector.shape_cast %9 : vector<1x256x512xbf16> to vector<256x512xbf16>
    %cst_18 = arith.constant dense<0.000000e+00> : vector<64x512xf32>
    %11 = tpu.matmul %0, %10, %cst_18 {dimension_numbers = #tpu.dot_dimension_numbers<[1], [0], [0], [1], [0, 0, 1, 1], [], []>} : vector<64x256xbf16>, vector<256x512xbf16>, vector<64x512xf32> -> vector<64x512xf32>
    %12 = vector.broadcast %1 : vector<64x1xf32> to vector<64x512xf32>
    %13 = arith.addf %11, %12 : vector<64x512xf32>
    %cst_19 = arith.constant 0.000000e+00 : f32
    %14 = vector.broadcast %cst_19 : f32 to vector<64x512xf32>
    %15 = arith.maximumf %13, %14 : vector<64x512xf32>
    %cst_20 = arith.constant dense<0.000000e+00> : vector<64xf32>
    %16 = vector.multi_reduction <add>, %15, %cst_20 [1] : vector<64x512xf32> to vector<64xf32>
    %17 = vector.shape_cast %16 : vector<64xf32> to vector<64x1xf32>
    %18 = arith.addf %8, %17 : vector<64x1xf32>
    %c0_21 = arith.constant 0 : index
    %c0_22 = arith.constant 0 : index
    %c512 = arith.constant 512 : index
    %19 = vector.load %arg1[%c0_21, %c0_22, %c512] : memref<1x256x3136xbf16, #tpu.memory_space<vmem>>, vector<1x256x512xbf16>
    %20 = vector.shape_cast %19 : vector<1x256x512xbf16> to vector<256x512xbf16>
    %cst_23 = arith.constant dense<0.000000e+00> : vector<64x512xf32>
    %21 = tpu.matmul %0, %20, %cst_23 {dimension_numbers = #tpu.dot_dimension_numbers<[1], [0], [0], [1], [0, 0, 1, 1], [], []>} : vector<64x256xbf16>, vector<256x512xbf16>, vector<64x512xf32> -> vector<64x512xf32>
    %22 = vector.broadcast %1 : vector<64x1xf32> to vector<64x512xf32>
    %23 = arith.addf %21, %22 : vector<64x512xf32>
    %cst_24 = arith.constant 0.000000e+00 : f32
    %24 = vector.broadcast %cst_24 : f32 to vector<64x512xf32>
    %25 = arith.maximumf %23, %24 : vector<64x512xf32>
    %cst_25 = arith.constant dense<0.000000e+00> : vector<64xf32>
    %26 = vector.multi_reduction <add>, %25, %cst_25 [1] : vector<64x512xf32> to vector<64xf32>
    %27 = vector.shape_cast %26 : vector<64xf32> to vector<64x1xf32>
    %28 = arith.addf %18, %27 : vector<64x1xf32>
    %c0_26 = arith.constant 0 : index
    %c0_27 = arith.constant 0 : index
    %c1024 = arith.constant 1024 : index
    %29 = vector.load %arg1[%c0_26, %c0_27, %c1024] : memref<1x256x3136xbf16, #tpu.memory_space<vmem>>, vector<1x256x512xbf16>
    %30 = vector.shape_cast %29 : vector<1x256x512xbf16> to vector<256x512xbf16>
    %cst_28 = arith.constant dense<0.000000e+00> : vector<64x512xf32>
    %31 = tpu.matmul %0, %30, %cst_28 {dimension_numbers = #tpu.dot_dimension_numbers<[1], [0], [0], [1], [0, 0, 1, 1], [], []>} : vector<64x256xbf16>, vector<256x512xbf16>, vector<64x512xf32> -> vector<64x512xf32>
    %32 = vector.broadcast %1 : vector<64x1xf32> to vector<64x512xf32>
    %33 = arith.addf %31, %32 : vector<64x512xf32>
    %cst_29 = arith.constant 0.000000e+00 : f32
    %34 = vector.broadcast %cst_29 : f32 to vector<64x512xf32>
    %35 = arith.maximumf %33, %34 : vector<64x512xf32>
    %cst_30 = arith.constant dense<0.000000e+00> : vector<64xf32>
    %36 = vector.multi_reduction <add>, %35, %cst_30 [1] : vector<64x512xf32> to vector<64xf32>
    %37 = vector.shape_cast %36 : vector<64xf32> to vector<64x1xf32>
    %38 = arith.addf %28, %37 : vector<64x1xf32>
    %c0_31 = arith.constant 0 : index
    %c0_32 = arith.constant 0 : index
    %c1536 = arith.constant 1536 : index
    %39 = vector.load %arg1[%c0_31, %c0_32, %c1536] : memref<1x256x3136xbf16, #tpu.memory_space<vmem>>, vector<1x256x512xbf16>
    %40 = vector.shape_cast %39 : vector<1x256x512xbf16> to vector<256x512xbf16>
    %cst_33 = arith.constant dense<0.000000e+00> : vector<64x512xf32>
    %41 = tpu.matmul %0, %40, %cst_33 {dimension_numbers = #tpu.dot_dimension_numbers<[1], [0], [0], [1], [0, 0, 1, 1], [], []>} : vector<64x256xbf16>, vector<256x512xbf16>, vector<64x512xf32> -> vector<64x512xf32>
    %42 = vector.broadcast %1 : vector<64x1xf32> to vector<64x512xf32>
    %43 = arith.addf %41, %42 : vector<64x512xf32>
    %cst_34 = arith.constant 0.000000e+00 : f32
    %44 = vector.broadcast %cst_34 : f32 to vector<64x512xf32>
    %45 = arith.maximumf %43, %44 : vector<64x512xf32>
    %cst_35 = arith.constant dense<0.000000e+00> : vector<64xf32>
    %46 = vector.multi_reduction <add>, %45, %cst_35 [1] : vector<64x512xf32> to vector<64xf32>
    %47 = vector.shape_cast %46 : vector<64xf32> to vector<64x1xf32>
    %48 = arith.addf %38, %47 : vector<64x1xf32>
    %c0_36 = arith.constant 0 : index
    %c0_37 = arith.constant 0 : index
    %c2048 = arith.constant 2048 : index
    %49 = vector.load %arg1[%c0_36, %c0_37, %c2048] : memref<1x256x3136xbf16, #tpu.memory_space<vmem>>, vector<1x256x512xbf16>
    %50 = vector.shape_cast %49 : vector<1x256x512xbf16> to vector<256x512xbf16>
    %cst_38 = arith.constant dense<0.000000e+00> : vector<64x512xf32>
    %51 = tpu.matmul %0, %50, %cst_38 {dimension_numbers = #tpu.dot_dimension_numbers<[1], [0], [0], [1], [0, 0, 1, 1], [], []>} : vector<64x256xbf16>, vector<256x512xbf16>, vector<64x512xf32> -> vector<64x512xf32>
    %52 = vector.broadcast %1 : vector<64x1xf32> to vector<64x512xf32>
    %53 = arith.addf %51, %52 : vector<64x512xf32>
    %cst_39 = arith.constant 0.000000e+00 : f32
    %54 = vector.broadcast %cst_39 : f32 to vector<64x512xf32>
    %55 = arith.maximumf %53, %54 : vector<64x512xf32>
    %cst_40 = arith.constant dense<0.000000e+00> : vector<64xf32>
    %56 = vector.multi_reduction <add>, %55, %cst_40 [1] : vector<64x512xf32> to vector<64xf32>
    %57 = vector.shape_cast %56 : vector<64xf32> to vector<64x1xf32>
    %58 = arith.addf %48, %57 : vector<64x1xf32>
    %c0_41 = arith.constant 0 : index
    %c0_42 = arith.constant 0 : index
    %c2560 = arith.constant 2560 : index
    %59 = vector.load %arg1[%c0_41, %c0_42, %c2560] : memref<1x256x3136xbf16, #tpu.memory_space<vmem>>, vector<1x256x512xbf16>
    %60 = vector.shape_cast %59 : vector<1x256x512xbf16> to vector<256x512xbf16>
    %cst_43 = arith.constant dense<0.000000e+00> : vector<64x512xf32>
    %61 = tpu.matmul %0, %60, %cst_43 {dimension_numbers = #tpu.dot_dimension_numbers<[1], [0], [0], [1], [0, 0, 1, 1], [], []>} : vector<64x256xbf16>, vector<256x512xbf16>, vector<64x512xf32> -> vector<64x512xf32>
    %62 = vector.broadcast %1 : vector<64x1xf32> to vector<64x512xf32>
    %63 = arith.addf %61, %62 : vector<64x512xf32>
    %cst_44 = arith.constant 0.000000e+00 : f32
    %64 = vector.broadcast %cst_44 : f32 to vector<64x512xf32>
    %65 = arith.maximumf %63, %64 : vector<64x512xf32>
    %cst_45 = arith.constant dense<0.000000e+00> : vector<64xf32>
    %66 = vector.multi_reduction <add>, %65, %cst_45 [1] : vector<64x512xf32> to vector<64xf32>
    %67 = vector.shape_cast %66 : vector<64xf32> to vector<64x1xf32>
    %68 = arith.addf %58, %67 : vector<64x1xf32>
    %c0_46 = arith.constant 0 : index
    %c0_47 = arith.constant 0 : index
    %c3072 = arith.constant 3072 : index
    %69 = vector.load %arg1[%c0_46, %c0_47, %c3072] : memref<1x256x3136xbf16, #tpu.memory_space<vmem>>, vector<1x256x64xbf16>
    %70 = vector.shape_cast %69 : vector<1x256x64xbf16> to vector<256x64xbf16>
    %cst_48 = arith.constant dense<0.000000e+00> : vector<64x64xf32>
    %71 = tpu.matmul %0, %70, %cst_48 {dimension_numbers = #tpu.dot_dimension_numbers<[1], [0], [0], [1], [0, 0, 1, 1], [], []>} : vector<64x256xbf16>, vector<256x64xbf16>, vector<64x64xf32> -> vector<64x64xf32>
    %72 = vector.broadcast %1 : vector<64x1xf32> to vector<64x64xf32>
    %73 = arith.addf %71, %72 : vector<64x64xf32>
    %cst_49 = arith.constant 0.000000e+00 : f32
    %74 = vector.broadcast %cst_49 : f32 to vector<64x64xf32>
    %75 = arith.maximumf %73, %74 : vector<64x64xf32>
    %cst_50 = arith.constant dense<0.000000e+00> : vector<64xf32>
    %76 = vector.multi_reduction <add>, %75, %cst_50 [1] : vector<64x64xf32> to vector<64xf32>
    %77 = vector.shape_cast %76 : vector<64xf32> to vector<64x1xf32>
    %78 = arith.addf %68, %77 : vector<64x1xf32>
    %cst_51 = arith.constant 3.18877544E-4 : f32
    %79 = vector.broadcast %cst_51 : f32 to vector<64x1xf32>
    %80 = arith.mulf %78, %79 : vector<64x1xf32>
    %c0_52 = arith.constant 0 : index
    %c0_53 = arith.constant 0 : index
    %c0_54 = arith.constant 0 : index
    %81 = vector.load %arg2[%c0_52, %c0_53, %c0_54] : memref<1x2048x49xbf16, #tpu.memory_space<vmem>>, vector<1x2048x49xbf16>
    %82 = vector.shape_cast %81 : vector<1x2048x49xbf16> to vector<2048x49xbf16>
    %cst_55 = arith.constant dense<0.000000e+00> : vector<64x49xf32>
    %83 = tpu.matmul %2, %82, %cst_55 {dimension_numbers = #tpu.dot_dimension_numbers<[1], [0], [0], [1], [0, 0, 1, 1], [], []>} : vector<64x2048xbf16>, vector<2048x49xbf16>, vector<64x49xf32> -> vector<64x49xf32>
    %84 = vector.broadcast %3 : vector<64x1xf32> to vector<64x49xf32>
    %85 = arith.addf %83, %84 : vector<64x49xf32>
    %cst_56 = arith.constant 0.000000e+00 : f32
    %86 = vector.broadcast %cst_56 : f32 to vector<64x49xf32>
    %87 = arith.maximumf %85, %86 : vector<64x49xf32>
    %88 = vector.broadcast %4 : vector<1x49xf32> to vector<64x49xf32>
    %89 = arith.mulf %87, %88 : vector<64x49xf32>
    %cst_57 = arith.constant dense<0.000000e+00> : vector<64xf32>
    %90 = vector.multi_reduction <add>, %89, %cst_57 [1] : vector<64x49xf32> to vector<64xf32>
    %91 = vector.shape_cast %90 : vector<64xf32> to vector<64x1xf32>
    %92 = arith.addf %80, %91 : vector<64x1xf32>
    %cst_58 = arith.constant dense<0.000000e+00> : vector<8x1xf32>
    %93 = tpu.matmul %5, %92, %cst_58 {dimension_numbers = #tpu.dot_dimension_numbers<[1], [0], [0], [1], [0, 0, 1, 1], [], []>} : vector<8x64xf32>, vector<64x1xf32>, vector<8x1xf32> -> vector<8x1xf32>
    %94 = vector.extract_strided_slice %93 {offsets = [0, 0], sizes = [4, 1], strides = [1, 1]} : vector<8x1xf32> to vector<4x1xf32>
    %95 = arith.addf %94, %6 : vector<4x1xf32>
    %96 = vector.extract_strided_slice %93 {offsets = [4, 0], sizes = [4, 1], strides = [1, 1]} : vector<8x1xf32> to vector<4x1xf32>
    %97 = arith.mulf %95, %96 : vector<4x1xf32>
    %98 = arith.addf %97, %7 : vector<4x1xf32>
    %c0_59 = arith.constant 0 : index
    %c0_60 = arith.constant 0 : index
    %c0_61 = arith.constant 0 : index
    %99 = vector.load %arg11[%c0_59, %c0_60, %c0_61] : memref<1x4x1xf32, #tpu.memory_space<vmem>>, vector<1x4x1xf32>
    %100 = vector.shape_cast %99 : vector<1x4x1xf32> to vector<4x1xf32>
    %101 = vector.shape_cast %98 : vector<4x1xf32> to vector<1x4x1xf32>
    tpu.vector_store %arg11[%c0_59, %c0_60, %c0_61], %101 {strides = array<i32>} : memref<1x4x1xf32, #tpu.memory_space<vmem>>, vector<1x4x1xf32>,
    return
  }
  func.func @transform_0(%arg0: i32) -> (i32, i32, i32) {
    %c0_i32 = arith.constant 0 : i32
    %c0_i32_0 = arith.constant 0 : i32
    %c0_i32_1 = arith.constant 0 : i32
    return %arg0, %c0_i32, %c0_i32_0 : i32, i32, i32
  }
  func.func @transform_1(%arg0: i32) -> (i32, i32, i32) {
    %c0_i32 = arith.constant 0 : i32
    %c0_i32_0 = arith.constant 0 : i32
    %c0_i32_1 = arith.constant 0 : i32
    return %arg0, %c0_i32, %c0_i32_0 : i32, i32, i32
  }
  func.func @transform_2(%arg0: i32) -> (i32, i32) {
    %c0_i32 = arith.constant 0 : i32
    %c0_i32_0 = arith.constant 0 : i32
    %c0_i32_1 = arith.constant 0 : i32
    return %c0_i32, %c0_i32_0 : i32, i32
  }
  func.func @transform_3(%arg0: i32) -> (i32, i32) {
    %c0_i32 = arith.constant 0 : i32
    %c0_i32_0 = arith.constant 0 : i32
    %c0_i32_1 = arith.constant 0 : i32
    return %c0_i32, %c0_i32_0 : i32, i32
  }
  func.func @transform_4(%arg0: i32) -> (i32, i32) {
    %c0_i32 = arith.constant 0 : i32
    %c0_i32_0 = arith.constant 0 : i32
    %c0_i32_1 = arith.constant 0 : i32
    return %c0_i32, %c0_i32_0 : i32, i32
  }
  func.func @transform_5(%arg0: i32) -> (i32, i32) {
    %c0_i32 = arith.constant 0 : i32
    %c0_i32_0 = arith.constant 0 : i32
    %c0_i32_1 = arith.constant 0 : i32
    return %c0_i32, %c0_i32_0 : i32, i32
  }
  func.func @transform_6(%arg0: i32) -> (i32, i32) {
    %c0_i32 = arith.constant 0 : i32
    %c0_i32_0 = arith.constant 0 : i32
    %c0_i32_1 = arith.constant 0 : i32
    return %c0_i32, %c0_i32_0 : i32, i32
  }
  func.func @transform_7(%arg0: i32) -> (i32, i32) {
    %c0_i32 = arith.constant 0 : i32
    %c0_i32_0 = arith.constant 0 : i32
    %c0_i32_1 = arith.constant 0 : i32
    return %c0_i32, %c0_i32_0 : i32, i32
  }
  func.func @transform_8(%arg0: i32) -> (i32, i32) {
    %c0_i32 = arith.constant 0 : i32
    %c0_i32_0 = arith.constant 0 : i32
    %c0_i32_1 = arith.constant 0 : i32
    return %c0_i32, %c0_i32_0 : i32, i32
  }
  func.func @transform_9(%arg0: i32) -> (i32, i32) {
    %c0_i32 = arith.constant 0 : i32
    %c0_i32_0 = arith.constant 0 : i32
    %c0_i32_1 = arith.constant 0 : i32
    return %c0_i32, %c0_i32_0 : i32, i32
  }
  func.func @transform_10(%arg0: i32) -> (i32, i32, i32) {
    %c0_i32 = arith.constant 0 : i32
    %c0_i32_0 = arith.constant 0 : i32
    %c0_i32_1 = arith.constant 0 : i32
    return %arg0, %c0_i32, %c0_i32_0 : i32, i32, i32
  }
}

</mosaic_0001>

<bundles_post_ra>
// kernel: tpu_custom_call.1
= control target key start
LH: loop header
LB: loop body
LE: loop exit
PB: predicated region body
PF: predicated region fallthrough
CT: control target
= control target key end

     0   :  { %s8426_s13 = smov 0   ;;  %s10002_s0 = inlined_call_operand.vmem [shape: bf16[2,256,3136], index: 0, kind: input, shape index: {}]   ;;  %s10003_s1 = inlined_call_operand.vmem [shape: bf16[2,2048,49], index: 1, kind: input, shape index: {}]   ;;  %s10004_s2 = inlined_call_operand.vmem [shape: f32[1,49], index: 2, kind: input, shape index: {}]   ;;  %s10005_s3 = inlined_call_operand.vmem [shape: bf16[64,256], index: 3, kind: input, shape index: {}]   ;;  %s10006_s4 = inlined_call_operand.vmem [shape: f32[64,1], index: 4, kind: input, shape index: {}]   ;;  %s10007_s5 = inlined_call_operand.vmem [shape: bf16[64,2048], index: 5, kind: input, shape index: {}]   ;;  %s10008_s6 = inlined_call_operand.vmem [shape: f32[64,1], index: 6, kind: input, shape index: {}]   ;;  %s10009_s7 = inlined_call_operand.vmem [shape: f32[8,64], index: 7, kind: input, shape index: {}]   ;;  %s10010_s8 = inlined_call_operand.vmem [shape: f32[4,1], index: 8, kind: input, shape index: {}]   ;;  %s10011_s9 = inlined_call_operand.vmem [shape: f32[4,1], index: 9, kind: input, shape index: {}]   ;;  %s10012_s10 = inlined_call_operand.vmem [shape: f32[2,4,1], index: 10, kind: output, shape index: {}]  }
   0x1 LB: > { %s6558_s14 = sadd.s32 4294967295, %s8365_s13   ;;  %p6562_p0 = scmp.ge.s32.totalorder %s8365_s13, 1  ;;  %s8365_s13 = sphi %s8426_s13, %s20_s13  }
   0x2   : > { %p322_p1 = scmp.lt.s32.totalorder %s8365_s13, 3 }
   0x4   : > { %p323_p2 = pnand %p6562_p0, %p322_p1 }
   0x5   : > { %p364_p3 = scmp.lt.s32.totalorder (!%p323_p2), %s6558_s14, 1  ;;  %v8437_v0 = vld [vmem:[%s10005_s3 + $0x4] ss:$8 sps:$4 sm:$0xff] (!%p323_p2)   ;;  %v8367_v27 = vmov (!%p323_p2), 0   ;;  %vm4412_vm0 = vcmask (!%p323_p2), 523264   ;;  %vm6379_vm1 = vcmask (!%p323_p2), 400384  }
   0x6   : > { %326 = sbr.rel (%p323_p2) target bundleno = 1170 (0x492), region = 60  ;;  %967 = vmatprep.mubr.bf16.mxu0 (!%p323_p2), %v8437_v0  ;;  %1040 = vmatprep.mubr.bf16.mxu1 (!%p323_p2), %v8437_v0  ;;  %vm8369_vm2 = vmmov (!%p323_p2), 0   ;;  %vm6491_vm3 = vcmask (!%p323_p2), 3072  }
   0x7   : > { %7601 = vset.pattern.permute.xlu0 (!%p323_p2), %v8367_v27  ;;  %7602 = vset.pattern.permute.xlu1 (!%p323_p2), %v8367_v27 }
   0xd   : > { %s10014_s14 = smov (!%p364_p3, %s6558_s14), 1 }
   0xe   : > { %s7588_s17 = smul.u32 3200, %s10014_s14  ;;  %s7171_s12 = sshll.u32 %s10014_s14, 10 }
   0xf   : > { %s6566_s11 = sshll.u32 %s10014_s14, 2 }
  0x10   : > { %s8447_s20 = scalar_lea.vmem %s10002_s0, %s7588_s17  ;;  %s8896_s17 = scalar_lea.vmem %s10003_s1, %s7171_s12 }
  0x11   : > { %v7603_v1 = vld [vmem:[%s8447_s20 + $0x4] ss:$100 sps:$4 sm:$0xff]   ;;  %v7605_v2 = vld [vmem:[%s8447_s20 + $0xc] ss:$100 sps:$4 sm:$0xff]   ;;  %v7611_v6 = vld [vmem:[%s8447_s20 + $0xd4] ss:$100 sps:$4 sm:$0xff]   ;;  %s377_s19 = scalar_lea.vmem %s10012_s10, %s6566_s11 }
  0x12   : > { %935 = vmatprep.subr.bf16.mxu0 %v7603_v1  ;;  %v7607_v3 = vld [vmem:[%s8447_s20] ss:$100 sps:$4 sm:$0xff]   ;;  %v7608_v4 = vld [vmem:[%s8447_s20 + $0x8] ss:$100 sps:$4 sm:$0xff]   ;;  %1008 = vmatprep.subr.bf16.mxu1 %v7605_v2  ;;  %v7614_v8 = vld [vmem:[%s8447_s20 + $0xd0] ss:$100 sps:$4 sm:$0xff]  }
  0x13   : > { %v7609_v5 = vld [vmem:[%s8447_s20 + $0xcc] ss:$100 sps:$4 sm:$0xff]   ;;  %936 = vmatpush1.bf16.msra.mxu0 %v7607_v3  ;;  %1009 = vmatpush1.bf16.msra.mxu1 %v7608_v4  ;;  %v7615_v9 = vld [vmem:[%s8447_s20 + $0x194] ss:$100 sps:$4 sm:$0xff]   ;;  %v7617_v10 = vld [vmem:[%s8447_s20 + $0x19c] ss:$100 sps:$4 sm:$0xff]  }
  0x14   : > { %v7613_v7 = vld [vmem:[%s8447_s20 + $0xc8] ss:$100 sps:$4 sm:$0xff]   ;;  %937 = vmatprep.subr.bf16.mxu0 %v7609_v5  ;;  %1010 = vmatprep.subr.bf16.mxu1 %v7611_v6  ;;  %v7619_v11 = vld [vmem:[%s8447_s20 + $0x190] ss:$100 sps:$4 sm:$0xff]   ;;  %v7620_v12 = vld [vmem:[%s8447_s20 + $0x198] ss:$100 sps:$4 sm:$0xff]  }
  0x15   : > { %v7621_v13 = vld [vmem:[%s8447_s20 + $0x25c] ss:$100 sps:$4 sm:$0xff]   ;;  %v7623_v14 = vld [vmem:[%s8447_s20 + $0x264] ss:$100 sps:$4 sm:$0xff]   ;;  %v7629_v18 = vld [vmem:[%s8447_s20 + $0x32c] ss:$100 sps:$4 sm:$0xff]  }
  0x16   : > { %v7625_v15 = vld [vmem:[%s8447_s20 + $0x258] ss:$100 sps:$4 sm:$0xff]   ;;  %v7626_v16 = vld [vmem:[%s8447_s20 + $0x260] ss:$100 sps:$4 sm:$0xff]   ;;  %v7632_v20 = vld [vmem:[%s8447_s20 + $0x328] ss:$100 sps:$4 sm:$0xff]  }
  0x17   : > { %938 = vmatpush1.bf16.msra.mxu0 %v7613_v7  ;;  %1011 = vmatpush1.bf16.msra.mxu1 %v7614_v8  ;;  %v7627_v17 = vld [vmem:[%s8447_s20 + $0x324] ss:$100 sps:$4 sm:$0xff]   ;;  %v7633_v21 = vld [vmem:[%s8447_s20 + $0x3ec] ss:$100 sps:$4 sm:$0xff]   ;;  %v7635_v22 = vld [vmem:[%s8447_s20 + $0x3f4] ss:$100 sps:$4 sm:$0xff]  }
  0x18   : > { %939 = vmatprep.subr.bf16.mxu0 %v7615_v9  ;;  %1012 = vmatprep.subr.bf16.mxu1 %v7617_v10  ;;  %v7631_v19 = vld [vmem:[%s8447_s20 + $0x320] ss:$100 sps:$4 sm:$0xff]   ;;  %v7637_v23 = vld [vmem:[%s8447_s20 + $0x3e8] ss:$100 sps:$4 sm:$0xff]   ;;  %v7638_v24 = vld [vmem:[%s8447_s20 + $0x3f0] ss:$100 sps:$4 sm:$0xff]  }
  0x19   : > { %v7639_v25 = vld [vmem:[%s8447_s20 + $0x4b4] ss:$100 sps:$4 sm:$0xff]   ;;  %v7641_v26 = vld [vmem:[%s8447_s20 + $0x4bc] ss:$100 sps:$4 sm:$0xff]   ;;  %v7647_v31 = vld [vmem:[%s8447_s20 + $0x584] ss:$100 sps:$4 sm:$0xff]  }
  0x1a   : > { %v7643_v28 = vld [vmem:[%s8447_s20 + $0x4b0] ss:$100 sps:$4 sm:$0xff]   ;;  %v7644_v29 = vld [vmem:[%s8447_s20 + $0x4b8] ss:$100 sps:$4 sm:$0xff]   ;;  %v7650_v33 = vld [vmem:[%s8447_s20 + $0x580] ss:$100 sps:$4 sm:$0xff]  }
  0x1b   : > { %940 = vmatpush1.bf16.msra.mxu0 %v7619_v11  ;;  %1013 = vmatpush1.bf16.msra.mxu1 %v7620_v12  ;;  %v7645_v30 = vld [vmem:[%s8447_s20 + $0x57c] ss:$100 sps:$4 sm:$0xff]   ;;  %v7651_v34 = vld [vmem:[%s8447_s20 + $0x644] ss:$100 sps:$4 sm:$0xff]   ;;  %v7653_v35 = vld [vmem:[%s8447_s20 + $0x64c] ss:$100 sps:$4 sm:$0xff]  }
  0x1c   : > { %941 = vmatprep.subr.bf16.mxu0 %v7621_v13  ;;  %1014 = vmatprep.subr.bf16.mxu1 %v7623_v14  ;;  %v7649_v32 = vld [vmem:[%s8447_s20 + $0x578] ss:$100 sps:$4 sm:$0xff]   ;;  %v7655_v36 = vld [vmem:[%s8447_s20 + $0x640] ss:$100 sps:$4 sm:$0xff]   ;;  %v7656_v37 = vld [vmem:[%s8447_s20 + $0x648] ss:$100 sps:$4 sm:$0xff]  }
  0x1d   : > { %v7657_v38 = vld [vmem:[%s8447_s20 + $0x70c] ss:$100 sps:$4 sm:$0xff]   ;;  %v7659_v39 = vld [vmem:[%s8447_s20 + $0x714] ss:$100 sps:$4 sm:$0xff]   ;;  %v7665_v43 = vld [vmem:[%s8447_s20 + $0x7dc] ss:$100 sps:$4 sm:$0xff]  }
  0x1e   : > { %v7661_v40 = vld [vmem:[%s8447_s20 + $0x708] ss:$100 sps:$4 sm:$0xff]   ;;  %v7662_v41 = vld [vmem:[%s8447_s20 + $0x710] ss:$100 sps:$4 sm:$0xff]   ;;  %v7668_v45 = vld [vmem:[%s8447_s20 + $0x7d8] ss:$100 sps:$4 sm:$0xff]  }
  0x1f   : > { %942 = vmatpush1.bf16.msra.mxu0 %v7625_v15  ;;  %1015 = vmatpush1.bf16.msra.mxu1 %v7626_v16  ;;  %v7663_v42 = vld [vmem:[%s8447_s20 + $0x7d4] ss:$100 sps:$4 sm:$0xff]   ;;  %v7669_v46 = vld [vmem:[%s8447_s20 + $0x89c] ss:$100 sps:$4 sm:$0xff]   ;;  %v7671_v47 = vld [vmem:[%s8447_s20 + $0x8a4] ss:$100 sps:$4 sm:$0xff]  }
  0x20   : > { %943 = vmatprep.subr.bf16.mxu0 %v7627_v17  ;;  %1016 = vmatprep.subr.bf16.mxu1 %v7629_v18  ;;  %v7667_v44 = vld [vmem:[%s8447_s20 + $0x7d0] ss:$100 sps:$4 sm:$0xff]   ;;  %v7673_v48 = vld [vmem:[%s8447_s20 + $0x898] ss:$100 sps:$4 sm:$0xff]   ;;  %v7674_v49 = vld [vmem:[%s8447_s20 + $0x8a0] ss:$100 sps:$4 sm:$0xff]  }
  0x21   : > { %v7675_v50 = vld [vmem:[%s8447_s20 + $0x964] ss:$100 sps:$4 sm:$0xff]   ;;  %v7677_v51 = vld [vmem:[%s8447_s20 + $0x96c] ss:$100 sps:$4 sm:$0xff]   ;;  %v7683_v55 = vld [vmem:[%s8447_s20 + $0xa34] ss:$100 sps:$4 sm:$0xff]  }
  0x22   : > { %v7679_v52 = vld [vmem:[%s8447_s20 + $0x960] ss:$100 sps:$4 sm:$0xff]   ;;  %v7680_v53 = vld [vmem:[%s8447_s20 + $0x968] ss:$100 sps:$4 sm:$0xff]   ;;  %v7686_v57 = vld [vmem:[%s8447_s20 + $0xa30] ss:$100 sps:$4 sm:$0xff]  }
  0x23   : > { %944 = vmatpush1.bf16.msra.mxu0 %v7631_v19  ;;  %1017 = vmatpush1.bf16.msra.mxu1 %v7632_v20  ;;  %v7681_v54 = vld [vmem:[%s8447_s20 + $0xa2c] ss:$100 sps:$4 sm:$0xff]   ;;  %v7687_v58 = vld [vmem:[%s8447_s20 + $0xaf4] ss:$100 sps:$4 sm:$0xff]   ;;  %v7689_v59 = vld [vmem:[%s8447_s20 + $0xafc] ss:$100 sps:$4 sm:$0xff]  }
  0x24   : > { %945 = vmatprep.subr.bf16.mxu0 %v7633_v21  ;;  %1018 = vmatprep.subr.bf16.mxu1 %v7635_v22  ;;  %v7685_v56 = vld [vmem:[%s8447_s20 + $0xa28] ss:$100 sps:$4 sm:$0xff]   ;;  %v7691_v60 = vld [vmem:[%s8447_s20 + $0xaf0] ss:$100 sps:$4 sm:$0xff]   ;;  %v7692_v61 = vld [vmem:[%s8447_s20 + $0xaf8] ss:$100 sps:$4 sm:$0xff]  }
  0x25   : > { %v7693_v62 = vld [vmem:[%s8447_s20 + $0xbbc] ss:$100 sps:$4 sm:$0xff]   ;;  %v7695_v63 = vld [vmem:[%s8447_s20 + $0xbc4] ss:$100 sps:$4 sm:$0xff]   ;;  %v7704_v3 = vld [vmem:[%s8447_s20 + $0x14] ss:$100 sps:$4 sm:$0xff]  }
  0x26   : > { %v7697_v1 = vld [vmem:[%s8447_s20 + $0xbb8] ss:$100 sps:$4 sm:$0xff]   ;;  %v7698_v2 = vld [vmem:[%s8447_s20 + $0xbc0] ss:$100 sps:$4 sm:$0xff]   ;;  %v7702_v6 = vld [vmem:[%s8447_s20 + $0x10] ss:$100 sps:$4 sm:$0xff]  }
  0x27   : > { %946 = vmatpush1.bf16.msra.mxu0 %v7637_v23  ;;  %1019 = vmatpush1.bf16.msra.mxu1 %v7638_v24  ;;  %v7707_v4 = vld [vmem:[%s8447_s20 + $0x1c] ss:$100 sps:$4 sm:$0xff]   ;;  %v7713_v9 = vld [vmem:[%s8447_s20 + $0xe4] ss:$100 sps:$4 sm:$0xff]   ;;  %v7719_v14 = vld [vmem:[%s8447_s20 + $0x1ac] ss:$100 sps:$4 sm:$0xff]  }
  0x28   : > { %947 = vmatprep.subr.bf16.mxu0 %v7639_v25  ;;  %1020 = vmatprep.subr.bf16.mxu1 %v7641_v26  ;;  %v8518_v5 = vld [vmem:[%s10005_s3] ss:$8 sps:$4 sm:$0xff]   ;;  %v7705_v7 = vld [vmem:[%s8447_s20 + $0x18] ss:$100 sps:$4 sm:$0xff]   ;;  %v7722_v18 = vld [vmem:[%s8447_s20 + $0x26c] ss:$100 sps:$4 sm:$0xff]  }
  0x29   : > { %v7710_v8 = vld [vmem:[%s8447_s20 + $0xdc] ss:$100 sps:$4 sm:$0xff]   ;;  %v7716_v13 = vld [vmem:[%s8447_s20 + $0x1a4] ss:$100 sps:$4 sm:$0xff]   ;;  %v8539_v15 = vld [vmem:[%s10005_s3 + $0x10] ss:$8 sps:$4 sm:$0xff]  }
  0x2a   : > { %v8527_v10 = vld [vmem:[%s10005_s3 + $0x14] ss:$8 sps:$4 sm:$0xff]   ;;  %v7711_v12 = vld [vmem:[%s8447_s20 + $0xe0] ss:$100 sps:$4 sm:$0xff]   ;;  %v7717_v17 = vld [vmem:[%s8447_s20 + $0x1a8] ss:$100 sps:$4 sm:$0xff]  }
  0x2b   : > { %948 = vmatpush1.bf16.msra.mxu0 %v7643_v28  ;;  %1021 = vmatpush1.bf16.msra.mxu1 %v7644_v29  ;;  %v7708_v11 = vld [vmem:[%s8447_s20 + $0xd8] ss:$100 sps:$4 sm:$0xff]   ;;  %v7714_v16 = vld [vmem:[%s8447_s20 + $0x1a0] ss:$100 sps:$4 sm:$0xff]   ;;  %v7720_v21 = vld [vmem:[%s8447_s20 + $0x268] ss:$100 sps:$4 sm:$0xff]  }
  0x2c   : > { %949 = vmatprep.subr.bf16.mxu0 %v7645_v30  ;;  %1022 = vmatprep.subr.bf16.mxu1 %v7647_v31  ;;  %v7725_v19 = vld [vmem:[%s8447_s20 + $0x274] ss:$100 sps:$4 sm:$0xff]   ;;  %v8549_v20 = vld [vmem:[%s10005_s3 + $0x24] ss:$8 sps:$4 sm:$0xff]   ;;  %v7731_v24 = vld [vmem:[%s8447_s20 + $0x33c] ss:$100 sps:$4 sm:$0xff]  }
  0x2d   : > { %v7723_v22 = vld [vmem:[%s8447_s20 + $0x270] ss:$100 sps:$4 sm:$0xff]   ;;  %v8561_v25 = vld [vmem:[%s10005_s3 + $0x20] ss:$8 sps:$4 sm:$0xff]   ;;  %v7729_v27 = vld [vmem:[%s8447_s20 + $0x338] ss:$100 sps:$4 sm:$0xff]  }
  0x2e   : > { %v7728_v23 = vld [vmem:[%s8447_s20 + $0x334] ss:$100 sps:$4 sm:$0xff]   ;;  %v7734_v28 = vld [vmem:[%s8447_s20 + $0x3fc] ss:$100 sps:$4 sm:$0xff]   ;;  %v7737_v29 = vld [vmem:[%s8447_s20 + $0x404] ss:$100 sps:$4 sm:$0xff]  }
  0x2f   : > { %950 = vmatpush1.bf16.msra.mxu0 %v7649_v32  ;;  %1023 = vmatpush1.bf16.msra.mxu1 %v7650_v33  ;;  %v7726_v26 = vld [vmem:[%s8447_s20 + $0x330] ss:$100 sps:$4 sm:$0xff]   ;;  %v7732_v31 = vld [vmem:[%s8447_s20 + $0x3f8] ss:$100 sps:$4 sm:$0xff]   ;;  %v7735_v32 = vld [vmem:[%s8447_s20 + $0x400] ss:$100 sps:$4 sm:$0xff]  }
  0x30   : > { %951 = vmatprep.subr.bf16.mxu0 %v7651_v34  ;;  %1024 = vmatprep.subr.bf16.mxu1 %v7653_v35  ;;  %v8571_v30 = vld [vmem:[%s10005_s3 + $0x34] ss:$8 sps:$4 sm:$0xff]   ;;  %v7740_v33 = vld [vmem:[%s8447_s20 + $0x4c4] ss:$100 sps:$4 sm:$0xff]   ;;  %v7743_v34 = vld [vmem:[%s8447_s20 + $0x4cc] ss:$100 sps:$4 sm:$0xff]  }
  0x31   : > { %v8583_v35 = vld [vmem:[%s10005_s3 + $0x30] ss:$8 sps:$4 sm:$0xff]  }
  0x33   : > { %952 = vmatpush1.bf16.msra.mxu0 %v7655_v36  ;;  %1025 = vmatpush1.bf16.msra.mxu1 %v7656_v37  ;;  %v7738_v36 = vld [vmem:[%s8447_s20 + $0x4c0] ss:$100 sps:$4 sm:$0xff]   ;;  %v7741_v37 = vld [vmem:[%s8447_s20 + $0x4c8] ss:$100 sps:$4 sm:$0xff]  }
  0x34   : > { %953 = vmatprep.subr.bf16.mxu0 %v7657_v38  ;;  %1026 = vmatprep.subr.bf16.mxu1 %v7659_v39  ;;  %v7746_v38 = vld [vmem:[%s8447_s20 + $0x58c] ss:$100 sps:$4 sm:$0xff]   ;;  %v7749_v39 = vld [vmem:[%s8447_s20 + $0x594] ss:$100 sps:$4 sm:$0xff]  }
  0x37   : > { %954 = vmatpush1.bf16.msra.mxu0 %v7661_v40  ;;  %1027 = vmatpush1.bf16.msra.mxu1 %v7662_v41  ;;  %v7744_v40 = vld [vmem:[%s8447_s20 + $0x588] ss:$100 sps:$4 sm:$0xff]   ;;  %v7747_v41 = vld [vmem:[%s8447_s20 + $0x590] ss:$100 sps:$4 sm:$0xff]  }
  0x38   : > { %955 = vmatprep.subr.bf16.mxu0 %v7663_v42  ;;  %1028 = vmatprep.subr.bf16.mxu1 %v7665_v43  ;;  %v7752_v42 = vld [vmem:[%s8447_s20 + $0x654] ss:$100 sps:$4 sm:$0xff]   ;;  %v7755_v43 = vld [vmem:[%s8447_s20 + $0x65c] ss:$100 sps:$4 sm:$0xff]  }
  0x3b   : > { %956 = vmatpush1.bf16.msra.mxu0 %v7667_v44  ;;  %1029 = vmatpush1.bf16.msra.mxu1 %v7668_v45  ;;  %v7750_v44 = vld [vmem:[%s8447_s20 + $0x650] ss:$100 sps:$4 sm:$0xff]   ;;  %v7753_v45 = vld [vmem:[%s8447_s20 + $0x658] ss:$100 sps:$4 sm:$0xff]  }
  0x3c   : > { %957 = vmatprep.subr.bf16.mxu0 %v7669_v46  ;;  %1030 = vmatprep.subr.bf16.mxu1 %v7671_v47  ;;  %v7758_v46 = vld [vmem:[%s8447_s20 + $0x71c] ss:$100 sps:$4 sm:$0xff]   ;;  %v7761_v47 = vld [vmem:[%s8447_s20 + $0x724] ss:$100 sps:$4 sm:$0xff]  }
  0x3f   : > { %958 = vmatpush1.bf16.msra.mxu0 %v7673_v48  ;;  %1031 = vmatpush1.bf16.msra.mxu1 %v7674_v49  ;;  %v387_v48 = vld [vmem:[%s10006_s4] sm:$0xff]  ;;  %v7756_v49 = vld [vmem:[%s8447_s20 + $0x718] ss:$100 sps:$4 sm:$0xff]  }
  0x40   : > { %959 = vmatprep.subr.bf16.mxu0 %v7675_v50  ;;  %1032 = vmatprep.subr.bf16.mxu1 %v7677_v51  ;;  %v7767_v50 = vld [vmem:[%s8447_s20 + $0x7e4] ss:$100 sps:$4 sm:$0xff]   ;;  %v7770_v51 = vld [vmem:[%s8447_s20 + $0x7ec] ss:$100 sps:$4 sm:$0xff]  }
  0x41   : > { %537 = vperm.xlu0 %7601, %v387_v48   ;;  %v7845_v48 = vld [vmem:[%s8447_s20 + $0x4d4] ss:$100 sps:$4 sm:$0xff]  }
  0x43   : > { %960 = vmatpush1.bf16.msra.mxu0 %v7679_v52  ;;  %1033 = vmatpush1.bf16.msra.mxu1 %v7680_v53  ;;  %v388_v52 = vld [vmem:[%s10006_s4 + $0x8] sm:$0xff]  ;;  %v7765_v53 = vld [vmem:[%s8447_s20 + $0x7e0] ss:$100 sps:$4 sm:$0xff]  }
  0x44   : > { %961 = vmatprep.subr.bf16.mxu0 %v7681_v54  ;;  %1034 = vmatprep.subr.bf16.mxu1 %v7683_v55  ;;  %v7768_v54 = vld [vmem:[%s8447_s20 + $0x7e8] ss:$100 sps:$4 sm:$0xff]  }
  0x45   : > { %542 = vperm.xlu0 %7601, %v388_v52   ;;  %v7773_v55 = vld [vmem:[%s8447_s20 + $0x8ac] ss:$100 sps:$4 sm:$0xff]   ;;  %v7849_v52 = vld [vmem:[%s8447_s20 + $0x598] ss:$100 sps:$4 sm:$0xff]  }
  0x47   : > { %962 = vmatpush1.bf16.msra.mxu0 %v7685_v56  ;;  %1035 = vmatpush1.bf16.msra.mxu1 %v7686_v57  ;;  %v7776_v56 = vld [vmem:[%s8447_s20 + $0x8b4] ss:$100 sps:$4 sm:$0xff]   ;;  %v7771_v57 = vld [vmem:[%s8447_s20 + $0x8a8] ss:$100 sps:$4 sm:$0xff]  }
  0x48   : > { %963 = vmatprep.subr.bf16.mxu0 %v7687_v58  ;;  %1036 = vmatprep.subr.bf16.mxu1 %v7689_v59  ;;  %v7774_v58 = vld [vmem:[%s8447_s20 + $0x8b0] ss:$100 sps:$4 sm:$0xff]  }
  0x49   : > { %v7782_v59 = vld [vmem:[%s8447_s20 + $0x974] ss:$100 sps:$4 sm:$0xff]  }
  0x4b   : > { %964 = vmatpush1.bf16.msra.mxu0 %v7691_v60  ;;  %1037 = vmatpush1.bf16.msra.mxu1 %v7692_v61  ;;  %v7785_v60 = vld [vmem:[%s8447_s20 + $0x97c] ss:$100 sps:$4 sm:$0xff]   ;;  %v7780_v61 = vld [vmem:[%s8447_s20 + $0x970] ss:$100 sps:$4 sm:$0xff]  }
  0x4c   : > { %965 = vmatprep.subr.bf16.mxu0 %v7693_v62  ;;  %1038 = vmatprep.subr.bf16.mxu1 %v7695_v63  ;;  %v7783_v62 = vld [vmem:[%s8447_s20 + $0x978] ss:$100 sps:$4 sm:$0xff]  }
  0x4d   : > { %v7788_v63 = vld [vmem:[%s8447_s20 + $0xa3c] ss:$100 sps:$4 sm:$0xff]  }
  0x4f   : > { %966 = vmatpush1.bf16.msra.mxu0 %v7697_v1  ;;  %1039 = vmatpush1.bf16.msra.mxu1 %v7698_v2  ;;  %v7791_v1 = vld [vmem:[%s8447_s20 + $0xa44] ss:$100 sps:$4 sm:$0xff]   ;;  %v7786_v2 = vld [vmem:[%s8447_s20 + $0xa38] ss:$100 sps:$4 sm:$0xff]  }
  0x50   : > { %1545 = vmatprep.subr.bf16.mxu0 %v7704_v3  ;;  %1618 = vmatprep.subr.bf16.mxu1 %v7707_v4  ;;  %v7789_v3 = vld [vmem:[%s8447_s20 + $0xa40] ss:$100 sps:$4 sm:$0xff]  }
  0x51   : > { %v7797_v4 = vld [vmem:[%s8447_s20 + $0xb04] ss:$100 sps:$4 sm:$0xff]  }
  0x52   : > { %968 = vmatmul.mubr.bf16.vlgmr.msra.gmra.mrb[0].mxu0 %v8518_v5  ;;  %1041 = vmatmul.mubr.bf16.vlgmr.msra.gmra.mrb[0].mxu1 %v8518_v5 }
  0x53   : > { %1546 = vmatpush1.bf16.msra.mxu0 %v7702_v6  ;;  %1619 = vmatpush1.bf16.msra.mxu1 %v7705_v7  ;;  %v7800_v6 = vld [vmem:[%s8447_s20 + $0xb0c] ss:$100 sps:$4 sm:$0xff]   ;;  %v7795_v7 = vld [vmem:[%s8447_s20 + $0xb00] ss:$100 sps:$4 sm:$0xff]  }
  0x54   : > { %1547 = vmatprep.subr.bf16.mxu0 %v7710_v8  ;;  %1620 = vmatprep.subr.bf16.mxu1 %v7713_v9  ;;  %v7798_v8 = vld [vmem:[%s8447_s20 + $0xb08] ss:$100 sps:$4 sm:$0xff]  }
  0x55   : > { %977 = vmatprep.mubr.bf16.mxu0 %v8527_v10  ;;  %1050 = vmatprep.mubr.bf16.mxu1 %v8527_v10  ;;  %v7803_v9 = vld [vmem:[%s8447_s20 + $0xbcc] ss:$100 sps:$4 sm:$0xff]  }
  0x57   : > { %1548 = vmatpush1.bf16.msra.mxu0 %v7708_v11  ;;  %1621 = vmatpush1.bf16.msra.mxu1 %v7711_v12  ;;  %v7806_v11 = vld [vmem:[%s8447_s20 + $0xbd4] ss:$100 sps:$4 sm:$0xff]   ;;  %v7801_v12 = vld [vmem:[%s8447_s20 + $0xbc8] ss:$100 sps:$4 sm:$0xff]  }
  0x58   : > { %1549 = vmatprep.subr.bf16.mxu0 %v7716_v13  ;;  %1622 = vmatprep.subr.bf16.mxu1 %v7719_v14  ;;  %v459_v13 = vld [vmem:[%s10008_s6] sm:$0xff]  ;;  %v7804_v14 = vld [vmem:[%s8447_s20 + $0xbd0] ss:$100 sps:$4 sm:$0xff]  }
  0x59   : > { %4711 = vperm.xlu1 %7602, %v459_v13   ;;  %v7879_v13 = vld [vmem:[%s8447_s20 + $0x980] ss:$100 sps:$4 sm:$0xff]  }
  0x5a   : > { %978 = vmatmul.mubr.bf16.gmra.mrb[4].mxu0 %v8539_v15  ;;  %1051 = vmatmul.mubr.bf16.gmra.mrb[4].mxu1 %v8539_v15 }
  0x5b   : > { %1550 = vmatpush1.bf16.msra.mxu0 %v7714_v16  ;;  %1623 = vmatpush1.bf16.msra.mxu1 %v7717_v17  ;;  %v7809_v16 = vld [vmem:[%s8447_s20 + $0x24] ss:$100 sps:$4 sm:$0xff]   ;;  %v7812_v17 = vld [vmem:[%s8447_s20 + $0x2c] ss:$100 sps:$4 sm:$0xff]  }
  0x5c   : > { %1551 = vmatprep.subr.bf16.mxu0 %v7722_v18  ;;  %1624 = vmatprep.subr.bf16.mxu1 %v7725_v19  ;;  %v7807_v18 = vld [vmem:[%s8447_s20 + $0x20] ss:$100 sps:$4 sm:$0xff]   ;;  %v460_v19 = vld [vmem:[%s10008_s6 + $0x8] sm:$0xff] }
  0x5d   : > { %987 = vmatprep.mubr.bf16.mxu0 %v8549_v20  ;;  %1060 = vmatprep.mubr.bf16.mxu1 %v8549_v20 }
  0x5e   : > { %4716 = vperm.xlu1 %7602, %v460_v19   ;;  %v7890_v19 = vld [vmem:[%s8447_s20 + $0xa54] ss:$100 sps:$4 sm:$0xff]  }
  0x5f   : > { %1552 = vmatpush1.bf16.msra.mxu0 %v7720_v21  ;;  %1625 = vmatpush1.bf16.msra.mxu1 %v7723_v22  ;;  %v7810_v21 = vld [vmem:[%s8447_s20 + $0x28] ss:$100 sps:$4 sm:$0xff]  }
  0x60   : > { %1553 = vmatprep.subr.bf16.mxu0 %v7728_v23  ;;  %1626 = vmatprep.subr.bf16.mxu1 %v7731_v24  ;;  %v7815_v22 = vld [vmem:[%s8447_s20 + $0xec] ss:$100 sps:$4 sm:$0xff]   ;;  %v7818_v23 = vld [vmem:[%s8447_s20 + $0xf4] ss:$100 sps:$4 sm:$0xff]  }
  0x61   : > { %v389_v24 = vld [vmem:[%s10006_s4 + $0x10] sm:$0xff] }
  0x62   : > { %988 = vmatmul.mubr.bf16.gmra.mrb[8].mxu0 %v8561_v25  ;;  %1061 = vmatmul.mubr.bf16.gmra.mrb[8].mxu1 %v8561_v25 }
  0x63   : > { %1554 = vmatpush1.bf16.msra.mxu0 %v7726_v26  ;;  %1627 = vmatpush1.bf16.msra.mxu1 %v7729_v27  ;;  %v7813_v26 = vld [vmem:[%s8447_s20 + $0xe8] ss:$100 sps:$4 sm:$0xff]   ;;  %v7816_v27 = vld [vmem:[%s8447_s20 + $0xf0] ss:$100 sps:$4 sm:$0xff]  }
  0x64   : > { %1555 = vmatprep.subr.bf16.mxu0 %v7734_v28  ;;  %1628 = vmatprep.subr.bf16.mxu1 %v7737_v29  ;;  %v7821_v28 = vld [vmem:[%s8447_s20 + $0x1b4] ss:$100 sps:$4 sm:$0xff]   ;;  %v7824_v29 = vld [vmem:[%s8447_s20 + $0x1bc] ss:$100 sps:$4 sm:$0xff]  }
  0x65   : > { %997 = vmatprep.mubr.bf16.mxu0 %v8571_v30  ;;  %1070 = vmatprep.mubr.bf16.mxu1 %v8571_v30 }
  0x66   : > { %547 = vperm.xlu0 %7601, %v389_v24   ;;  %v7896_v24 = vld [vmem:[%s8447_s20 + $0xb1c] ss:$100 sps:$4 sm:$0xff]  }
  0x67   : > { %1556 = vmatpush1.bf16.msra.mxu0 %v7732_v31  ;;  %1629 = vmatpush1.bf16.msra.mxu1 %v7735_v32  ;;  %v390_v31 = vld [vmem:[%s10006_s4 + $0x18] sm:$0xff]  ;;  %v7819_v32 = vld [vmem:[%s8447_s20 + $0x1b0] ss:$100 sps:$4 sm:$0xff]  }
  0x68   : > { %1557 = vmatprep.subr.bf16.mxu0 %v7740_v33  ;;  %1630 = vmatprep.subr.bf16.mxu1 %v7743_v34  ;;  %v7822_v33 = vld [vmem:[%s8447_s20 + $0x1b8] ss:$100 sps:$4 sm:$0xff]  }
  0x69   : > { %552 = vperm.xlu1 %7602, %v390_v31   ;;  %v7827_v34 = vld [vmem:[%s8447_s20 + $0x27c] ss:$100 sps:$4 sm:$0xff]  }
  0x6a   : > { %998 = vmatmul.mubr.bf16.gmra.mrb[12].mxu0 %v8583_v35  ;;  %1071 = vmatmul.mubr.bf16.gmra.mrb[12].mxu1 %v8583_v35  ;;  %v7897_v31 = vld [vmem:[%s8447_s20 + $0xbd8] ss:$100 sps:$4 sm:$0xff]  }
  0x6b   : > { %1558 = vmatpush1.bf16.msra.mxu0 %v7738_v36  ;;  %1631 = vmatpush1.bf16.msra.mxu1 %v7741_v37  ;;  %v7830_v36 = vld [vmem:[%s8447_s20 + $0x284] ss:$100 sps:$4 sm:$0xff]   ;;  %v7825_v37 = vld [vmem:[%s8447_s20 + $0x278] ss:$100 sps:$4 sm:$0xff]  }
  0x6c   : > { %1559 = vmatprep.subr.bf16.mxu0 %v7746_v38  ;;  %1632 = vmatprep.subr.bf16.mxu1 %v7749_v39  ;;  %v7828_v38 = vld [vmem:[%s8447_s20 + $0x280] ss:$100 sps:$4 sm:$0xff]   ;;  %v462_v39 = vld [vmem:[%s10008_s6 + $0x18] sm:$0xff] }
  0x6d   : > { %1577 = vmatprep.mubr.bf16.mxu0 %v8437_v0  ;;  %1650 = vmatprep.mubr.bf16.mxu1 %v8437_v0  ;;  %v7759_v0 = vld [vmem:[%s8447_s20 + $0x720] ss:$100 sps:$4 sm:$0xff]  }
  0x6e   : > { %4726 = vperm.xlu1 %7602, %v462_v39   ;;  %v7909_v39 = vld [vmem:[%s8447_s20 + $0xf8] ss:$100 sps:$4 sm:$0xff]  }
  0x6f   : > { %1560 = vmatpush1.bf16.msra.mxu0 %v7744_v40  ;;  %1633 = vmatpush1.bf16.msra.mxu1 %v7747_v41  ;;  %v391_v40 = vld [vmem:[%s10006_s4 + $0x20] sm:$0xff] }
  0x70   : > { %1561 = vmatprep.subr.bf16.mxu0 %v7752_v42  ;;  %1634 = vmatprep.subr.bf16.mxu1 %v7755_v43  ;;  %v7831_v41 = vld [vmem:[%s8447_s20 + $0x340] ss:$100 sps:$4 sm:$0xff]   ;;  %v7834_v42 = vld [vmem:[%s8447_s20 + $0x348] ss:$100 sps:$4 sm:$0xff]  }
  0x71   : > { %v7839_v43 = vld [vmem:[%s8447_s20 + $0x40c] ss:$100 sps:$4 sm:$0xff]  }
  0x73   : > { %1562 = vmatpush1.bf16.msra.mxu0 %v7750_v44  ;;  %1635 = vmatpush1.bf16.msra.mxu1 %v7753_v45  ;;  %v7842_v44 = vld [vmem:[%s8447_s20 + $0x414] ss:$100 sps:$4 sm:$0xff]   ;;  %v7837_v45 = vld [vmem:[%s8447_s20 + $0x408] ss:$100 sps:$4 sm:$0xff]  }
  0x74   : > { %1563 = vmatprep.subr.bf16.mxu0 %v7758_v46  ;;  %1636 = vmatprep.subr.bf16.mxu1 %v7761_v47  ;;  %v7840_v46 = vld [vmem:[%s8447_s20 + $0x410] ss:$100 sps:$4 sm:$0xff]   ;;  %v463_v47 = vld [vmem:[%s10008_s6 + $0x20] sm:$0xff] }
  0x77   : > { %1564 = vmatpush1.bf16.msra.mxu0 %v7756_v49  ;;  %1637 = vmatpush1.bf16.msra.mxu1 %v7759_v0  ;;  %v7843_v49 = vld [vmem:[%s8447_s20 + $0x4d0] ss:$100 sps:$4 sm:$0xff]   ;;  %v7846_v0 = vld [vmem:[%s8447_s20 + $0x4d8] ss:$100 sps:$4 sm:$0xff]  }
  0x78   : > { %1565 = vmatprep.subr.bf16.mxu0 %v7767_v50  ;;  %1638 = vmatprep.subr.bf16.mxu1 %v7770_v51  ;;  %v7851_v50 = vld [vmem:[%s8447_s20 + $0x59c] ss:$100 sps:$4 sm:$0xff]   ;;  %v7854_v51 = vld [vmem:[%s8447_s20 + $0x5a4] ss:$100 sps:$4 sm:$0xff]  }
  0x7b   : > { %1566 = vmatpush1.bf16.msra.mxu0 %v7765_v53  ;;  %1639 = vmatpush1.bf16.msra.mxu1 %v7768_v54  ;;  %v7852_v53 = vld [vmem:[%s8447_s20 + $0x5a0] ss:$100 sps:$4 sm:$0xff]   ;;  %v393_v54 = vld [vmem:[%s10006_s4 + $0x30] sm:$0xff] }
  0x7c   : > { %1567 = vmatprep.subr.bf16.mxu0 %v7773_v55  ;;  %1640 = vmatprep.subr.bf16.mxu1 %v7776_v56  ;;  %v7857_v55 = vld [vmem:[%s8447_s20 + $0x664] ss:$100 sps:$4 sm:$0xff]   ;;  %v7860_v56 = vld [vmem:[%s8447_s20 + $0x66c] ss:$100 sps:$4 sm:$0xff]  }
  0x7f   : > { %1568 = vmatpush1.bf16.msra.mxu0 %v7771_v57  ;;  %1641 = vmatpush1.bf16.msra.mxu1 %v7774_v58  ;;  %v7855_v57 = vld [vmem:[%s8447_s20 + $0x660] ss:$100 sps:$4 sm:$0xff]   ;;  %v7858_v58 = vld [vmem:[%s8447_s20 + $0x668] ss:$100 sps:$4 sm:$0xff]  }
  0x80   : > { %1569 = vmatprep.subr.bf16.mxu0 %v7782_v59  ;;  %1642 = vmatprep.subr.bf16.mxu1 %v7785_v60  ;;  %v394_v59 = vld [vmem:[%s10006_s4 + $0x38] sm:$0xff]  ;;  %v7863_v60 = vld [vmem:[%s8447_s20 + $0x72c] ss:$100 sps:$4 sm:$0xff]  }
  0x83   : > { %1570 = vmatpush1.bf16.msra.mxu0 %v7780_v61  ;;  %1643 = vmatpush1.bf16.msra.mxu1 %v7783_v62  ;;  %v7866_v61 = vld [vmem:[%s8447_s20 + $0x734] ss:$100 sps:$4 sm:$0xff]   ;;  %v7861_v62 = vld [vmem:[%s8447_s20 + $0x728] ss:$100 sps:$4 sm:$0xff]  }
  0x84   : > { %1571 = vmatprep.subr.bf16.mxu0 %v7788_v63  ;;  %1644 = vmatprep.subr.bf16.mxu1 %v7791_v1  ;;  %v7864_v63 = vld [vmem:[%s8447_s20 + $0x730] ss:$100 sps:$4 sm:$0xff]  }
  0x85   : > { %v7869_v1 = vld [vmem:[%s8447_s20 + $0x7f4] ss:$100 sps:$4 sm:$0xff]  }
  0x87   : > { %1572 = vmatpush1.bf16.msra.mxu0 %v7786_v2  ;;  %1645 = vmatpush1.bf16.msra.mxu1 %v7789_v3  ;;  %v7872_v2 = vld [vmem:[%s8447_s20 + $0x7fc] ss:$100 sps:$4 sm:$0xff]   ;;  %v7867_v3 = vld [vmem:[%s8447_s20 + $0x7f0] ss:$100 sps:$4 sm:$0xff]  }
  0x88   : > { %1573 = vmatprep.subr.bf16.mxu0 %v7797_v4  ;;  %1646 = vmatprep.subr.bf16.mxu1 %v7800_v6  ;;  %v7870_v4 = vld [vmem:[%s8447_s20 + $0x7f8] ss:$100 sps:$4 sm:$0xff]  }
  0x89   : > { %v7875_v6 = vld [vmem:[%s8447_s20 + $0x8bc] ss:$100 sps:$4 sm:$0xff]  }
  0x8b   : > { %1574 = vmatpush1.bf16.msra.mxu0 %v7795_v7  ;;  %1647 = vmatpush1.bf16.msra.mxu1 %v7798_v8  ;;  %v7878_v7 = vld [vmem:[%s8447_s20 + $0x8c4] ss:$100 sps:$4 sm:$0xff]   ;;  %v7873_v8 = vld [vmem:[%s8447_s20 + $0x8b8] ss:$100 sps:$4 sm:$0xff]  }
  0x8c   : > { %1575 = vmatprep.subr.bf16.mxu0 %v7803_v9  ;;  %1648 = vmatprep.subr.bf16.mxu1 %v7806_v11  ;;  %v7876_v9 = vld [vmem:[%s8447_s20 + $0x8c0] ss:$100 sps:$4 sm:$0xff]  }
  0x8d   : > { %v7881_v11 = vld [vmem:[%s8447_s20 + $0x984] ss:$100 sps:$4 sm:$0xff]  }
  0x8f   : > { %1576 = vmatpush1.bf16.msra.mxu0 %v7801_v12  ;;  %1649 = vmatpush1.bf16.msra.mxu1 %v7804_v14  ;;  %v7884_v12 = vld [vmem:[%s8447_s20 + $0x98c] ss:$100 sps:$4 sm:$0xff]  }
  0x90   : > { %2155 = vmatprep.subr.bf16.mxu0 %v7809_v16  ;;  %2228 = vmatprep.subr.bf16.mxu1 %v7812_v17  ;;  %v7882_v14 = vld [vmem:[%s8447_s20 + $0x988] ss:$100 sps:$4 sm:$0xff]   ;;  %v466_v16 = vld [vmem:[%s10008_s6 + $0x38] sm:$0xff]  ;;  %v465_v17 = vld [vmem:[%s10008_s6 + $0x30] sm:$0xff] }
  0x92   : > { %1578 = vmatmul.mubr.bf16.vlgmr.msra.gmra.mrb[16].mxu0 %v8518_v5  ;;  %1651 = vmatmul.mubr.bf16.vlgmr.msra.gmra.mrb[16].mxu1 %v8518_v5  ;;  %v461_v5 = vld [vmem:[%s10008_s6 + $0x10] sm:$0xff] }
  0x93   : > { %2156 = vmatpush1.bf16.msra.mxu0 %v7807_v18  ;;  %2229 = vmatpush1.bf16.msra.mxu1 %v7810_v21  ;;  %v7887_v18 = vld [vmem:[%s8447_s20 + $0xa4c] ss:$100 sps:$4 sm:$0xff]  }
  0x94   : > { %2157 = vmatprep.subr.bf16.mxu0 %v7815_v22  ;;  %2230 = vmatprep.subr.bf16.mxu1 %v7818_v23  ;;  %v7885_v21 = vld [vmem:[%s8447_s20 + $0xa48] ss:$100 sps:$4 sm:$0xff]   ;;  %v7888_v22 = vld [vmem:[%s8447_s20 + $0xa50] ss:$100 sps:$4 sm:$0xff]  }
  0x95   : > { %1587 = vmatprep.mubr.bf16.mxu0 %v8527_v10  ;;  %1660 = vmatprep.mubr.bf16.mxu1 %v8527_v10  ;;  %v7833_v10 = vld [vmem:[%s8447_s20 + $0x344] ss:$100 sps:$4 sm:$0xff]   ;;  %v7893_v23 = vld [vmem:[%s8447_s20 + $0xb14] ss:$100 sps:$4 sm:$0xff]  }
  0x96   : > { %4721 = vperm.xlu0 %7601, %v461_v5   ;;  %v7900_v5 = vld [vmem:[%s8447_s20 + $0xbe0] ss:$100 sps:$4 sm:$0xff]  }
  0x97   : > { %2158 = vmatpush1.bf16.msra.mxu0 %v7813_v26  ;;  %2231 = vmatpush1.bf16.msra.mxu1 %v7816_v27  ;;  %v7891_v26 = vld [vmem:[%s8447_s20 + $0xb10] ss:$100 sps:$4 sm:$0xff]   ;;  %v7894_v27 = vld [vmem:[%s8447_s20 + $0xb18] ss:$100 sps:$4 sm:$0xff]  }
  0x98   : > { %2159 = vmatprep.subr.bf16.mxu0 %v7821_v28  ;;  %2232 = vmatprep.subr.bf16.mxu1 %v7824_v29  ;;  %v7899_v28 = vld [vmem:[%s8447_s20 + $0xbdc] ss:$100 sps:$4 sm:$0xff]   ;;  %v7902_v29 = vld [vmem:[%s8447_s20 + $0xbe4] ss:$100 sps:$4 sm:$0xff]  }
  0x9a   : > { %1588 = vmatmul.mubr.bf16.gmra.mrb[20].mxu0 %v8539_v15  ;;  %1661 = vmatmul.mubr.bf16.gmra.mrb[20].mxu1 %v8539_v15  ;;  %v7836_v15 = vld [vmem:[%s8447_s20 + $0x34c] ss:$100 sps:$4 sm:$0xff]  }
  0x9b   : > { %2160 = vmatpush1.bf16.msra.mxu0 %v7819_v32  ;;  %2233 = vmatpush1.bf16.msra.mxu1 %v7822_v33  ;;  %v7905_v32 = vld [vmem:[%s8447_s20 + $0x34] ss:$100 sps:$4 sm:$0xff]   ;;  %v7908_v33 = vld [vmem:[%s8447_s20 + $0x3c] ss:$100 sps:$4 sm:$0xff]  }
  0x9c   : > { %2161 = vmatprep.subr.bf16.mxu0 %v7827_v34  ;;  %2234 = vmatprep.subr.bf16.mxu1 %v7830_v36  ;;  %v7903_v34 = vld [vmem:[%s8447_s20 + $0x30] ss:$100 sps:$4 sm:$0xff]   ;;  %v7906_v36 = vld [vmem:[%s8447_s20 + $0x38] ss:$100 sps:$4 sm:$0xff]  }
  0x9d   : > { %1597 = vmatprep.mubr.bf16.mxu0 %v8549_v20  ;;  %1670 = vmatprep.mubr.bf16.mxu1 %v8549_v20  ;;  %v392_v20 = vld [vmem:[%s10006_s4 + $0x28] sm:$0xff] }
  0x9e   : > { %557 = vperm.xlu0 %7601, %v391_v40   ;;  %562 = vperm.xlu1 %7602, %v392_v20   ;;  %v7912_v40 = vld [vmem:[%s8447_s20 + $0x100] ss:$100 sps:$4 sm:$0xff]   ;;  %v8792_v20 = vld [vmem:[%s10005_s3 + $0x10] ss:$8 sps:$4 sm:$0xff]  }
  0x9f   : > { %2162 = vmatpush1.bf16.msra.mxu0 %v7825_v37  ;;  %2235 = vmatpush1.bf16.msra.mxu1 %v7828_v38  ;;  %v7911_v37 = vld [vmem:[%s8447_s20 + $0xfc] ss:$100 sps:$4 sm:$0xff]   ;;  %v7914_v38 = vld [vmem:[%s8447_s20 + $0x104] ss:$100 sps:$4 sm:$0xff]  }
  0xa0   : > { %2163 = vmatprep.subr.bf16.mxu0 %v7833_v10  ;;  %2236 = vmatprep.subr.bf16.mxu1 %v7836_v15  ;;  %v8770_v10 = vld [vmem:[%s10005_s3] ss:$8 sps:$4 sm:$0xff]  }
  0xa1   : > { %v7917_v15 = vld [vmem:[%s8447_s20 + $0x1c4] ss:$100 sps:$4 sm:$0xff]  }
  0xa2   : > { %1598 = vmatmul.mubr.bf16.gmra.mrb[24].mxu0 %v8561_v25  ;;  %1671 = vmatmul.mubr.bf16.gmra.mrb[24].mxu1 %v8561_v25  ;;  %v7848_v25 = vld [vmem:[%s8447_s20 + $0x4dc] ss:$100 sps:$4 sm:$0xff]  }
  0xa3   : > { %2164 = vmatpush1.bf16.msra.mxu0 %v7831_v41  ;;  %2237 = vmatpush1.bf16.msra.mxu1 %v7834_v42  ;;  %v7920_v41 = vld [vmem:[%s8447_s20 + $0x1cc] ss:$100 sps:$4 sm:$0xff]   ;;  %v8781_v42 = vld [vmem:[%s10005_s3 + $0x14] ss:$8 sps:$4 sm:$0xff]  }
  0xa4   : > { %2165 = vmatprep.subr.bf16.mxu0 %v7839_v43  ;;  %2238 = vmatprep.subr.bf16.mxu1 %v7842_v44  ;;  %v7915_v43 = vld [vmem:[%s8447_s20 + $0x1c0] ss:$100 sps:$4 sm:$0xff]   ;;  %v7918_v44 = vld [vmem:[%s8447_s20 + $0x1c8] ss:$100 sps:$4 sm:$0xff]  }
  0xa5   : > { %1607 = vmatprep.mubr.bf16.mxu0 %v8571_v30  ;;  %1680 = vmatprep.mubr.bf16.mxu1 %v8571_v30  ;;  %v464_v30 = vld [vmem:[%s10008_s6 + $0x28] sm:$0xff] }
  0xa6   : > { %4731 = vperm.xlu0 %7601, %v463_v47   ;;  %4736 = vperm.xlu1 %7602, %v464_v30   ;;  %v7921_v47 = vld [vmem:[%s8447_s20 + $0x288] ss:$100 sps:$4 sm:$0xff]  }
  0xa7   : > { %2166 = vmatpush1.bf16.msra.mxu0 %v7837_v45  ;;  %2239 = vmatpush1.bf16.msra.mxu1 %v7840_v46  ;;  %v7923_v45 = vld [vmem:[%s8447_s20 + $0x28c] ss:$100 sps:$4 sm:$0xff]   ;;  %v7926_v46 = vld [vmem:[%s8447_s20 + $0x294] ss:$100 sps:$4 sm:$0xff]   ;;  %v8814_v30 = vld [vmem:[%s10005_s3 + $0x20] ss:$8 sps:$4 sm:$0xff]  }
  0xa8   : > { %2167 = vmatprep.subr.bf16.mxu0 %v7845_v48  ;;  %2240 = vmatprep.subr.bf16.mxu1 %v7848_v25  ;;  %v7924_v48 = vld [vmem:[%s8447_s20 + $0x290] ss:$100 sps:$4 sm:$0xff]  }
  0xa9   : > { %v7929_v25 = vld [vmem:[%s8447_s20 + $0x354] ss:$100 sps:$4 sm:$0xff]  }
  0xaa   : > { %1608 = vmatmul.mubr.bf16.gmra.mrb[28].mxu0 %v8583_v35  ;;  %1681 = vmatmul.mubr.bf16.gmra.mrb[28].mxu1 %v8583_v35  ;;  %v8718_v35 = vld [vmem:[%s10005_s3 + $0x4] ss:$8 sps:$4 sm:$0xff]  }
  0xab   : > { %2168 = vmatpush1.bf16.msra.mxu0 %v7843_v49  ;;  %2241 = vmatpush1.bf16.msra.mxu1 %v7846_v0  ;;  %v7932_v49 = vld [vmem:[%s8447_s20 + $0x35c] ss:$100 sps:$4 sm:$0xff]   ;;  %v8803_v0 = vld [vmem:[%s10005_s3 + $0x24] ss:$8 sps:$4 sm:$0xff]  }
  0xac   : > { %2169 = vmatprep.subr.bf16.mxu0 %v7851_v50  ;;  %2242 = vmatprep.subr.bf16.mxu1 %v7854_v51  ;;  %v7927_v50 = vld [vmem:[%s8447_s20 + $0x350] ss:$100 sps:$4 sm:$0xff]   ;;  %v7930_v51 = vld [vmem:[%s8447_s20 + $0x358] ss:$100 sps:$4 sm:$0xff]  }
  0xad   : > { %2187 = vmatprep.mubr.bf16.mxu0 %v8718_v35  ;;  %2260 = vmatprep.mubr.bf16.mxu1 %v8718_v35 }
  0xae   : > { %567 = vperm.xlu0 %7601, %v393_v54   ;;  %572 = vperm.xlu1 %7602, %v394_v59   ;;  %v7933_v54 = vld [vmem:[%s8447_s20 + $0x418] ss:$100 sps:$4 sm:$0xff]   ;;  %v7939_v59 = vld [vmem:[%s8447_s20 + $0x4e0] ss:$100 sps:$4 sm:$0xff]  }
  0xaf   : > { %2170 = vmatpush1.bf16.msra.mxu0 %v7849_v52  ;;  %2243 = vmatpush1.bf16.msra.mxu1 %v7852_v53  ;;  %v7935_v52 = vld [vmem:[%s8447_s20 + $0x41c] ss:$100 sps:$4 sm:$0xff]   ;;  %v7938_v53 = vld [vmem:[%s8447_s20 + $0x424] ss:$100 sps:$4 sm:$0xff]  }
  0xb0   : > { %2171 = vmatprep.subr.bf16.mxu0 %v7857_v55  ;;  %2244 = vmatprep.subr.bf16.mxu1 %v7860_v56  ;;  %v7936_v55 = vld [vmem:[%s8447_s20 + $0x420] ss:$100 sps:$4 sm:$0xff]  }
  0xb1   : > { %v7941_v56 = vld [vmem:[%s8447_s20 + $0x4e4] ss:$100 sps:$4 sm:$0xff]  }
  0xb2   : > { %4746 = vperm.xlu1 %7602, %v466_v16   ;;  %4741 = vperm.xlu0 %7601, %v465_v17   ;;  %v7966_v16 = vld [vmem:[%s8447_s20 + $0x808] ss:$100 sps:$4 sm:$0xff]  }
  0xb3   : > { %2172 = vmatpush1.bf16.msra.mxu0 %v7855_v57  ;;  %2245 = vmatpush1.bf16.msra.mxu1 %v7858_v58  ;;  %v7944_v57 = vld [vmem:[%s8447_s20 + $0x4ec] ss:$100 sps:$4 sm:$0xff]   ;;  %v8825_v58 = vld [vmem:[%s10005_s3 + $0x34] ss:$8 sps:$4 sm:$0xff]  }
  0xb4   : > { %2173 = vmatprep.subr.bf16.mxu0 %v7863_v60  ;;  %2246 = vmatprep.subr.bf16.mxu1 %v7866_v61  ;;  %v7942_v60 = vld [vmem:[%s8447_s20 + $0x4e8] ss:$100 sps:$4 sm:$0xff]  }
  0xb5   : > { %v7947_v61 = vld [vmem:[%s8447_s20 + $0x5ac] ss:$100 sps:$4 sm:$0xff]  }
  0xb6   : > { %v7971_v17 = vld [vmem:[%s8447_s20 + $0x8cc] ss:$100 sps:$4 sm:$0xff]  }
  0xb7   : > { %2174 = vmatpush1.bf16.msra.mxu0 %v7861_v62  ;;  %2247 = vmatpush1.bf16.msra.mxu1 %v7864_v63  ;;  %v7950_v62 = vld [vmem:[%s8447_s20 + $0x5b4] ss:$100 sps:$4 sm:$0xff]  }
  0xb8   : > { %2175 = vmatprep.subr.bf16.mxu0 %v7869_v1  ;;  %2248 = vmatprep.subr.bf16.mxu1 %v7872_v2  ;;  %v8836_v63 = vld [vmem:[%s10005_s3 + $0x30] ss:$8 sps:$4 sm:$0xff]   ;;  %v7945_v1 = vld [vmem:[%s8447_s20 + $0x5a8] ss:$100 sps:$4 sm:$0xff]  }
  0xb9   : > { %v7948_v2 = vld [vmem:[%s8447_s20 + $0x5b0] ss:$100 sps:$4 sm:$0xff]  }
  0xbb   : > { %2176 = vmatpush1.bf16.msra.mxu0 %v7867_v3  ;;  %2249 = vmatpush1.bf16.msra.mxu1 %v7870_v4  ;;  %v7953_v3 = vld [vmem:[%s8447_s20 + $0x674] ss:$100 sps:$4 sm:$0xff]   ;;  %v7956_v4 = vld [vmem:[%s8447_s20 + $0x67c] ss:$100 sps:$4 sm:$0xff]  }
  0xbc   : > { %2177 = vmatprep.subr.bf16.mxu0 %v7875_v6  ;;  %2250 = vmatprep.subr.bf16.mxu1 %v7878_v7  ;;  %v7951_v6 = vld [vmem:[%s8447_s20 + $0x670] ss:$100 sps:$4 sm:$0xff]   ;;  %v7954_v7 = vld [vmem:[%s8447_s20 + $0x678] ss:$100 sps:$4 sm:$0xff]  }
  0xbf   : > { %2178 = vmatpush1.bf16.msra.mxu0 %v7873_v8  ;;  %2251 = vmatpush1.bf16.msra.mxu1 %v7876_v9  ;;  %v7959_v8 = vld [vmem:[%s8447_s20 + $0x73c] ss:$100 sps:$4 sm:$0xff]   ;;  %v7962_v9 = vld [vmem:[%s8447_s20 + $0x744] ss:$100 sps:$4 sm:$0xff]  }
  0xc0   : > { %2179 = vmatprep.subr.bf16.mxu0 %v7881_v11  ;;  %2252 = vmatprep.subr.bf16.mxu1 %v7884_v12  ;;  %v7957_v11 = vld [vmem:[%s8447_s20 + $0x738] ss:$100 sps:$4 sm:$0xff]   ;;  %v7960_v12 = vld [vmem:[%s8447_s20 + $0x740] ss:$100 sps:$4 sm:$0xff]  }
  0xc3   : > { %2180 = vmatpush1.bf16.msra.mxu0 %v7879_v13  ;;  %2253 = vmatpush1.bf16.msra.mxu1 %v7882_v14  ;;  %v7968_v13 = vld [vmem:[%s8447_s20 + $0x80c] ss:$100 sps:$4 sm:$0xff]   ;;  %v7963_v14 = vld [vmem:[%s8447_s20 + $0x800] ss:$100 sps:$4 sm:$0xff]  }
  0xc4   : > { %2181 = vmatprep.subr.bf16.mxu0 %v7887_v18  ;;  %2254 = vmatprep.subr.bf16.mxu1 %v7890_v19  ;;  %v7974_v18 = vld [vmem:[%s8447_s20 + $0x8d4] ss:$100 sps:$4 sm:$0xff]   ;;  %v7969_v19 = vld [vmem:[%s8447_s20 + $0x8c8] ss:$100 sps:$4 sm:$0xff]  }
  0xc7   : > { %2182 = vmatpush1.bf16.msra.mxu0 %v7885_v21  ;;  %2255 = vmatpush1.bf16.msra.mxu1 %v7888_v22  ;;  %v7972_v21 = vld [vmem:[%s8447_s20 + $0x8d0] ss:$100 sps:$4 sm:$0xff]  }
  0xc8   : > { %2183 = vmatprep.subr.bf16.mxu0 %v7893_v23  ;;  %2256 = vmatprep.subr.bf16.mxu1 %v7896_v24  ;;  %v7977_v22 = vld [vmem:[%s8447_s20 + $0x994] ss:$100 sps:$4 sm:$0xff]   ;;  %v7980_v23 = vld [vmem:[%s8447_s20 + $0x99c] ss:$100 sps:$4 sm:$0xff]  }
  0xc9   : > { %v7975_v24 = vld [vmem:[%s8447_s20 + $0x990] ss:$100 sps:$4 sm:$0xff]  }
  0xcb   : > { %2184 = vmatpush1.bf16.msra.mxu0 %v7891_v26  ;;  %2257 = vmatpush1.bf16.msra.mxu1 %v7894_v27  ;;  %v7978_v26 = vld [vmem:[%s8447_s20 + $0x998] ss:$100 sps:$4 sm:$0xff]  }
  0xcc   : > { %2185 = vmatprep.subr.bf16.mxu0 %v7899_v28  ;;  %2258 = vmatprep.subr.bf16.mxu1 %v7902_v29  ;;  %v7983_v27 = vld [vmem:[%s8447_s20 + $0xa5c] ss:$100 sps:$4 sm:$0xff]   ;;  %v7986_v28 = vld [vmem:[%s8447_s20 + $0xa64] ss:$100 sps:$4 sm:$0xff]  }
  0xcd   : > { %v7981_v29 = vld [vmem:[%s8447_s20 + $0xa58] ss:$100 sps:$4 sm:$0xff]  }
  0xcf   : > { %2186 = vmatpush1.bf16.msra.mxu0 %v7897_v31  ;;  %2259 = vmatpush1.bf16.msra.mxu1 %v7900_v5  ;;  %v7984_v31 = vld [vmem:[%s8447_s20 + $0xa60] ss:$100 sps:$4 sm:$0xff]  }
  0xd0   : > { %2765 = vmatprep.subr.bf16.mxu0 %v7905_v32  ;;  %2838 = vmatprep.subr.bf16.mxu1 %v7908_v33  ;;  %v7989_v5 = vld [vmem:[%s8447_s20 + $0xb24] ss:$100 sps:$4 sm:$0xff]   ;;  %v7992_v32 = vld [vmem:[%s8447_s20 + $0xb2c] ss:$100 sps:$4 sm:$0xff]  }
  0xd1   : > { %v7987_v33 = vld [vmem:[%s8447_s20 + $0xb20] ss:$100 sps:$4 sm:$0xff]  }
  0xd2   : > { %2188 = vmatmul.mubr.bf16.vlgmr.msra.gmra.mrb[32].mxu0 %v8770_v10  ;;  %2261 = vmatmul.mubr.bf16.vlgmr.msra.gmra.mrb[32].mxu1 %v8770_v10 }
  0xd3   : > { %2766 = vmatpush1.bf16.msra.mxu0 %v7903_v34  ;;  %2839 = vmatpush1.bf16.msra.mxu1 %v7906_v36  ;;  %v7990_v34 = vld [vmem:[%s8447_s20 + $0xb28] ss:$100 sps:$4 sm:$0xff]  }
  0xd4   : > { %2767 = vmatprep.subr.bf16.mxu0 %v7911_v37  ;;  %2840 = vmatprep.subr.bf16.mxu1 %v7914_v38  ;;  %v7995_v36 = vld [vmem:[%s8447_s20 + $0xbec] ss:$100 sps:$4 sm:$0xff]   ;;  %v7998_v37 = vld [vmem:[%s8447_s20 + $0xbf4] ss:$100 sps:$4 sm:$0xff]  }
  0xd5   : > { %2197 = vmatprep.mubr.bf16.mxu0 %v8781_v42  ;;  %2270 = vmatprep.mubr.bf16.mxu1 %v8781_v42  ;;  %v7993_v38 = vld [vmem:[%s8447_s20 + $0xbe8] ss:$100 sps:$4 sm:$0xff]  }
  0xd7   : > { %2768 = vmatpush1.bf16.msra.mxu0 %v7909_v39  ;;  %2841 = vmatpush1.bf16.msra.mxu1 %v7912_v40  ;;  %v7996_v39 = vld [vmem:[%s8447_s20 + $0xbf0] ss:$100 sps:$4 sm:$0xff]   ;;  %v8001_v40 = vld [vmem:[%s8447_s20 + $0x44] ss:$100 sps:$4 sm:$0xff]  }
  0xd8   : > { %2769 = vmatprep.subr.bf16.mxu0 %v7917_v15  ;;  %2842 = vmatprep.subr.bf16.mxu1 %v7920_v41  ;;  %v8004_v15 = vld [vmem:[%s8447_s20 + $0x4c] ss:$100 sps:$4 sm:$0xff]   ;;  %v7999_v41 = vld [vmem:[%s8447_s20 + $0x40] ss:$100 sps:$4 sm:$0xff]  }
  0xda   : > { %2198 = vmatmul.mubr.bf16.gmra.mrb[36].mxu0 %v8792_v20  ;;  %2271 = vmatmul.mubr.bf16.gmra.mrb[36].mxu1 %v8792_v20 }
  0xdb   : > { %2770 = vmatpush1.bf16.msra.mxu0 %v7915_v43  ;;  %2843 = vmatpush1.bf16.msra.mxu1 %v7918_v44  ;;  %v8002_v43 = vld [vmem:[%s8447_s20 + $0x48] ss:$100 sps:$4 sm:$0xff]  }
  0xdc   : > { %2771 = vmatprep.subr.bf16.mxu0 %v7923_v45  ;;  %2844 = vmatprep.subr.bf16.mxu1 %v7926_v46  ;;  %v8007_v44 = vld [vmem:[%s8447_s20 + $0x10c] ss:$100 sps:$4 sm:$0xff]   ;;  %v8010_v45 = vld [vmem:[%s8447_s20 + $0x114] ss:$100 sps:$4 sm:$0xff]  }
  0xdd   : > { %2207 = vmatprep.mubr.bf16.mxu0 %v8803_v0  ;;  %2280 = vmatprep.mubr.bf16.mxu1 %v8803_v0  ;;  %v8005_v46 = vld [vmem:[%s8447_s20 + $0x108] ss:$100 sps:$4 sm:$0xff]  }
  0xdf   : > { %2772 = vmatpush1.bf16.msra.mxu0 %v7921_v47  ;;  %2845 = vmatpush1.bf16.msra.mxu1 %v7924_v48  ;;  %v8008_v47 = vld [vmem:[%s8447_s20 + $0x110] ss:$100 sps:$4 sm:$0xff]   ;;  %v8887_v48 = vpop.permute.xlu1 %4711 }
  0xe0   : > { %2773 = vmatprep.subr.bf16.mxu0 %v7929_v25  ;;  %2846 = vmatprep.subr.bf16.mxu1 %v7932_v49  ;;  %v8013_v25 = vld [vmem:[%s8447_s20 + $0x1d4] ss:$100 sps:$4 sm:$0xff]   ;;  %v8016_v49 = vld [vmem:[%s8447_s20 + $0x1dc] ss:$100 sps:$4 sm:$0xff]  }
  0xe2   : > { %2208 = vmatmul.mubr.bf16.gmra.mrb[40].mxu0 %v8814_v30  ;;  %2281 = vmatmul.mubr.bf16.gmra.mrb[40].mxu1 %v8814_v30 }
  0xe3   : > { %2774 = vmatpush1.bf16.msra.mxu0 %v7927_v50  ;;  %2847 = vmatpush1.bf16.msra.mxu1 %v7930_v51  ;;  %v8891_v50 = vpop.permute.xlu0 %537  ;;  %v8014_v51 = vld [vmem:[%s8447_s20 + $0x1d8] ss:$100 sps:$4 sm:$0xff]  }
  0xe4   : > { %2775 = vmatprep.subr.bf16.mxu0 %v7935_v52  ;;  %2848 = vmatprep.subr.bf16.mxu1 %v7938_v53  ;;  %v8019_v52 = vld [vmem:[%s8447_s20 + $0x29c] ss:$100 sps:$4 sm:$0xff]   ;;  %v8022_v53 = vld [vmem:[%s8447_s20 + $0x2a4] ss:$100 sps:$4 sm:$0xff]  }
  0xe5   : > { %2217 = vmatprep.mubr.bf16.mxu0 %v8825_v58  ;;  %2290 = vmatprep.mubr.bf16.mxu1 %v8825_v58 }
  0xe7   : > { %2776 = vmatpush1.bf16.msra.mxu0 %v7933_v54  ;;  %2849 = vmatpush1.bf16.msra.mxu1 %v7936_v55  ;;  %v8904_v54 = vpop.permute.xlu1 %4716  ;;  %v8017_v55 = vld [vmem:[%s8447_s20 + $0x298] ss:$100 sps:$4 sm:$0xff]  }
  0xe8   : > { %2777 = vmatprep.subr.bf16.mxu0 %v7941_v56  ;;  %2850 = vmatprep.subr.bf16.mxu1 %v7944_v57  ;;  %v8020_v56 = vld [vmem:[%s8447_s20 + $0x2a0] ss:$100 sps:$4 sm:$0xff]  }
  0xe9   : > { %v8025_v57 = vld [vmem:[%s8447_s20 + $0x364] ss:$100 sps:$4 sm:$0xff]  }
  0xea   : > { %2218 = vmatmul.mubr.bf16.gmra.mrb[44].mxu0 %v8836_v63  ;;  %2291 = vmatmul.mubr.bf16.gmra.mrb[44].mxu1 %v8836_v63 }
  0xeb   : > { %2778 = vmatpush1.bf16.msra.mxu0 %v7939_v59  ;;  %2851 = vmatpush1.bf16.msra.mxu1 %v7942_v60  ;;  %v8028_v59 = vld [vmem:[%s8447_s20 + $0x36c] ss:$100 sps:$4 sm:$0xff]   ;;  %v8023_v60 = vld [vmem:[%s8447_s20 + $0x360] ss:$100 sps:$4 sm:$0xff]  }
  0xec   : > { %2779 = vmatprep.subr.bf16.mxu0 %v7947_v61  ;;  %2852 = vmatprep.subr.bf16.mxu1 %v7950_v62  ;;  %v8918_v61 = vpop.permute.xlu1 %552 }
  0xed   : > { %2797 = vmatprep.mubr.bf16.mxu0 %v8718_v35  ;;  %2870 = vmatprep.mubr.bf16.mxu1 %v8718_v35  ;;  %v7965_v35 = vld [vmem:[%s8447_s20 + $0x804] ss:$100 sps:$4 sm:$0xff]  }
  0xef   : > { %2780 = vmatpush1.bf16.msra.mxu0 %v7945_v1  ;;  %2853 = vmatpush1.bf16.msra.mxu1 %v7948_v2  ;;  %v8031_v1 = vld [vmem:[%s8447_s20 + $0x42c] ss:$100 sps:$4 sm:$0xff]   ;;  %v8034_v2 = vld [vmem:[%s8447_s20 + $0x434] ss:$100 sps:$4 sm:$0xff]  }
  0xf0   : > { %2781 = vmatprep.subr.bf16.mxu0 %v7953_v3  ;;  %2854 = vmatprep.subr.bf16.mxu1 %v7956_v4  ;;  %v8029_v3 = vld [vmem:[%s8447_s20 + $0x428] ss:$100 sps:$4 sm:$0xff]   ;;  %v8037_v4 = vld [vmem:[%s8447_s20 + $0x4f4] ss:$100 sps:$4 sm:$0xff]  }
  0xf3   : > { %2782 = vmatpush1.bf16.msra.mxu0 %v7951_v6  ;;  %2855 = vmatpush1.bf16.msra.mxu1 %v7954_v7  ;;  %v8040_v6 = vld [vmem:[%s8447_s20 + $0x4fc] ss:$100 sps:$4 sm:$0xff]   ;;  %v8930_v7 = vpop.permute.xlu1 %4726 }
  0xf4   : > { %2783 = vmatprep.subr.bf16.mxu0 %v7959_v8  ;;  %2856 = vmatprep.subr.bf16.mxu1 %v7962_v9 }
  0xf7   : > { %2784 = vmatpush1.bf16.msra.mxu0 %v7957_v11  ;;  %2857 = vmatpush1.bf16.msra.mxu1 %v7960_v12  ;;  %v8035_v12 = vld [vmem:[%s8447_s20 + $0x4f0] ss:$100 sps:$4 sm:$0xff]  }
  0xf8   : > { %2785 = vmatprep.subr.bf16.mxu0 %v7965_v35  ;;  %2858 = vmatprep.subr.bf16.mxu1 %v7968_v13  ;;  %v8038_v35 = vld [vmem:[%s8447_s20 + $0x4f8] ss:$100 sps:$4 sm:$0xff]  }
  0xfb   : > { %2786 = vmatpush1.bf16.msra.mxu0 %v7963_v14  ;;  %2859 = vmatpush1.bf16.msra.mxu1 %v7966_v16 }
  0xfc   : > { %2787 = vmatprep.subr.bf16.mxu0 %v7971_v17  ;;  %2860 = vmatprep.subr.bf16.mxu1 %v7974_v18  ;;  %v8043_v17 = vld [vmem:[%s8447_s20 + $0x5bc] ss:$100 sps:$4 sm:$0xff]  }
  0xff   : > { %2788 = vmatpush1.bf16.msra.mxu0 %v7969_v19  ;;  %2861 = vmatpush1.bf16.msra.mxu1 %v7972_v21 }
 0x100   : > { %2789 = vmatprep.subr.bf16.mxu0 %v7977_v22  ;;  %2862 = vmatprep.subr.bf16.mxu1 %v7980_v23 }
 0x103   : > { %2790 = vmatpush1.bf16.msra.mxu0 %v7975_v24  ;;  %2863 = vmatpush1.bf16.msra.mxu1 %v7978_v26 }
 0x104   : > { %2791 = vmatprep.subr.bf16.mxu0 %v7983_v27  ;;  %2864 = vmatprep.subr.bf16.mxu1 %v7986_v28  ;;  %v8046_v28 = vld [vmem:[%s8447_s20 + $0x5c4] ss:$100 sps:$4 sm:$0xff]  }
 0x107   : > { %2792 = vmatpush1.bf16.msra.mxu0 %v7981_v29  ;;  %2865 = vmatpush1.bf16.msra.mxu1 %v7984_v31 }
 0x108   : > { %2793 = vmatprep.subr.bf16.mxu0 %v7989_v5  ;;  %2866 = vmatprep.subr.bf16.mxu1 %v7992_v32 }
 0x10b   : > { %2794 = vmatpush1.bf16.msra.mxu0 %v7987_v33  ;;  %2867 = vmatpush1.bf16.msra.mxu1 %v7990_v34  ;;  %v8041_v33 = vld [vmem:[%s8447_s20 + $0x5b8] ss:$100 sps:$4 sm:$0xff]   ;;  %v8044_v34 = vld [vmem:[%s8447_s20 + $0x5c0] ss:$100 sps:$4 sm:$0xff]  }
 0x10c   : > { %2795 = vmatprep.subr.bf16.mxu0 %v7995_v36  ;;  %2868 = vmatprep.subr.bf16.mxu1 %v7998_v37  ;;  %v8049_v37 = vld [vmem:[%s8447_s20 + $0x684] ss:$100 sps:$4 sm:$0xff]  }
 0x10f   : > { %2796 = vmatpush1.bf16.msra.mxu0 %v7993_v38  ;;  %2869 = vmatpush1.bf16.msra.mxu1 %v7996_v39 }
 0x110   : > { %3375 = vmatprep.subr.bf16.mxu0 %v8001_v40  ;;  %3448 = vmatprep.subr.bf16.mxu1 %v8004_v15 }
 0x112   : > { %2798 = vmatmul.mubr.bf16.vlgmr.msra.gmra.mrb[48].mxu0 %v8770_v10  ;;  %2871 = vmatmul.mubr.bf16.vlgmr.msra.gmra.mrb[48].mxu1 %v8770_v10  ;;  %v8011_v10 = vld [vmem:[%s8447_s20 + $0x1d0] ss:$100 sps:$4 sm:$0xff]  }
 0x113   : > { %3376 = vmatpush1.bf16.msra.mxu0 %v7999_v41  ;;  %3449 = vmatpush1.bf16.msra.mxu1 %v8002_v43  ;;  %v8052_v41 = vld [vmem:[%s8447_s20 + $0x68c] ss:$100 sps:$4 sm:$0xff]  }
 0x114   : > { %3377 = vmatprep.subr.bf16.mxu0 %v8007_v44  ;;  %3450 = vmatprep.subr.bf16.mxu1 %v8010_v45 }
 0x115   : > { %2807 = vmatprep.mubr.bf16.mxu0 %v8781_v42  ;;  %2880 = vmatprep.mubr.bf16.mxu1 %v8781_v42  ;;  %v8910_v42 = vpop.permute.xlu0 %542 }
 0x117   : > { %3378 = vmatpush1.bf16.msra.mxu0 %v8005_v46  ;;  %3451 = vmatpush1.bf16.msra.mxu1 %v8008_v47 }
 0x118   : > { %3379 = vmatprep.subr.bf16.mxu0 %v8013_v25  ;;  %3452 = vmatprep.subr.bf16.mxu1 %v8016_v49  ;;  %v8050_v25 = vld [vmem:[%s8447_s20 + $0x688] ss:$100 sps:$4 sm:$0xff]  }
 0x119   : > { %v8920_v62 = vpop.permute.xlu0 %547 }
 0x11a   : > { %2808 = vmatmul.mubr.bf16.gmra.mrb[52].mxu0 %v8792_v20  ;;  %2881 = vmatmul.mubr.bf16.gmra.mrb[52].mxu1 %v8792_v20  ;;  %v8026_v20 = vld [vmem:[%s8447_s20 + $0x368] ss:$100 sps:$4 sm:$0xff]  }
 0x11b   : > { %3380 = vmatpush1.bf16.msra.mxu0 %v8011_v10  ;;  %3453 = vmatpush1.bf16.msra.mxu1 %v8014_v51  ;;  %v8963_v51 = vld [vmem:[%s10005_s3 + $0x4] ss:$8 sps:$4 sm:$0xff]  }
 0x11c   : > { %3381 = vmatprep.subr.bf16.mxu0 %v8019_v52  ;;  %3454 = vmatprep.subr.bf16.mxu1 %v8022_v53 }
 0x11d   : > { %2817 = vmatprep.mubr.bf16.mxu0 %v8803_v0  ;;  %2890 = vmatprep.mubr.bf16.mxu1 %v8803_v0  ;;  %v8032_v0 = vld [vmem:[%s8447_s20 + $0x430] ss:$100 sps:$4 sm:$0xff]   ;;  %v8932_v8 = vpop.permute.xlu0 %4721  ;;  %v8954_v43 = vpop.permute.xlu1 %562 }
 0x11f   : > { %3382 = vmatpush1.bf16.msra.mxu0 %v8017_v55  ;;  %3455 = vmatpush1.bf16.msra.mxu1 %v8020_v56 }
 0x120   : > { %3383 = vmatprep.subr.bf16.mxu0 %v8025_v57  ;;  %3456 = vmatprep.subr.bf16.mxu1 %v8028_v59 }
 0x121   : > { %v8956_v44 = vpop.permute.xlu0 %557 }
 0x122   : > { %2818 = vmatmul.mubr.bf16.gmra.mrb[56].mxu0 %v8814_v30  ;;  %2891 = vmatmul.mubr.bf16.gmra.mrb[56].mxu1 %v8814_v30 }
 0x123   : > { %3384 = vmatpush1.bf16.msra.mxu0 %v8023_v60  ;;  %3457 = vmatpush1.bf16.msra.mxu1 %v8026_v20  ;;  %v8055_v60 = vld [vmem:[%s8447_s20 + $0x74c] ss:$100 sps:$4 sm:$0xff]  }
 0x124   : > { %3385 = vmatprep.subr.bf16.mxu0 %v8031_v1  ;;  %3458 = vmatprep.subr.bf16.mxu1 %v8034_v2 }
 0x125   : > { %v969_v9 = vpop.f32.mrb[0].mxu0  ;;  %v1042_v11 = vpop.f32.mrb[0].mxu1  ;;  %2827 = vmatprep.mubr.bf16.mxu0 %v8825_v58  ;;  %2900 = vmatprep.mubr.bf16.mxu1 %v8825_v58 }
 0x126   : > { %v970_v30 = vadd.f32 %v969_v9, %v8891_v50  ;;  %v971_v13 = vpop.f32.mrb[1].mxu0  ;;  %v1043_v14 = vadd.f32 %v1042_v11, %v8891_v50  ;;  %v1044_v16 = vpop.f32.mrb[1].mxu1 }
 0x127   : > { %v972_v18 = vadd.f32 %v971_v13, %v8891_v50  ;;  %v973_v19 = vpop.f32.mrb[2].mxu0  ;;  %3386 = vmatpush1.bf16.msra.mxu0 %v8029_v3  ;;  %3459 = vmatpush1.bf16.msra.mxu1 %v8032_v0  ;;  %v1045_v21 = vadd.f32 %v1044_v16, %v8891_v50  ;;  %v1046_v22 = vpop.f32.mrb[2].mxu1  ;;  %v8058_v13 = vld [vmem:[%s8447_s20 + $0x754] ss:$100 sps:$4 sm:$0xff]  }
 0x128   : > { %v1081_v23 = vmax.f32 %v970_v30, 0.0  ;;  %v974_v58 = vadd.f32 %v973_v19, %v8910_v42  ;;  %v975_v24 = vpop.f32.mrb[3].mxu0  ;;  %v1047_v26 = vadd.f32 %v1046_v22, %v8910_v42  ;;  %3387 = vmatprep.subr.bf16.mxu0 %v8037_v4  ;;  %3460 = vmatprep.subr.bf16.mxu1 %v8040_v6  ;;  %v1048_v27 = vpop.f32.mrb[3].mxu1  ;;  %v1083_v5 = vmax.f32 %v1043_v14, 0.0  ;;  %v8056_v30 = vld [vmem:[%s8447_s20 + $0x750] ss:$100 sps:$4 sm:$0xff]  }
 0x129   : > { %v1082_v29 = vmax.f32 %v972_v18, 0.0  ;;  %v976_v31 = vadd.f32 %v975_v24, %v8910_v42  ;;  %v1049_v32 = vadd.f32 %v1048_v27, %v8910_v42  ;;  %v1084_v40 = vmax.f32 %v1045_v21, 0.0  ;;  %v8061_v18 = vld [vmem:[%s8447_s20 + $0x814] ss:$100 sps:$4 sm:$0xff]   ;;  %v8064_v22 = vld [vmem:[%s8447_s20 + $0x81c] ss:$100 sps:$4 sm:$0xff]   ;;  %v8981_v27 = vpop.permute.xlu1 %4736 }
 0x12a   : > { %v1085_v36 = vmax.f32 %v974_v58, 0.0  ;;  %2828 = vmatmul.mubr.bf16.gmra.mrb[60].mxu0 %v8836_v63  ;;  %2901 = vmatmul.mubr.bf16.gmra.mrb[60].mxu1 %v8836_v63  ;;  %v1087_v15 = vmax.f32 %v1047_v26, 0.0  ;;  %v8047_v63 = vld [vmem:[%s8447_s20 + $0x680] ss:$100 sps:$4 sm:$0xff]  }
 0x12b   : > { %v1113_v38 = vadd.f32 %v1082_v29, %v1081_v23  ;;  %v1086_v39 = vmax.f32 %v976_v31, 0.0  ;;  %3388 = vmatpush1.bf16.msra.mxu0 %v8035_v12  ;;  %3461 = vmatpush1.bf16.msra.mxu1 %v8038_v35  ;;  %v1088_v47 = vmax.f32 %v1049_v32, 0.0  ;;  %v8053_v35 = vld [vmem:[%s8447_s20 + $0x748] ss:$100 sps:$4 sm:$0xff]   ;;  %v8059_v29 = vld [vmem:[%s8447_s20 + $0x810] ss:$100 sps:$4 sm:$0xff]  }
 0x12c   : > { %3389 = vmatprep.subr.bf16.mxu0 %v8043_v17  ;;  %3462 = vmatprep.subr.bf16.mxu1 %v8046_v28  ;;  %v8983_v28 = vpop.permute.xlu0 %4731  ;;  %v8062_v31 = vld [vmem:[%s8447_s20 + $0x818] ss:$100 sps:$4 sm:$0xff]  }
 0x12d   : > { %v1118_v45 = vadd.f32 %v1086_v39, %v1085_v36  ;;  %v1114_v46 = vadd.f32 %v1113_v38, %v1083_v5  ;;  %v979_v49 = vpop.f32.mrb[4].mxu0  ;;  %v1052_v10 = vpop.f32.mrb[4].mxu1  ;;  %3407 = vmatprep.mubr.bf16.mxu0 %v8963_v51  ;;  %3480 = vmatprep.mubr.bf16.mxu1 %v8963_v51  ;;  %v8067_v36 = vld [vmem:[%s8447_s20 + $0x8dc] ss:$100 sps:$4 sm:$0xff]  }
 0x12e   : > { %v981_v52 = vpop.f32.mrb[5].mxu0  ;;  %v980_v53 = vadd.f32 %v979_v49, %v8920_v62  ;;  %v1053_v55 = vadd.f32 %v1052_v10, %v8920_v62  ;;  %v1054_v56 = vpop.f32.mrb[5].mxu1 }
 0x12f   : > { %v1119_v57 = vadd.f32 %v1118_v45, %v1087_v15  ;;  %3390 = vmatpush1.bf16.msra.mxu0 %v8041_v33  ;;  %3463 = vmatpush1.bf16.msra.mxu1 %v8044_v34  ;;  %v1115_v59 = vadd.f32 %v1114_v46, %v1084_v40  ;;  %v983_v20 = vpop.f32.mrb[6].mxu0  ;;  %v982_v1 = vadd.f32 %v981_v52, %v8920_v62  ;;  %v1056_v2 = vpop.f32.mrb[6].mxu1 }
 0x130   : > { %3391 = vmatprep.subr.bf16.mxu0 %v8049_v37  ;;  %3464 = vmatprep.subr.bf16.mxu1 %v8052_v41  ;;  %v984_v3 = vadd.f32 %v983_v20, %v8918_v61  ;;  %v985_v0 = vpop.f32.mrb[7].mxu0  ;;  %v1089_v4 = vmax.f32 %v980_v53, 0.0  ;;  %v1091_v6 = vmax.f32 %v1053_v55, 0.0  ;;  %v1055_v9 = vadd.f32 %v1054_v56, %v8920_v62  ;;  %v1058_v11 = vpop.f32.mrb[7].mxu1  ;;  %v8070_v37 = vld [vmem:[%s8447_s20 + $0x8e4] ss:$100 sps:$4 sm:$0xff]  }
 0x131   : > { %1116 = vadd.xlane.f32.xlu0 %v1115_v59  ;;  %v1120_v12 = vadd.f32 %v1119_v57, %v1088_v47  ;;  %v986_v14 = vadd.f32 %v985_v0, %v8918_v61  ;;  %v1090_v16 = vmax.f32 %v982_v1, 0.0  ;;  %v1057_v17 = vadd.f32 %v1056_v2, %v8918_v61  ;;  %v8065_v56 = vld [vmem:[%s8447_s20 + $0x8d8] ss:$100 sps:$4 sm:$0xff]   ;;  %v8068_v57 = vld [vmem:[%s8447_s20 + $0x8e0] ss:$100 sps:$4 sm:$0xff]  }
 0x132   : > { %v1093_v19 = vmax.f32 %v984_v3, 0.0  ;;  %v1059_v21 = vadd.f32 %v1058_v11, %v8918_v61  ;;  %v1092_v26 = vmax.f32 %v1055_v9, 0.0  ;;  %v8073_v2 = vld [vmem:[%s8447_s20 + $0x9a4] ss:$100 sps:$4 sm:$0xff]  }
 0x133   : > { %3392 = vmatpush1.bf16.msra.mxu0 %v8047_v63  ;;  %3465 = vmatpush1.bf16.msra.mxu1 %v8050_v25  ;;  %v1094_v23 = vmax.f32 %v986_v14, 0.0  ;;  %v1123_v58 = vadd.f32 %v1090_v16, %v1089_v4  ;;  %v1095_v24 = vmax.f32 %v1057_v17, 0.0  ;;  %v8074_v14 = vld [vmem:[%s8447_s20 + $0x9a8] ss:$100 sps:$4 sm:$0xff]  }
 0x134   : > { %1121 = vadd.xlane.f32.xlu1 %v1120_v12  ;;  %3393 = vmatprep.subr.bf16.mxu0 %v8055_v60  ;;  %v1096_v38 = vmax.f32 %v1059_v21, 0.0  ;;  %v9000_v12 = vpop.permute.xlu0 %567 }
 0x135   : > { %3466 = vmatprep.subr.bf16.mxu1 %v8058_v13  ;;  %v1128_v5 = vadd.f32 %v1094_v23, %v1093_v19  ;;  %v1124_v32 = vadd.f32 %v1123_v58, %v1091_v6  ;;  %v989_v33 = vpop.f32.mrb[8].mxu0  ;;  %v1062_v34 = vpop.f32.mrb[8].mxu1  ;;  %v8071_v13 = vld [vmem:[%s8447_s20 + $0x9a0] ss:$100 sps:$4 sm:$0xff]   ;;  %v8079_v23 = vld [vmem:[%s8447_s20 + $0xa6c] ss:$100 sps:$4 sm:$0xff]  }
 0x136   : > { %v991_v39 = vpop.f32.mrb[9].mxu0  ;;  %v990_v40 = vadd.f32 %v989_v33, %v8956_v44  ;;  %v1063_v15 = vadd.f32 %v1062_v34, %v8956_v44  ;;  %v1064_v41 = vpop.f32.mrb[9].mxu1 }
 0x137   : > { %3394 = vmatpush1.bf16.msra.mxu0 %v8053_v35  ;;  %3467 = vmatpush1.bf16.msra.mxu1 %v8056_v30  ;;  %v1129_v45 = vadd.f32 %v1128_v5, %v1095_v24  ;;  %v993_v46 = vpop.f32.mrb[10].mxu0  ;;  %v992_v47 = vadd.f32 %v991_v39, %v8956_v44  ;;  %v1066_v63 = vpop.f32.mrb[10].mxu1  ;;  %v1065_v52 = vadd.f32 %v1064_v41, %v8956_v44  ;;  %v8076_v35 = vld [vmem:[%s8447_s20 + $0x9ac] ss:$100 sps:$4 sm:$0xff]  }
 0x138   : > { %3395 = vmatprep.subr.bf16.mxu0 %v8061_v18  ;;  %3468 = vmatprep.subr.bf16.mxu1 %v8064_v22  ;;  %v994_v25 = vadd.f32 %v993_v46, %v8954_v43  ;;  %v995_v49 = vpop.f32.mrb[11].mxu0  ;;  %v1097_v10 = vmax.f32 %v990_v40, 0.0  ;;  %v1067_v53 = vadd.f32 %v1066_v63, %v8954_v43  ;;  %v1068_v55 = vpop.f32.mrb[11].mxu1  ;;  %v1099_v20 = vmax.f32 %v1063_v15, 0.0  ;;  %v8077_v41 = vld [vmem:[%s8447_s20 + $0xa68] ss:$100 sps:$4 sm:$0xff]  }
 0x139   : > { %v996_v59 = vadd.f32 %v995_v49, %v8954_v43  ;;  %v1098_v60 = vmax.f32 %v992_v47, 0.0  ;;  %v1125_v1 = vadd.f32 %v1124_v32, %v1092_v26  ;;  %v1130_v0 = vadd.f32 %v1129_v45, %v1096_v38  ;;  %v9003_v30 = vpop.permute.xlu1 %572  ;;  %v8080_v45 = vld [vmem:[%s8447_s20 + $0xa70] ss:$100 sps:$4 sm:$0xff]  }
 0x13a   : > { %v1101_v3 = vmax.f32 %v994_v25, 0.0  ;;  %v1069_v4 = vadd.f32 %v1068_v55, %v8954_v43  ;;  %v1103_v11 = vmax.f32 %v1067_v53, 0.0  ;;  %v1100_v18 = vmax.f32 %v1065_v52, 0.0  ;;  %v8085_v49 = vld [vmem:[%s8447_s20 + $0xb34] ss:$100 sps:$4 sm:$0xff]  }
 0x13b   : > { %3396 = vmatpush1.bf16.msra.mxu0 %v8059_v29  ;;  %3469 = vmatpush1.bf16.msra.mxu1 %v8062_v31  ;;  %v1102_v6 = vmax.f32 %v996_v59, 0.0  ;;  %v1133_v9 = vadd.f32 %v1098_v60, %v1097_v10  ;;  %v8082_v31 = vld [vmem:[%s8447_s20 + $0xa74] ss:$100 sps:$4 sm:$0xff]   ;;  %v8088_v60 = vld [vmem:[%s8447_s20 + $0xb3c] ss:$100 sps:$4 sm:$0xff]  }
 0x13c   : > { %3397 = vmatprep.subr.bf16.mxu0 %v8067_v36  ;;  %3470 = vmatprep.subr.bf16.mxu1 %v8070_v37  ;;  %v1104_v19 = vmax.f32 %v1069_v4, 0.0  ;;  %v8091_v4 = vld [vmem:[%s8447_s20 + $0xbfc] ss:$100 sps:$4 sm:$0xff]  }
 0x13d   : > { %v1138_v16 = vadd.f32 %v1102_v6, %v1101_v3  ;;  %v1134_v17 = vadd.f32 %v1133_v9, %v1099_v20  ;;  %1126 = vadd.xlane.f32.xlu1 %v1125_v1  ;;  %1131 = vadd.xlane.f32.xlu0 %v1130_v0  ;;  %v999_v21 = vpop.f32.mrb[12].mxu0  ;;  %v1072_v22 = vpop.f32.mrb[12].mxu1  ;;  %v8083_v20 = vld [vmem:[%s8447_s20 + $0xb30] ss:$100 sps:$4 sm:$0xff]   ;;  %v8086_v0 = vld [vmem:[%s8447_s20 + $0xb38] ss:$100 sps:$4 sm:$0xff]  }
 0x13e   : > { %v1001_v58 = vpop.f32.mrb[13].mxu0  ;;  %v1000_v24 = vadd.f32 %v999_v21, %v9000_v12  ;;  %v1073_v26 = vadd.f32 %v1072_v22, %v9000_v12  ;;  %v1074_v29 = vpop.f32.mrb[13].mxu1  ;;  %v8103_v21 = vld [vmem:[%s8447_s20 + $0x11c] ss:$100 sps:$4 sm:$0xff]   ;;  %v8106_v22 = vld [vmem:[%s8447_s20 + $0x124] ss:$100 sps:$4 sm:$0xff]  }
 0x13f   : > { %3398 = vmatpush1.bf16.msra.mxu0 %v8065_v56  ;;  %3471 = vmatpush1.bf16.msra.mxu1 %v8068_v57  ;;  %v1139_v5 = vadd.f32 %v1138_v16, %v1103_v11  ;;  %v1003_v32 = vpop.f32.mrb[14].mxu0  ;;  %v1002_v33 = vadd.f32 %v1001_v58, %v9000_v12  ;;  %v1075_v34 = vadd.f32 %v1074_v29, %v9000_v12  ;;  %v1076_v36 = vpop.f32.mrb[14].mxu1  ;;  %v8094_v11 = vld [vmem:[%s8447_s20 + $0xc04] ss:$100 sps:$4 sm:$0xff]   ;;  %v8097_v16 = vld [vmem:[%s8447_s20 + $0x54] ss:$100 sps:$4 sm:$0xff]  }
 0x140   : > { %3399 = vmatprep.subr.bf16.mxu0 %v8073_v2  ;;  %3472 = vmatprep.subr.bf16.mxu1 %v8076_v35  ;;  %v1004_v37 = vadd.f32 %v1003_v32, %v9003_v30  ;;  %v1005_v38 = vpop.f32.mrb[15].mxu0  ;;  %v1105_v39 = vmax.f32 %v1000_v24, 0.0  ;;  %v1077_v40 = vadd.f32 %v1076_v36, %v9003_v30  ;;  %v1078_v15 = vpop.f32.mrb[15].mxu1  ;;  %v1107_v63 = vmax.f32 %v1073_v26, 0.0  ;;  %v8089_v35 = vld [vmem:[%s8447_s20 + $0xbf8] ss:$100 sps:$4 sm:$0xff]  }
 0x141   : > { %v1006_v46 = vadd.f32 %v1005_v38, %v9003_v30  ;;  %v1106_v47 = vmax.f32 %v1002_v33, 0.0  ;;  %v1135_v25 = vadd.f32 %v1134_v17, %v1100_v18  ;;  %v1108_v52 = vmax.f32 %v1075_v34, 0.0  ;;  %v8100_v17 = vld [vmem:[%s8447_s20 + $0x5c] ss:$100 sps:$4 sm:$0xff]   ;;  %v8095_v18 = vld [vmem:[%s8447_s20 + $0x50] ss:$100 sps:$4 sm:$0xff]  }
 0x142   : > { %v1109_v10 = vmax.f32 %v1004_v37, 0.0  ;;  %v1140_v53 = vadd.f32 %v1139_v5, %v1104_v19  ;;  %v1079_v55 = vadd.f32 %v1078_v15, %v9003_v30  ;;  %v1111_v59 = vmax.f32 %v1077_v40, 0.0  ;;  %v8098_v19 = vld [vmem:[%s8447_s20 + $0x58] ss:$100 sps:$4 sm:$0xff]   ;;  %v9037_v58 = vld [vmem:[%s10005_s3] ss:$8 sps:$4 sm:$0xff]  }
 0x143   : > { %3400 = vmatpush1.bf16.msra.mxu0 %v8071_v13  ;;  %3473 = vmatpush1.bf16.msra.mxu1 %v8074_v14  ;;  %v1110_v56 = vmax.f32 %v1006_v46, 0.0  ;;  %v1143_v57 = vadd.f32 %v1106_v47, %v1105_v39  ;;  %v8092_v14 = vld [vmem:[%s8447_s20 + $0xc00] ss:$100 sps:$4 sm:$0xff]   ;;  %v8112_v29 = vld [vmem:[%s8447_s20 + $0x1ec] ss:$100 sps:$4 sm:$0xff]  }
 0x144   : > { %3401 = vmatprep.subr.bf16.mxu0 %v8079_v23  ;;  %3474 = vmatprep.subr.bf16.mxu1 %v8082_v31  ;;  %v1112_v3 = vmax.f32 %v1079_v55, 0.0  ;;  %v8101_v23 = vld [vmem:[%s8447_s20 + $0x118] ss:$100 sps:$4 sm:$0xff]   ;;  %v8104_v24 = vld [vmem:[%s8447_s20 + $0x120] ss:$100 sps:$4 sm:$0xff]  }
 0x145   : > { %v1148_v1 = vadd.f32 %v1110_v56, %v1109_v10  ;;  %v1144_v2 = vadd.f32 %v1143_v57, %v1107_v63  ;;  %1136 = vadd.xlane.f32.xlu1 %v1135_v25  ;;  %1141 = vadd.xlane.f32.xlu0 %v1140_v53  ;;  %v8109_v26 = vld [vmem:[%s8447_s20 + $0x1e4] ss:$100 sps:$4 sm:$0xff]   ;;  %v9047_v31 = vld [vmem:[%s10005_s3 + $0x14] ss:$8 sps:$4 sm:$0xff]   ;;  %v8115_v33 = vld [vmem:[%s8447_s20 + $0x2ac] ss:$100 sps:$4 sm:$0xff]  }
 0x146   : > { %v8107_v5 = vld [vmem:[%s8447_s20 + $0x1e0] ss:$100 sps:$4 sm:$0xff]   ;;  %v8110_v32 = vld [vmem:[%s8447_s20 + $0x1e8] ss:$100 sps:$4 sm:$0xff]   ;;  %v8118_v34 = vld [vmem:[%s8447_s20 + $0x2b4] ss:$100 sps:$4 sm:$0xff]  }
 0x147   : > { %3402 = vmatpush1.bf16.msra.mxu0 %v8077_v41  ;;  %3475 = vmatpush1.bf16.msra.mxu1 %v8080_v45  ;;  %v1149_v6 = vadd.f32 %v1148_v1, %v1111_v59  ;;  %v1145_v9 = vadd.f32 %v1144_v2, %v1108_v52  ;;  %v8113_v36 = vld [vmem:[%s8447_s20 + $0x2a8] ss:$100 sps:$4 sm:$0xff]   ;;  %v9059_v37 = vld [vmem:[%s10005_s3 + $0x10] ss:$8 sps:$4 sm:$0xff]   ;;  %v8124_v40 = vld [vmem:[%s8447_s20 + $0x37c] ss:$100 sps:$4 sm:$0xff]  }
 0x148   : > { %3403 = vmatprep.subr.bf16.mxu0 %v8085_v49  ;;  %3476 = vmatprep.subr.bf16.mxu1 %v8088_v60  ;;  %v8116_v38 = vld [vmem:[%s8447_s20 + $0x2b0] ss:$100 sps:$4 sm:$0xff]   ;;  %v9069_v15 = vld [vmem:[%s10005_s3 + $0x24] ss:$8 sps:$4 sm:$0xff]   ;;  %v8122_v45 = vld [vmem:[%s8447_s20 + $0x378] ss:$100 sps:$4 sm:$0xff]  }
 0x149   : > { %1146 = vadd.xlane.f32.xlu1 %v1145_v9  ;;  %v1150_v13 = vadd.f32 %v1149_v6, %v1112_v3  ;;  %v8121_v39 = vld [vmem:[%s8447_s20 + $0x374] ss:$100 sps:$4 sm:$0xff]   ;;  %v8127_v46 = vld [vmem:[%s8447_s20 + $0x43c] ss:$100 sps:$4 sm:$0xff]   ;;  %v8130_v47 = vld [vmem:[%s8447_s20 + $0x444] ss:$100 sps:$4 sm:$0xff]  }
 0x14a   : > { %v8119_v41 = vld [vmem:[%s8447_s20 + $0x370] ss:$100 sps:$4 sm:$0xff]   ;;  %v8125_v63 = vld [vmem:[%s8447_s20 + $0x438] ss:$100 sps:$4 sm:$0xff]   ;;  %v9081_v25 = vld [vmem:[%s10005_s3 + $0x20] ss:$8 sps:$4 sm:$0xff]  }
 0x14b   : > { %3404 = vmatpush1.bf16.msra.mxu0 %v8083_v20  ;;  %3477 = vmatpush1.bf16.msra.mxu1 %v8086_v0  ;;  %v8128_v49 = vld [vmem:[%s8447_s20 + $0x440] ss:$100 sps:$4 sm:$0xff]   ;;  %v8136_v52 = vld [vmem:[%s8447_s20 + $0x50c] ss:$100 sps:$4 sm:$0xff]   ;;  %v9091_v56 = vld [vmem:[%s10005_s3 + $0x34] ss:$8 sps:$4 sm:$0xff]  }
 0x14c   : > { %3405 = vmatprep.subr.bf16.mxu0 %v8091_v4  ;;  %3478 = vmatprep.subr.bf16.mxu1 %v8094_v11  ;;  %v8133_v10 = vld [vmem:[%s8447_s20 + $0x504] ss:$100 sps:$4 sm:$0xff]   ;;  %v8139_v3 = vld [vmem:[%s8447_s20 + $0x5cc] ss:$100 sps:$4 sm:$0xff]   ;;  %v8142_v0 = vld [vmem:[%s8447_s20 + $0x5d4] ss:$100 sps:$4 sm:$0xff]  }
 0x14d   : > { %1151 = vadd.xlane.f32.xlu0 %v1150_v13  ;;  %v8131_v57 = vld [vmem:[%s8447_s20 + $0x500] ss:$100 sps:$4 sm:$0xff]   ;;  %v8134_v59 = vld [vmem:[%s8447_s20 + $0x508] ss:$100 sps:$4 sm:$0xff]  }
 0x14f   : > { %3406 = vmatpush1.bf16.msra.mxu0 %v8089_v35  ;;  %3479 = vmatpush1.bf16.msra.mxu1 %v8092_v14 }
 0x150   : > { %3985 = vmatprep.subr.bf16.mxu0 %v8097_v16  ;;  %4058 = vmatprep.subr.bf16.mxu1 %v8100_v17 }
 0x152   : > { %3408 = vmatmul.mubr.bf16.vlgmr.msra.gmra.mrb[64].mxu0 %v9037_v58  ;;  %3481 = vmatmul.mubr.bf16.vlgmr.msra.gmra.mrb[64].mxu1 %v9037_v58 }
 0x153   : > { %3986 = vmatpush1.bf16.msra.mxu0 %v8095_v18  ;;  %4059 = vmatpush1.bf16.msra.mxu1 %v8098_v19 }
 0x154   : > { %3987 = vmatprep.subr.bf16.mxu0 %v8103_v21  ;;  %4060 = vmatprep.subr.bf16.mxu1 %v8106_v22 }
 0x155   : > { %3417 = vmatprep.mubr.bf16.mxu0 %v9047_v31  ;;  %3490 = vmatprep.mubr.bf16.mxu1 %v9047_v31 }
 0x157   : > { %3988 = vmatpush1.bf16.msra.mxu0 %v8101_v23  ;;  %4061 = vmatpush1.bf16.msra.mxu1 %v8104_v24  ;;  %v8137_v23 = vld [vmem:[%s8447_s20 + $0x5c8] ss:$100 sps:$4 sm:$0xff]   ;;  %v8140_v24 = vld [vmem:[%s8447_s20 + $0x5d0] ss:$100 sps:$4 sm:$0xff]  }
 0x158   : > { %3989 = vmatprep.subr.bf16.mxu0 %v8109_v26  ;;  %4062 = vmatprep.subr.bf16.mxu1 %v8112_v29  ;;  %v9112_v29 = vld [vmem:[%s10005_s3 + $0x30] ss:$8 sps:$4 sm:$0xff]  }
 0x15a   : > { %3418 = vmatmul.mubr.bf16.gmra.mrb[68].mxu0 %v9059_v37  ;;  %3491 = vmatmul.mubr.bf16.gmra.mrb[68].mxu1 %v9059_v37 }
 0x15b   : > { %3990 = vmatpush1.bf16.msra.mxu0 %v8107_v5  ;;  %4063 = vmatpush1.bf16.msra.mxu1 %v8110_v32  ;;  %v8145_v5 = vld [vmem:[%s8447_s20 + $0x694] ss:$100 sps:$4 sm:$0xff]   ;;  %v8148_v32 = vld [vmem:[%s8447_s20 + $0x69c] ss:$100 sps:$4 sm:$0xff]  }
 0x15c   : > { %3991 = vmatprep.subr.bf16.mxu0 %v8115_v33  ;;  %4064 = vmatprep.subr.bf16.mxu1 %v8118_v34 }
 0x15d   : > { %3427 = vmatprep.mubr.bf16.mxu0 %v9069_v15  ;;  %3500 = vmatprep.mubr.bf16.mxu1 %v9069_v15 }
 0x15f   : > { %3992 = vmatpush1.bf16.msra.mxu0 %v8113_v36  ;;  %4065 = vmatpush1.bf16.msra.mxu1 %v8116_v38 }
 0x160   : > { %3993 = vmatprep.subr.bf16.mxu0 %v8121_v39  ;;  %4066 = vmatprep.subr.bf16.mxu1 %v8124_v40 }
 0x162   : > { %3428 = vmatmul.mubr.bf16.gmra.mrb[72].mxu0 %v9081_v25  ;;  %3501 = vmatmul.mubr.bf16.gmra.mrb[72].mxu1 %v9081_v25 }
 0x163   : > { %3994 = vmatpush1.bf16.msra.mxu0 %v8119_v41  ;;  %4067 = vmatpush1.bf16.msra.mxu1 %v8122_v45 }
 0x164   : > { %3995 = vmatprep.subr.bf16.mxu0 %v8127_v46  ;;  %4068 = vmatprep.subr.bf16.mxu1 %v8130_v47  ;;  %v8143_v47 = vld [vmem:[%s8447_s20 + $0x690] ss:$100 sps:$4 sm:$0xff]  }
 0x165   : > { %v1579_v53 = vpop.f32.mrb[16].mxu0  ;;  %v1652_v55 = vpop.f32.mrb[16].mxu1  ;;  %3437 = vmatprep.mubr.bf16.mxu0 %v9091_v56  ;;  %3510 = vmatprep.mubr.bf16.mxu1 %v9091_v56 }
 0x166   : > { %v1580_v60 = vadd.f32 %v1579_v53, %v8891_v50  ;;  %v1581_v20 = vpop.f32.mrb[17].mxu0  ;;  %v1653_v1 = vadd.f32 %v1652_v55, %v8891_v50  ;;  %v1654_v2 = vpop.f32.mrb[17].mxu1  ;;  %v8151_v55 = vld [vmem:[%s8447_s20 + $0x75c] ss:$100 sps:$4 sm:$0xff]  }
 0x167   : > { %v1582_v4 = vadd.f32 %v1581_v20, %v8891_v50  ;;  %v1583_v6 = vpop.f32.mrb[18].mxu0  ;;  %3996 = vmatpush1.bf16.msra.mxu0 %v8125_v63  ;;  %4069 = vmatpush1.bf16.msra.mxu1 %v8128_v49  ;;  %v1655_v9 = vadd.f32 %v1654_v2, %v8891_v50  ;;  %v1656_v11 = vpop.f32.mrb[18].mxu1  ;;  %v8146_v63 = vld [vmem:[%s8447_s20 + $0x698] ss:$100 sps:$4 sm:$0xff]  }
 0x168   : > { %v1691_v35 = vmax.f32 %v1580_v60, 0.0  ;;  %v1584_v13 = vadd.f32 %v1583_v6, %v8910_v42  ;;  %v1585_v14 = vpop.f32.mrb[19].mxu0  ;;  %v1657_v16 = vadd.f32 %v1656_v11, %v8910_v42  ;;  %3997 = vmatprep.subr.bf16.mxu0 %v8133_v10  ;;  %4070 = vmatprep.subr.bf16.mxu1 %v8136_v52  ;;  %v1658_v17 = vpop.f32.mrb[19].mxu1  ;;  %v1693_v21 = vmax.f32 %v1653_v1, 0.0  ;;  %v8154_v6 = vld [vmem:[%s8447_s20 + $0x764] ss:$100 sps:$4 sm:$0xff]  }
 0x169   : > { %v1692_v18 = vmax.f32 %v1582_v4, 0.0  ;;  %v1586_v19 = vadd.f32 %v1585_v14, %v8910_v42  ;;  %v1659_v22 = vadd.f32 %v1658_v17, %v8910_v42  ;;  %v1694_v36 = vmax.f32 %v1655_v9, 0.0  ;;  %v8149_v14 = vld [vmem:[%s8447_s20 + $0x758] ss:$100 sps:$4 sm:$0xff]  }
 0x16a   : > { %v1695_v26 = vmax.f32 %v1584_v13, 0.0  ;;  %3438 = vmatmul.mubr.bf16.gmra.mrb[76].mxu0 %v9112_v29  ;;  %3511 = vmatmul.mubr.bf16.gmra.mrb[76].mxu1 %v9112_v29  ;;  %v1697_v38 = vmax.f32 %v1657_v16, 0.0  ;;  %v8152_v16 = vld [vmem:[%s8447_s20 + $0x760] ss:$100 sps:$4 sm:$0xff]  }
 0x16b   : > { %v1723_v33 = vadd.f32 %v1692_v18, %v1691_v35  ;;  %v1696_v34 = vmax.f32 %v1586_v19, 0.0  ;;  %3998 = vmatpush1.bf16.msra.mxu0 %v8131_v57  ;;  %4071 = vmatpush1.bf16.msra.mxu1 %v8134_v59  ;;  %v1698_v41 = vmax.f32 %v1659_v22, 0.0 }
 0x16c   : > { %3999 = vmatprep.subr.bf16.mxu0 %v8139_v3  ;;  %4072 = vmatprep.subr.bf16.mxu1 %v8142_v0 }
 0x16d   : > { %v1728_v39 = vadd.f32 %v1696_v34, %v1695_v26  ;;  %v1724_v40 = vadd.f32 %v1723_v33, %v1693_v21  ;;  %v1589_v45 = vpop.f32.mrb[20].mxu0  ;;  %v1662_v46 = vpop.f32.mrb[20].mxu1  ;;  %4017 = vmatprep.mubr.bf16.mxu0 %v8963_v51  ;;  %4090 = vmatprep.mubr.bf16.mxu1 %v8963_v51  ;;  %v8157_v26 = vld [vmem:[%s8447_s20 + $0x824] ss:$100 sps:$4 sm:$0xff]  }
 0x16e   : > { %v1590_v49 = vadd.f32 %v1589_v45, %v8920_v62  ;;  %v1591_v10 = vpop.f32.mrb[21].mxu0  ;;  %v1663_v52 = vadd.f32 %v1662_v46, %v8920_v62  ;;  %v1664_v53 = vpop.f32.mrb[21].mxu1 }
 0x16f   : > { %v1729_v57 = vadd.f32 %v1728_v39, %v1697_v38  ;;  %v1592_v59 = vadd.f32 %v1591_v10, %v8920_v62  ;;  %v1593_v60 = vpop.f32.mrb[22].mxu0  ;;  %4000 = vmatpush1.bf16.msra.mxu0 %v8137_v23  ;;  %4073 = vmatpush1.bf16.msra.mxu1 %v8140_v24  ;;  %v1666_v20 = vpop.f32.mrb[22].mxu1  ;;  %v1665_v3 = vadd.f32 %v1664_v53, %v8920_v62  ;;  %v8155_v38 = vld [vmem:[%s8447_s20 + $0x820] ss:$100 sps:$4 sm:$0xff]   ;;  %v8158_v39 = vld [vmem:[%s8447_s20 + $0x828] ss:$100 sps:$4 sm:$0xff]  }
 0x170   : > { %v1699_v1 = vmax.f32 %v1590_v49, 0.0  ;;  %v1594_v51 = vadd.f32 %v1593_v60, %v8918_v61  ;;  %v1595_v2 = vpop.f32.mrb[23].mxu0  ;;  %v1725_v0 = vadd.f32 %v1724_v40, %v1694_v36  ;;  %4001 = vmatprep.subr.bf16.mxu0 %v8145_v5  ;;  %4074 = vmatprep.subr.bf16.mxu1 %v8148_v32  ;;  %v1668_v4 = vpop.f32.mrb[23].mxu1  ;;  %v1701_v35 = vmax.f32 %v1663_v52, 0.0  ;;  %v8160_v5 = vld [vmem:[%s8447_s20 + $0x82c] ss:$100 sps:$4 sm:$0xff]  }
 0x171   : > { %v1700_v9 = vmax.f32 %v1592_v59, 0.0  ;;  %v1596_v11 = vadd.f32 %v1595_v2, %v8918_v61  ;;  %v1667_v13 = vadd.f32 %v1666_v20, %v8918_v61  ;;  %v1669_v18 = vadd.f32 %v1668_v4, %v8918_v61  ;;  %v8161_v4 = vld [vmem:[%s8447_s20 + $0x8e8] ss:$100 sps:$4 sm:$0xff]  }
 0x172   : > { %v1703_v17 = vmax.f32 %v1594_v51, 0.0  ;;  %1726 = vadd.xlane.f32.xlu0 %v1725_v0  ;;  %v1730_v19 = vadd.f32 %v1729_v57, %v1698_v41  ;;  %v1702_v24 = vmax.f32 %v1665_v3, 0.0 }
 0x173   : > { %v1733_v21 = vadd.f32 %v1700_v9, %v1699_v1  ;;  %v1704_v22 = vmax.f32 %v1596_v11, 0.0  ;;  %v1705_v23 = vmax.f32 %v1667_v13, 0.0  ;;  %4002 = vmatpush1.bf16.msra.mxu0 %v8143_v47  ;;  %4075 = vmatpush1.bf16.msra.mxu1 %v8146_v63  ;;  %v1706_v40 = vmax.f32 %v1669_v18, 0.0  ;;  %v8163_v63 = vld [vmem:[%s8447_s20 + $0x8ec] ss:$100 sps:$4 sm:$0xff]  }
 0x174   : > { %4003 = vmatprep.subr.bf16.mxu0 %v8151_v55  ;;  %4076 = vmatprep.subr.bf16.mxu1 %v8154_v6  ;;  %v8164_v6 = vld [vmem:[%s8447_s20 + $0x8f0] ss:$100 sps:$4 sm:$0xff]  }
 0x175   : > { %v1738_v32 = vadd.f32 %v1704_v22, %v1703_v17  ;;  %v1734_v33 = vadd.f32 %v1733_v21, %v1701_v35  ;;  %v1599_v34 = vpop.f32.mrb[24].mxu0  ;;  %v1672_v36 = vpop.f32.mrb[24].mxu1  ;;  %v8166_v9 = vld [vmem:[%s8447_s20 + $0x8f4] ss:$100 sps:$4 sm:$0xff]  }
 0x176   : > { %v1600_v41 = vadd.f32 %v1599_v34, %v8956_v44  ;;  %1731 = vadd.xlane.f32.xlu0 %v1730_v19  ;;  %v1601_v45 = vpop.f32.mrb[25].mxu0  ;;  %v1673_v46 = vadd.f32 %v1672_v36, %v8956_v44  ;;  %v1674_v47 = vpop.f32.mrb[25].mxu1 }
 0x177   : > { %v1739_v49 = vadd.f32 %v1738_v32, %v1705_v23  ;;  %v1602_v10 = vadd.f32 %v1601_v45, %v8956_v44  ;;  %v1603_v52 = vpop.f32.mrb[26].mxu0  ;;  %4004 = vmatpush1.bf16.msra.mxu0 %v8149_v14  ;;  %4077 = vmatpush1.bf16.msra.mxu1 %v8152_v16  ;;  %v1676_v53 = vpop.f32.mrb[26].mxu1  ;;  %v1675_v60 = vadd.f32 %v1674_v47, %v8956_v44  ;;  %v8169_v14 = vld [vmem:[%s8447_s20 + $0x9b4] ss:$100 sps:$4 sm:$0xff]   ;;  %v8172_v16 = vld [vmem:[%s8447_s20 + $0x9bc] ss:$100 sps:$4 sm:$0xff]  }
 0x178   : > { %v1707_v55 = vmax.f32 %v1600_v41, 0.0  ;;  %v1604_v57 = vadd.f32 %v1603_v52, %v8954_v43  ;;  %v1605_v59 = vpop.f32.mrb[27].mxu0  ;;  %v1735_v20 = vadd.f32 %v1734_v33, %v1702_v24  ;;  %4005 = vmatprep.subr.bf16.mxu0 %v8157_v26  ;;  %4078 = vmatprep.subr.bf16.mxu1 %v8160_v5  ;;  %v1678_v1 = vpop.f32.mrb[27].mxu1  ;;  %v1709_v3 = vmax.f32 %v1673_v46, 0.0  ;;  %v8167_v5 = vld [vmem:[%s8447_s20 + $0x9b0] ss:$100 sps:$4 sm:$0xff]  }
 0x179   : > { %v1708_v51 = vmax.f32 %v1602_v10, 0.0  ;;  %v1606_v2 = vadd.f32 %v1605_v59, %v8954_v43  ;;  %v1677_v0 = vadd.f32 %v1676_v53, %v8954_v43  ;;  %v1740_v35 = vadd.f32 %v1739_v49, %v1706_v40  ;;  %v8170_v32 = vld [vmem:[%s8447_s20 + $0x9b8] ss:$100 sps:$4 sm:$0xff]  }
 0x17a   : > { %v1711_v11 = vmax.f32 %v1604_v57, 0.0  ;;  %1736 = vadd.xlane.f32.xlu1 %v1735_v20  ;;  %v1679_v13 = vadd.f32 %v1678_v1, %v8954_v43  ;;  %v1710_v21 = vmax.f32 %v1675_v60, 0.0  ;;  %v8178_v57 = vld [vmem:[%s8447_s20 + $0xa84] ss:$100 sps:$4 sm:$0xff]  }
 0x17b   : > { %v1743_v17 = vadd.f32 %v1708_v51, %v1707_v55  ;;  %v1712_v18 = vmax.f32 %v1606_v2, 0.0  ;;  %v1713_v19 = vmax.f32 %v1677_v0, 0.0  ;;  %4006 = vmatpush1.bf16.msra.mxu0 %v8155_v38  ;;  %4079 = vmatpush1.bf16.msra.mxu1 %v8158_v39  ;;  %v8173_v51 = vld [vmem:[%s8447_s20 + $0xa78] ss:$100 sps:$4 sm:$0xff]   ;;  %v8176_v2 = vld [vmem:[%s8447_s20 + $0xa80] ss:$100 sps:$4 sm:$0xff]  }
 0x17c   : > { %1741 = vadd.xlane.f32.xlu0 %v1740_v35  ;;  %4007 = vmatprep.subr.bf16.mxu0 %v8163_v63  ;;  %v1714_v33 = vmax.f32 %v1679_v13, 0.0  ;;  %v8175_v63 = vld [vmem:[%s8447_s20 + $0xa7c] ss:$100 sps:$4 sm:$0xff]  }
 0x17d   : > { %v1748_v22 = vadd.f32 %v1712_v18, %v1711_v11  ;;  %v1744_v23 = vadd.f32 %v1743_v17, %v1709_v3  ;;  %v1609_v24 = vpop.f32.mrb[28].mxu0  ;;  %4080 = vmatprep.subr.bf16.mxu1 %v8166_v9  ;;  %v1682_v26 = vpop.f32.mrb[28].mxu1  ;;  %v8184_v9 = vld [vmem:[%s8447_s20 + $0xb4c] ss:$100 sps:$4 sm:$0xff]  }
 0x17e   : > { %v1610_v34 = vadd.f32 %v1609_v24, %v9000_v12  ;;  %v1611_v36 = vpop.f32.mrb[29].mxu0  ;;  %v1683_v40 = vadd.f32 %v1682_v26, %v9000_v12  ;;  %v1684_v41 = vpop.f32.mrb[29].mxu1  ;;  %v8187_v24 = vld [vmem:[%s8447_s20 + $0xc0c] ss:$100 sps:$4 sm:$0xff]  }
 0x17f   : > { %v1749_v38 = vadd.f32 %v1748_v22, %v1713_v19  ;;  %v1612_v39 = vadd.f32 %v1611_v36, %v9000_v12  ;;  %v1613_v45 = vpop.f32.mrb[30].mxu0  ;;  %4008 = vmatpush1.bf16.msra.mxu0 %v8161_v4  ;;  %4081 = vmatpush1.bf16.msra.mxu1 %v8164_v6  ;;  %v1685_v46 = vadd.f32 %v1684_v41, %v9000_v12  ;;  %v1686_v47 = vpop.f32.mrb[30].mxu1  ;;  %v8181_v6 = vld [vmem:[%s8447_s20 + $0xb44] ss:$100 sps:$4 sm:$0xff]  }
 0x180   : > { %v1715_v49 = vmax.f32 %v1610_v34, 0.0  ;;  %v1614_v10 = vadd.f32 %v1613_v45, %v9003_v30  ;;  %v1615_v52 = vpop.f32.mrb[31].mxu0  ;;  %v1745_v53 = vadd.f32 %v1744_v23, %v1710_v21  ;;  %4009 = vmatprep.subr.bf16.mxu0 %v8169_v14  ;;  %4082 = vmatprep.subr.bf16.mxu1 %v8172_v16  ;;  %v1688_v55 = vpop.f32.mrb[31].mxu1  ;;  %v1717_v20 = vmax.f32 %v1683_v40, 0.0  ;;  %v8179_v19 = vld [vmem:[%s8447_s20 + $0xb40] ss:$100 sps:$4 sm:$0xff]  }
 0x181   : > { %v1716_v59 = vmax.f32 %v1612_v39, 0.0  ;;  %v1616_v60 = vadd.f32 %v1615_v52, %v9003_v30  ;;  %v1687_v1 = vadd.f32 %v1686_v47, %v9003_v30  ;;  %v1750_v0 = vadd.f32 %v1749_v38, %v1714_v33  ;;  %v8182_v23 = vld [vmem:[%s8447_s20 + $0xb48] ss:$100 sps:$4 sm:$0xff]   ;;  %v8188_v33 = vld [vmem:[%s8447_s20 + $0xc10] ss:$100 sps:$4 sm:$0xff]   ;;  %v8192_v36 = vld [vmem:[%s8896_s17 + $0x40] sm:$0xff]  }
 0x182   : > { %v1719_v3 = vmax.f32 %v1614_v10, 0.0  ;;  %1746 = vadd.xlane.f32.xlu1 %v1745_v53  ;;  %v1689_v4 = vadd.f32 %v1688_v55, %v9003_v30  ;;  %v1718_v13 = vmax.f32 %v1685_v46, 0.0  ;;  %v8191_v34 = vld [vmem:[%s8447_s20 + $0x6a0] ss:$100 sps:$4 sm:$0xff]   ;;  %v8195_v38 = vld [vmem:[%s8447_s20 + $0x768] ss:$100 sps:$4 sm:$0xff]  }
 0x183   : > { %v1753_v11 = vadd.f32 %v1716_v59, %v1715_v49  ;;  %v1720_v35 = vmax.f32 %v1616_v60, 0.0  ;;  %v1721_v14 = vmax.f32 %v1687_v1, 0.0  ;;  %4010 = vmatpush1.bf16.msra.mxu0 %v8167_v5  ;;  %4083 = vmatpush1.bf16.msra.mxu1 %v8170_v32  ;;  %v8190_v5 = vld [vmem:[%s8447_s20 + $0xc14] ss:$100 sps:$4 sm:$0xff]   ;;  %v8185_v32 = vld [vmem:[%s8447_s20 + $0xc08] ss:$100 sps:$4 sm:$0xff]  }
 0x184   : > { %1751 = vadd.xlane.f32.xlu0 %v1750_v0  ;;  %v1722_v16 = vmax.f32 %v1689_v4, 0.0  ;;  %4011 = vmatprep.subr.bf16.mxu0 %v8175_v63  ;;  %v8193_v40 = vld [vmem:[%s8447_s20 + $0x60] ss:$100 sps:$4 sm:$0xff]   ;;  %v8196_v39 = vld [vmem:[%s8896_s17 + $0x48] sm:$0xff]   ;;  %v8199_v47 = vld [vmem:[%s8447_s20 + $0x830] ss:$100 sps:$4 sm:$0xff]  }
 0x185   : > { %v1758_v17 = vadd.f32 %v1720_v35, %v1719_v3  ;;  %v1754_v18 = vadd.f32 %v1753_v11, %v1717_v20  ;;  %4084 = vmatprep.subr.bf16.mxu1 %v8178_v57  ;;  %v8194_v41 = vld [vmem:[%s8896_s17] sm:$0xff]   ;;  %v8197_v45 = vld [vmem:[%s8447_s20 + $0x128] ss:$100 sps:$4 sm:$0xff]   ;;  %v8200_v63 = vld [vmem:[%s8896_s17 + $0x50] sm:$0xff]  }
 0x186   : > { %v8198_v46 = vld [vmem:[%s8896_s17 + $0x8] sm:$0xff]   ;;  %v8201_v49 = vld [vmem:[%s8447_s20 + $0x1f0] ss:$100 sps:$4 sm:$0xff]   ;;  %v8204_v52 = vld [vmem:[%s8896_s17 + $0x58] sm:$0xff]  }
 0x187   : > { %v1759_v21 = vadd.f32 %v1758_v17, %v1721_v14  ;;  %4012 = vmatpush1.bf16.msra.mxu0 %v8173_v51  ;;  %4085 = vmatpush1.bf16.msra.mxu1 %v8176_v2  ;;  %v1755_v22 = vadd.f32 %v1754_v18, %v1718_v13  ;;  %v8202_v10 = vld [vmem:[%s8896_s17 + $0x10] sm:$0xff]   ;;  %v8205_v53 = vld [vmem:[%s8447_s20 + $0x2b8] ss:$100 sps:$4 sm:$0xff]   ;;  %v8207_v55 = vld [vmem:[%s8447_s20 + $0x9c0] ss:$100 sps:$4 sm:$0xff]  }
 0x188   : > { %4013 = vmatprep.subr.bf16.mxu0 %v8181_v6  ;;  %4086 = vmatprep.subr.bf16.mxu1 %v8184_v9  ;;  %v8208_v57 = vld [vmem:[%s8896_s17 + $0x60] sm:$0xff]   ;;  %v8212_v20 = vld [vmem:[%s8896_s17 + $0x68] sm:$0xff]   ;;  %v8215_v2 = vld [vmem:[%s8447_s20 + $0xb50] ss:$100 sps:$4 sm:$0xff]  }
 0x189   : > { %1756 = vadd.xlane.f32.xlu1 %v1755_v22  ;;  %v1760_v26 = vadd.f32 %v1759_v21, %v1722_v16  ;;  %v8210_v59 = vld [vmem:[%s8896_s17 + $0x20] sm:$0xff]   ;;  %v8213_v1 = vld [vmem:[%s8447_s20 + $0x448] ss:$100 sps:$4 sm:$0xff]   ;;  %v8217_v4 = vld [vmem:[%s8447_s20 + $0x510] ss:$100 sps:$4 sm:$0xff]  }
 0x18a   : > { %v8209_v60 = vld [vmem:[%s8447_s20 + $0x380] ss:$100 sps:$4 sm:$0xff]   ;;  %v8214_v51 = vld [vmem:[%s8896_s17 + $0x28] sm:$0xff]   ;;  %v8218_v6 = vld [vmem:[%s8896_s17 + $0x30] sm:$0xff]  }
 0x18b   : > { %4014 = vmatpush1.bf16.msra.mxu0 %v8179_v19  ;;  %4087 = vmatpush1.bf16.msra.mxu1 %v8182_v23  ;;  %v9219_v13 = vld [vmem:[%s10007_s5] sm:$0xff]  ;;  %v8219_v18 = vld [vmem:[%s8447_s20 + $0xc18] ss:$100 sps:$4 sm:$0xff]  }
 0x18c   : > { %1761 = vadd.xlane.f32.xlu0 %v1760_v26  ;;  %4015 = vmatprep.subr.bf16.mxu0 %v8187_v24  ;;  %v9224_v14 = vld [vmem:[%s10007_s5 + $0x40] sm:$0xff] }
 0x18d   : > { %4088 = vmatprep.subr.bf16.mxu1 %v8190_v5  ;;  %v8220_v5 = vld [vmem:[%s8896_s17 + $0x78] sm:$0xff]  }
 0x18f   : > { %4016 = vmatpush1.bf16.msra.mxu0 %v8185_v32  ;;  %4089 = vmatpush1.bf16.msra.mxu1 %v8188_v33 }
 0x190   : > { %7172 = vmatprep.subr.bf16.mxu0 %v8191_v34  ;;  %7212 = vmatprep.subr.bf16.mxu1 %v8192_v36  ;;  %v8221_v36 = vld [vmem:[%s8447_s20 + $0x5d8] ss:$100 sps:$4 sm:$0xff]  }
 0x192   : > { %4018 = vmatmul.mubr.bf16.vlgmr.msra.gmra.mrb[80].mxu0 %v9037_v58  ;;  %4091 = vmatmul.mubr.bf16.vlgmr.msra.gmra.mrb[80].mxu1 %v9037_v58  ;;  %v8203_v58 = vld [vmem:[%s8447_s20 + $0x8f8] ss:$100 sps:$4 sm:$0xff]  }
 0x193   : > { %7173 = vmatpush3.bf16.msra.mxu0 %v8193_v40  ;;  %7213 = vmatpush3.bf16.msra.mxu1 %v8194_v41  ;;  %v6976_v40 = vcombine.high %v9219_v13, %v9224_v14 }
 0x194   : > { %7174 = vmatprep.subr.bf16.mxu0 %v8195_v38  ;;  %7214 = vmatprep.subr.bf16.mxu1 %v8196_v39  ;;  %v8222_v39 = vld [vmem:[%s8896_s17 + $0x38] sm:$0xff]  }
 0x195   : > { %4027 = vmatprep.mubr.bf16.mxu0 %v9047_v31  ;;  %4100 = vmatprep.mubr.bf16.mxu1 %v9047_v31  ;;  %v8206_v31 = vld [vmem:[%s8896_s17 + $0x18] sm:$0xff]  }
 0x197   : > { %7175 = vmatpush3.bf16.msra.mxu0 %v8197_v45  ;;  %7215 = vmatpush3.bf16.msra.mxu1 %v8198_v46  ;;  %v8223_v45 = vld [vmem:[%s8896_s17 + $0xc0] sm:$0xff]  }
 0x198   : > { %7176 = vmatprep.subr.bf16.mxu0 %v8199_v47  ;;  %7216 = vmatprep.subr.bf16.mxu1 %v8200_v63 }
 0x19a   : > { %4028 = vmatmul.mubr.bf16.gmra.mrb[84].mxu0 %v9059_v37  ;;  %4101 = vmatmul.mubr.bf16.gmra.mrb[84].mxu1 %v9059_v37  ;;  %v8211_v37 = vld [vmem:[%s8447_s20 + $0xa88] ss:$100 sps:$4 sm:$0xff]  }
 0x19b   : > { %7177 = vmatpush3.bf16.msra.mxu0 %v8201_v49  ;;  %7217 = vmatpush3.bf16.msra.mxu1 %v8202_v10  ;;  %v8224_v10 = vld [vmem:[%s8896_s17 + $0x140] sm:$0xff]  }
 0x19c   : > { %7178 = vmatprep.subr.bf16.mxu0 %v8203_v58  ;;  %7218 = vmatprep.subr.bf16.mxu1 %v8204_v52 }
 0x19d   : > { %4037 = vmatprep.mubr.bf16.mxu0 %v9069_v15  ;;  %4110 = vmatprep.mubr.bf16.mxu1 %v9069_v15  ;;  %v8216_v15 = vld [vmem:[%s8896_s17 + $0x70] sm:$0xff]  }
 0x19f   : > { %7179 = vmatpush3.bf16.msra.mxu0 %v8205_v53  ;;  %7219 = vmatpush3.bf16.msra.mxu1 %v8206_v31 }
 0x1a0   : > { %7180 = vmatprep.subr.bf16.mxu0 %v8207_v55  ;;  %7220 = vmatprep.subr.bf16.mxu1 %v8208_v57  ;;  %v8225_v55 = vld [vmem:[%s8896_s17 + $0x80] sm:$0xff]  }
 0x1a1   : > { %v9249_v57 = vld [vmem:[%s10007_s5 + $0x80] sm:$0xff] }
 0x1a2   : > { %4038 = vmatmul.mubr.bf16.gmra.mrb[88].mxu0 %v9081_v25  ;;  %4111 = vmatmul.mubr.bf16.gmra.mrb[88].mxu1 %v9081_v25 }
 0x1a3   : > { %7181 = vmatpush3.bf16.msra.mxu0 %v8209_v60  ;;  %7221 = vmatpush3.bf16.msra.mxu1 %v8210_v59 }
 0x1a4   : > { %7182 = vmatprep.subr.bf16.mxu0 %v8211_v37  ;;  %7222 = vmatprep.subr.bf16.mxu1 %v8212_v20 }
 0x1a5   : > { %v2189_v3 = vpop.f32.mrb[32].mxu0  ;;  %v2262_v0 = vpop.f32.mrb[32].mxu1  ;;  %4047 = vmatprep.mubr.bf16.mxu0 %v9091_v56  ;;  %4120 = vmatprep.mubr.bf16.mxu1 %v9091_v56 }
 0x1a6   : > { %v2190_v9 = vadd.f32 %v2189_v3, %v8891_v50  ;;  %v2191_v11 = vpop.f32.mrb[33].mxu0  ;;  %v2263_v25 = vadd.f32 %v2262_v0, %v8891_v50  ;;  %v2264_v35 = vpop.f32.mrb[33].mxu1 }
 0x1a7   : > { %v2192_v56 = vadd.f32 %v2191_v11, %v8891_v50  ;;  %v2193_v16 = vpop.f32.mrb[34].mxu0  ;;  %7183 = vmatpush3.bf16.msra.mxu0 %v8213_v1  ;;  %7223 = vmatpush3.bf16.msra.mxu1 %v8214_v51  ;;  %v2266_v17 = vpop.f32.mrb[34].mxu1  ;;  %v2265_v23 = vadd.f32 %v2264_v35, %v8891_v50  ;;  %v6975_v51 = vcombine.low %v9219_v13, %v9224_v14  ;;  %v8226_v13 = vld [vmem:[%s8896_s17 + $0x100] sm:$0xff]  }
 0x1a8   : > { %v2301_v19 = vmax.f32 %v2190_v9, 0.0  ;;  %v2194_v21 = vadd.f32 %v2193_v16, %v8910_v42  ;;  %v2195_v22 = vpop.f32.mrb[35].mxu0  ;;  %v2267_v24 = vadd.f32 %v2266_v17, %v8910_v42  ;;  %7184 = vmatprep.subr.bf16.mxu0 %v8215_v2  ;;  %7224 = vmatprep.subr.bf16.mxu1 %v8216_v15  ;;  %v2268_v26 = vpop.f32.mrb[35].mxu1  ;;  %v2303_v34 = vmax.f32 %v2263_v25, 0.0  ;;  %v9258_v15 = vld [vmem:[%s10007_s5 + $0xc0] sm:$0xff] }
 0x1a9   : > { %v2302_v32 = vmax.f32 %v2192_v56, 0.0  ;;  %v2196_v33 = vadd.f32 %v2195_v22, %v8910_v42  ;;  %v2269_v38 = vadd.f32 %v2268_v26, %v8910_v42  ;;  %v2304_v49 = vmax.f32 %v2265_v23, 0.0  ;;  %v8352_v23 = vld [vmem:[%s10005_s3] ss:$8 sps:$4 sm:$0xff]  }
 0x1aa   : > { %v2305_v41 = vmax.f32 %v2194_v21, 0.0  ;;  %4048 = vmatmul.mubr.bf16.gmra.mrb[92].mxu0 %v9112_v29  ;;  %4121 = vmatmul.mubr.bf16.gmra.mrb[92].mxu1 %v9112_v29  ;;  %v2307_v63 = vmax.f32 %v2267_v24, 0.0  ;;  %v8351_v29 = vld [vmem:[%s10005_s3 + $0x4] ss:$8 sps:$4 sm:$0xff]  }
 0x1ab   : > { %v2333_v46 = vadd.f32 %v2302_v32, %v2301_v19  ;;  %v2306_v47 = vmax.f32 %v2196_v33, 0.0  ;;  %7185 = vmatpush3.bf16.msra.mxu0 %v8217_v4  ;;  %7225 = vmatpush3.bf16.msra.mxu1 %v8218_v6  ;;  %v2308_v59 = vmax.f32 %v2269_v38, 0.0  ;;  %v8227_v19 = vld [vmem:[%s8896_s17 + $0xc8] sm:$0xff]   ;;  %v6992_v33 = vcombine.high %v9249_v57, %v9258_v15  ;;  %v8231_v38 = vld [vmem:[%s8896_s17 + $0xd0] sm:$0xff]  }
 0x1ac   : > { %7186 = vmatprep.subr.bf16.mxu0 %v8219_v18  ;;  %7226 = vmatprep.subr.bf16.mxu1 %v8220_v5  ;;  %v8228_v21 = vld [vmem:[%s8896_s17 + $0x148] sm:$0xff]  }
 0x1ad   : > { %v2338_v58 = vadd.f32 %v2306_v47, %v2305_v41  ;;  %v2334_v52 = vadd.f32 %v2333_v46, %v2303_v34  ;;  %v2199_v53 = vpop.f32.mrb[36].mxu0  ;;  %v2272_v31 = vpop.f32.mrb[36].mxu1  ;;  %4371 = vmatprep.mubr.bf16.mxu0 %v8351_v29  ;;  %5869 = vmatprep.mubr.bf16.mxu1 %v6976_v40  ;;  %v8229_v5 = vld [vmem:[%s8896_s17 + $0x88] sm:$0xff]   ;;  %v6991_v29 = vcombine.low %v9249_v57, %v9258_v15  ;;  %v9296_v57 = vld [vmem:[%s10007_s5 + $0x140] sm:$0xff] }
 0x1ae   : > { %v2200_v60 = vadd.f32 %v2199_v53, %v8920_v62  ;;  %v2201_v37 = vpop.f32.mrb[37].mxu0  ;;  %v2273_v20 = vadd.f32 %v2272_v31, %v8920_v62  ;;  %v2274_v1 = vpop.f32.mrb[37].mxu1  ;;  %v8230_v32 = vld [vmem:[%s8896_s17 + $0x108] sm:$0xff]   ;;  %v8353_v31 = vld [vmem:[%s10005_s3 + $0x14] ss:$8 sps:$4 sm:$0xff]  }
 0x1af   : > { %v2339_v2 = vadd.f32 %v2338_v58, %v2307_v63  ;;  %v2202_v3 = vadd.f32 %v2201_v37, %v8920_v62  ;;  %v2203_v0 = vpop.f32.mrb[38].mxu0  ;;  %7187 = vmatpush3.bf16.msra.mxu0 %v8221_v36  ;;  %7227 = vmatpush3.bf16.msra.mxu1 %v8222_v39  ;;  %v2275_v4 = vadd.f32 %v2274_v1, %v8920_v62  ;;  %v2276_v6 = vpop.f32.mrb[38].mxu1 }
 0x1b0   : > { %v2309_v9 = vmax.f32 %v2200_v60, 0.0  ;;  %v2204_v11 = vadd.f32 %v2203_v0, %v8918_v61  ;;  %v2205_v25 = vpop.f32.mrb[39].mxu0  ;;  %v2335_v35 = vadd.f32 %v2334_v52, %v2304_v49  ;;  %7252 = vmatprep.subr.bf16.mxu0 %v8223_v45  ;;  %7292 = vmatprep.subr.bf16.mxu1 %v8224_v10  ;;  %v2278_v14 = vpop.f32.mrb[39].mxu1  ;;  %v2311_v17 = vmax.f32 %v2273_v20, 0.0  ;;  %v8232_v45 = vld [vmem:[%s8896_s17 + $0x150] sm:$0xff]  }
 0x1b1   : > { %v2310_v56 = vmax.f32 %v2202_v3, 0.0  ;;  %v2206_v16 = vadd.f32 %v2205_v25, %v8918_v61  ;;  %v2277_v18 = vadd.f32 %v2276_v6, %v8918_v61  ;;  %v2340_v24 = vadd.f32 %v2339_v2, %v2308_v59  ;;  %v9291_v2 = vld [vmem:[%s10007_s5 + $0x100] sm:$0xff]  ;;  %v8234_v6 = vld [vmem:[%s8896_s17 + $0x110] sm:$0xff]   ;;  %v8236_v25 = vld [vmem:[%s8896_s17 + $0x158] sm:$0xff]  }
 0x1b2   : > { %v2313_v22 = vmax.f32 %v2204_v11, 0.0  ;;  %2336 = vadd.xlane.f32.xlu1 %v2335_v35  ;;  %4372 = vmatmul.mubr.bf16.vlgmr.msra.gmra.mrb[96].mxu0 %v8352_v23  ;;  %v2279_v26 = vadd.f32 %v2278_v14, %v8918_v61  ;;  %v2312_v40 = vmax.f32 %v2275_v4, 0.0  ;;  %v8235_v11 = vld [vmem:[%s8896_s17 + $0xd8] sm:$0xff]   ;;  %v7008_v23 = vcombine.high %v9291_v2, %v9296_v57 }
 0x1b3   : > { %v2343_v34 = vadd.f32 %v2310_v56, %v2309_v9  ;;  %v2314_v36 = vmax.f32 %v2206_v16, 0.0  ;;  %v2315_v41 = vmax.f32 %v2277_v18, 0.0  ;;  %5870 = vmatmul.mubr.bf16.vlgmr.msra.gmra.mrb[96].mxu1 %v6975_v51  ;;  %7253 = vmatpush3.bf16.msra.mxu0 %v8225_v55  ;;  %v8233_v51 = vld [vmem:[%s8896_s17 + $0x90] sm:$0xff]  }
 0x1b4   : > { %7293 = vmatpush3.bf16.msra.mxu1 %v8226_v13  ;;  %2341 = vadd.xlane.f32.xlu0 %v2340_v24  ;;  %v2316_v39 = vmax.f32 %v2279_v26, 0.0  ;;  %v8354_v18 = vld [vmem:[%s10005_s3 + $0x10] ss:$8 sps:$4 sm:$0xff]  }
 0x1b5   : > { %v2348_v46 = vadd.f32 %v2314_v36, %v2313_v22  ;;  %v2344_v47 = vadd.f32 %v2343_v34, %v2311_v17  ;;  %v2209_v63 = vpop.f32.mrb[40].mxu0  ;;  %7254 = vmatprep.subr.bf16.mxu0 %v8227_v19  ;;  %7294 = vmatprep.subr.bf16.mxu1 %v8228_v21  ;;  %v2282_v49 = vpop.f32.mrb[40].mxu1  ;;  %v8237_v21 = vld [vmem:[%s8896_s17 + $0x98] sm:$0xff]  }
 0x1b6   : > { %v2210_v10 = vadd.f32 %v2209_v63, %v8956_v44  ;;  %v2211_v58 = vpop.f32.mrb[41].mxu0  ;;  %v2283_v52 = vadd.f32 %v2282_v49, %v8956_v44  ;;  %v2284_v53 = vpop.f32.mrb[41].mxu1  ;;  %4379 = vmatprep.mubr.bf16.mxu0 %v8353_v31  ;;  %5877 = vmatprep.mubr.bf16.mxu1 %v6992_v33  ;;  %v8238_v22 = vld [vmem:[%s8896_s17 + $0x118] sm:$0xff]   ;;  %v8241_v63 = vld [vmem:[%s8896_s17 + $0xa0] sm:$0xff]  }
 0x1b7   : > { %v2349_v55 = vadd.f32 %v2348_v46, %v2315_v41  ;;  %v2212_v59 = vadd.f32 %v2211_v58, %v8956_v44  ;;  %v2213_v60 = vpop.f32.mrb[42].mxu0  ;;  %7255 = vmatpush3.bf16.msra.mxu0 %v8229_v5  ;;  %v2285_v37 = vadd.f32 %v2284_v53, %v8956_v44  ;;  %v2345_v20 = vadd.f32 %v2344_v47, %v2312_v40  ;;  %v2286_v1 = vpop.f32.mrb[42].mxu1  ;;  %v8355_v47 = vld [vmem:[%s10005_s3 + $0x24] ss:$8 sps:$4 sm:$0xff]  }
 0x1b8   : > { %v2317_v15 = vmax.f32 %v2210_v10, 0.0  ;;  %v2214_v3 = vadd.f32 %v2213_v60, %v8954_v43  ;;  %7295 = vmatpush3.bf16.msra.mxu1 %v8230_v32  ;;  %v2215_v0 = vpop.f32.mrb[43].mxu0  ;;  %v2287_v4 = vadd.f32 %v2286_v1, %v8954_v43  ;;  %7256 = vmatprep.subr.bf16.mxu0 %v8231_v38  ;;  %v2288_v9 = vpop.f32.mrb[43].mxu1  ;;  %v2319_v14 = vmax.f32 %v2283_v52, 0.0  ;;  %v8239_v32 = vld [vmem:[%s8896_s17 + $0xe0] sm:$0xff]  }
 0x1b9   : > { %v2318_v35 = vmax.f32 %v2212_v59, 0.0  ;;  %v2216_v13 = vadd.f32 %v2215_v0, %v8954_v43  ;;  %2346 = vadd.xlane.f32.xlu1 %v2345_v20  ;;  %7296 = vmatprep.subr.bf16.mxu1 %v8232_v45  ;;  %v2350_v56 = vadd.f32 %v2349_v55, %v2316_v39  ;;  %v2320_v17 = vmax.f32 %v2285_v37, 0.0  ;;  %v8240_v38 = vld [vmem:[%s8896_s17 + $0x160] sm:$0xff]   ;;  %v8243_v55 = vld [vmem:[%s8896_s17 + $0xe8] sm:$0xff]  }
 0x1ba   : > { %v2321_v16 = vmax.f32 %v2214_v3, 0.0  ;;  %4380 = vmatmul.mubr.bf16.gmra.mrb[100].mxu0 %v8354_v18  ;;  %v2289_v19 = vadd.f32 %v2288_v9, %v8954_v43  ;;  %v2323_v5 = vmax.f32 %v2287_v4, 0.0  ;;  %v8242_v49 = vld [vmem:[%s8896_s17 + $0x120] sm:$0xff]   ;;  %v8244_v59 = vld [vmem:[%s8896_s17 + $0x168] sm:$0xff]  }
 0x1bb   : > { %v2353_v24 = vadd.f32 %v2318_v35, %v2317_v15  ;;  %v2322_v26 = vmax.f32 %v2216_v13, 0.0  ;;  %5878 = vmatmul.mubr.bf16.gmra.mrb[100].mxu1 %v6991_v29  ;;  %7257 = vmatpush3.bf16.msra.mxu0 %v8233_v51  ;;  %v7007_v29 = vcombine.low %v9291_v2, %v9296_v57  ;;  %v9329_v60 = vld [vmem:[%s10007_s5 + $0x180] sm:$0xff] }
 0x1bc   : > { %7297 = vmatpush3.bf16.msra.mxu1 %v8234_v6  ;;  %2351 = vadd.xlane.f32.xlu0 %v2350_v56  ;;  %v2324_v36 = vmax.f32 %v2289_v19, 0.0  ;;  %v451_v37 = vld [vmem:[%s10007_s5 + $0x1c0] sm:$0xff]  ;;  %v8246_v19 = vld [vmem:[%s8896_s17 + $0x128] sm:$0xff]  }
 0x1bd   : > { %v2358_v33 = vadd.f32 %v2322_v26, %v2321_v16  ;;  %v2354_v34 = vadd.f32 %v2353_v24, %v2319_v14  ;;  %v2219_v40 = vpop.f32.mrb[44].mxu0  ;;  %7258 = vmatprep.subr.bf16.mxu0 %v8235_v11  ;;  %7298 = vmatprep.subr.bf16.mxu1 %v8236_v25  ;;  %v2292_v41 = vpop.f32.mrb[44].mxu1  ;;  %v8356_v35 = vld [vmem:[%s10005_s3 + $0x20] ss:$8 sps:$4 sm:$0xff]   ;;  %v7024_v56 = vcombine.high %v9329_v60, %v451_v37 }
 0x1be   : > { %v2220_v39 = vadd.f32 %v2219_v40, %v9000_v12  ;;  %v2221_v45 = vpop.f32.mrb[45].mxu0  ;;  %v2293_v46 = vadd.f32 %v2292_v41, %v9000_v12  ;;  %4387 = vmatprep.mubr.bf16.mxu0 %v8355_v47  ;;  %5885 = vmatprep.mubr.bf16.mxu1 %v7008_v23  ;;  %v2294_v53 = vpop.f32.mrb[45].mxu1  ;;  %v8245_v14 = vld [vmem:[%s8896_s17 + $0xa8] sm:$0xff]   ;;  %v8251_v47 = vld [vmem:[%s8896_s17 + $0xf8] sm:$0xff]  }
 0x1bf   : > { %v2359_v10 = vadd.f32 %v2358_v33, %v2323_v5  ;;  %v2222_v58 = vadd.f32 %v2221_v45, %v9000_v12  ;;  %v2223_v52 = vpop.f32.mrb[46].mxu0  ;;  %7259 = vmatpush3.bf16.msra.mxu0 %v8237_v21  ;;  %v2355_v31 = vadd.f32 %v2354_v34, %v2320_v17  ;;  %v2295_v2 = vadd.f32 %v2294_v53, %v9000_v12  ;;  %v2296_v57 = vpop.f32.mrb[46].mxu1  ;;  %v8247_v21 = vld [vmem:[%s8896_s17 + $0xf0] sm:$0xff]   ;;  %v404_v33 = vld [vmem:[%s10007_s5 + $0x48] sm:$0xff]  ;;  %v8254_v53 = vld [vmem:[%s8896_s17 + $0x138] sm:$0xff]  }
 0x1c0   : > { %v2325_v20 = vmax.f32 %v2220_v39, 0.0  ;;  %v2224_v1 = vadd.f32 %v2223_v52, %v9003_v30  ;;  %7299 = vmatpush3.bf16.msra.mxu1 %v8238_v22  ;;  %v2225_v51 = vpop.f32.mrb[47].mxu0  ;;  %v2327_v15 = vmax.f32 %v2293_v46, 0.0  ;;  %7260 = vmatprep.subr.bf16.mxu0 %v8239_v32  ;;  %v2297_v4 = vadd.f32 %v2296_v57, %v9003_v30  ;;  %v2298_v9 = vpop.f32.mrb[47].mxu1  ;;  %v8248_v22 = vld [vmem:[%s8896_s17 + $0x170] sm:$0xff]   ;;  %v396_v32 = vld [vmem:[%s10007_s5 + $0x8] sm:$0xff] }
 0x1c1   : > { %v2326_v3 = vmax.f32 %v2222_v58, 0.0  ;;  %v2226_v0 = vadd.f32 %v2225_v51, %v9003_v30  ;;  %2356 = vadd.xlane.f32.xlu1 %v2355_v31  ;;  %7300 = vmatprep.subr.bf16.mxu1 %v8240_v38  ;;  %v2360_v6 = vadd.f32 %v2359_v10, %v2324_v36  ;;  %v2328_v25 = vmax.f32 %v2295_v2, 0.0  ;;  %v8249_v5 = vld [vmem:[%s8896_s17 + $0xb0] sm:$0xff]   ;;  %v8253_v52 = vld [vmem:[%s8896_s17 + $0xb8] sm:$0xff]   ;;  %v8255_v31 = vld [vmem:[%s8896_s17 + $0x1c0] sm:$0xff]  }
 0x1c2   : > { %v2329_v11 = vmax.f32 %v2224_v1, 0.0  ;;  %4388 = vmatmul.mubr.bf16.gmra.mrb[104].mxu0 %v8356_v35  ;;  %v2299_v13 = vadd.f32 %v2298_v9, %v9003_v30  ;;  %v2331_v18 = vmax.f32 %v2297_v4, 0.0  ;;  %v8357_v34 = vld [vmem:[%s10005_s3 + $0x34] ss:$8 sps:$4 sm:$0xff]   ;;  %v7023_v38 = vcombine.low %v9329_v60, %v451_v37  ;;  %v420_v60 = vld [vmem:[%s10007_s5 + $0xc8] sm:$0xff] }
 0x1c3   : > { %v2363_v16 = vadd.f32 %v2326_v3, %v2325_v20  ;;  %v2330_v17 = vmax.f32 %v2226_v0, 0.0  ;;  %5886 = vmatmul.mubr.bf16.gmra.mrb[104].mxu1 %v7007_v29  ;;  %7261 = vmatpush3.bf16.msra.mxu0 %v8241_v63  ;;  %v397_v36 = vld [vmem:[%s10007_s5 + $0x10] sm:$0xff]  ;;  %v8252_v63 = vld [vmem:[%s8896_s17 + $0x178] sm:$0xff]   ;;  %v6978_v10 = vcombine.high %v396_v32, %v404_v33  ;;  %v8256_v29 = vld [vmem:[%s8896_s17 + $0x240] sm:$0xff]  }
 0x1c4   : > { %7301 = vmatpush3.bf16.msra.mxu1 %v8242_v49  ;;  %2361 = vadd.xlane.f32.xlu0 %v2360_v6  ;;  %v2332_v26 = vmax.f32 %v2299_v13, 0.0  ;;  %v405_v39 = vld [vmem:[%s10007_s5 + $0x50] sm:$0xff]  ;;  %v8257_v20 = vld [vmem:[%s8896_s17 + $0x180] sm:$0xff]   ;;  %v8259_v2 = vld [vmem:[%s8896_s17 + $0x1c8] sm:$0xff]  }
 0x1c5   : > { %v2368_v23 = vadd.f32 %v2330_v17, %v2329_v11  ;;  %v2364_v24 = vadd.f32 %v2363_v16, %v2327_v15  ;;  %7262 = vmatprep.subr.bf16.mxu0 %v8243_v55  ;;  %7302 = vmatprep.subr.bf16.mxu1 %v8244_v59  ;;  %v8250_v45 = vld [vmem:[%s8896_s17 + $0x130] sm:$0xff]   ;;  %v6980_v58 = vcombine.high %v397_v36, %v405_v39  ;;  %v412_v59 = vld [vmem:[%s10007_s5 + $0x88] sm:$0xff]  ;;  %v8258_v15 = vld [vmem:[%s8896_s17 + $0x200] sm:$0xff]  }
 0x1c6   : > { %4395 = vmatprep.mubr.bf16.mxu0 %v8357_v34  ;;  %5893 = vmatprep.mubr.bf16.mxu1 %v7024_v56  ;;  %v8358_v49 = vld [vmem:[%s10005_s3 + $0x30] ss:$8 sps:$4 sm:$0xff]   ;;  %v6977_v55 = vcombine.low %v396_v32, %v404_v33  ;;  %v6979_v37 = vcombine.low %v397_v36, %v405_v39  ;;  %v8260_v57 = vld [vmem:[%s8896_s17 + $0x248] sm:$0xff]   ;;  %v6994_v3 = vcombine.high %v412_v59, %v420_v60  ;;  %v8272_v32 = vld [vmem:[%s8896_s17 + $0x260] sm:$0xff]   ;;  %v9414_v33 = vpop.permute.xlu0 %4741 }
 0x1c7   : > { %v2369_v40 = vadd.f32 %v2368_v23, %v2331_v18  ;;  %7263 = vmatpush3.bf16.msra.mxu0 %v8245_v14  ;;  %v2365_v41 = vadd.f32 %v2364_v24, %v2328_v25  ;;  %v413_v1 = vld [vmem:[%s10007_s5 + $0x90] sm:$0xff]  ;;  %v8261_v4 = vld [vmem:[%s8896_s17 + $0x188] sm:$0xff]   ;;  %v6993_v25 = vcombine.low %v412_v59, %v420_v60  ;;  %v8269_v24 = vld [vmem:[%s8896_s17 + $0x198] sm:$0xff]  }
 0x1c8   : > { %7303 = vmatpush3.bf16.msra.mxu1 %v8246_v19  ;;  %7264 = vmatprep.subr.bf16.mxu0 %v8247_v21  ;;  %v421_v51 = vld [vmem:[%s10007_s5 + $0xd0] sm:$0xff]  ;;  %v8262_v6 = vld [vmem:[%s8896_s17 + $0x208] sm:$0xff]   ;;  %v8267_v19 = vld [vmem:[%s8896_s17 + $0x1d8] sm:$0xff]  }
 0x1c9   : > { %2366 = vadd.xlane.f32.xlu1 %v2365_v41  ;;  %7304 = vmatprep.subr.bf16.mxu1 %v8248_v22  ;;  %v2370_v46 = vadd.f32 %v2369_v40, %v2332_v26  ;;  %v6996_v0 = vcombine.high %v413_v1, %v421_v51  ;;  %v8263_v9 = vld [vmem:[%s8896_s17 + $0x1d0] sm:$0xff]   ;;  %v428_v35 = vld [vmem:[%s10007_s5 + $0x108] sm:$0xff]  ;;  %v6995_v14 = vcombine.low %v413_v1, %v421_v51  ;;  %v8268_v21 = vld [vmem:[%s8896_s17 + $0x258] sm:$0xff]  }
 0x1ca   : > { %4396 = vmatmul.mubr.bf16.gmra.mrb[108].mxu0 %v8358_v49  ;;  %v8264_v11 = vld [vmem:[%s8896_s17 + $0x250] sm:$0xff]   ;;  %v436_v13 = vld [vmem:[%s10007_s5 + $0x148] sm:$0xff]  ;;  %v8270_v26 = vld [vmem:[%s8896_s17 + $0x218] sm:$0xff]  }
 0x1cb   : > { %5894 = vmatmul.mubr.bf16.gmra.mrb[108].mxu1 %v7023_v38  ;;  %7265 = vmatpush3.bf16.msra.mxu0 %v8249_v5  ;;  %v8265_v56 = vld [vmem:[%s8896_s17 + $0x190] sm:$0xff]   ;;  %v7010_v22 = vcombine.high %v428_v35, %v436_v13  ;;  %v8271_v5 = vld [vmem:[%s8896_s17 + $0x1e0] sm:$0xff]   ;;  %v7009_v34 = vcombine.low %v428_v35, %v436_v13  ;;  %v9419_v36 = vld [vmem:[%s10007_s5 + $0x188] sm:$0xff] }
 0x1cc   : > { %7305 = vmatpush3.bf16.msra.mxu1 %v8250_v45  ;;  %2371 = vadd.xlane.f32.xlu0 %v2370_v46  ;;  %v429_v16 = vld [vmem:[%s10007_s5 + $0x110] sm:$0xff]  ;;  %v9424_v40 = vld [vmem:[%s10007_s5 + $0x1c8] sm:$0xff]  ;;  %v8273_v38 = vld [vmem:[%s8896_s17 + $0x1a0] sm:$0xff]  }
 0x1cd   : > { %7266 = vmatprep.subr.bf16.mxu0 %v8251_v47  ;;  %7306 = vmatprep.subr.bf16.mxu1 %v8252_v63  ;;  %v437_v17 = vld [vmem:[%s10007_s5 + $0x150] sm:$0xff]  ;;  %v8274_v46 = vld [vmem:[%s8896_s17 + $0x220] sm:$0xff]   ;;  %v8275_v47 = vld [vmem:[%s8896_s17 + $0x1e8] sm:$0xff]   ;;  %v7026_v49 = vcombine.high %v9419_v36, %v9424_v40 }
 0x1ce   : > { %5934 = vmatprep.mubr.bf16.mxu0 %v6978_v10  ;;  %5999 = vmatprep.mubr.bf16.mxu1 %v6980_v58  ;;  %v8266_v18 = vld [vmem:[%s8896_s17 + $0x210] sm:$0xff]   ;;  %v7012_v23 = vcombine.high %v429_v16, %v437_v17  ;;  %v7011_v41 = vcombine.low %v429_v16, %v437_v17  ;;  %v8276_v63 = vld [vmem:[%s8896_s17 + $0x268] sm:$0xff]   ;;  %v9479_v35 = vld [vmem:[%s10007_s5 + $0x60] sm:$0xff] }
 0x1cf   : > { %7267 = vmatpush3.bf16.msra.mxu0 %v8253_v52  ;;  %v9430_v39 = vld [vmem:[%s10007_s5 + $0x190] sm:$0xff]  ;;  %v8277_v58 = vld [vmem:[%s8896_s17 + $0x1a8] sm:$0xff]   ;;  %v9445_v52 = vpop.permute.xlu1 %4746 }
 0x1d0   : > { %7307 = vmatpush3.bf16.msra.mxu1 %v8254_v53  ;;  %7332 = vmatprep.subr.bf16.mxu0 %v8255_v31  ;;  %v9435_v45 = vld [vmem:[%s10007_s5 + $0x1d0] sm:$0xff]  ;;  %v9447_v53 = vpop.xlane.xlu0 %1116  ;;  %v8278_v31 = vld [vmem:[%s8896_s17 + $0x228] sm:$0xff]  }
 0x1d1   : > { %7372 = vmatprep.subr.bf16.mxu1 %v8256_v29  ;;  %v7028_v10 = vcombine.high %v9430_v39, %v9435_v45  ;;  %v8279_v29 = vld [vmem:[%s8896_s17 + $0x1f0] sm:$0xff]  }
 0x1d2   : > { %5935 = vmatmul.mubr.bf16.vlgmr.msra.gmra.mrb[112].mxu0 %v6977_v55  ;;  %v8280_v60 = vld [vmem:[%s8896_s17 + $0x270] sm:$0xff]  }
 0x1d3   : > { %6000 = vmatmul.mubr.bf16.vlgmr.msra.gmra.mrb[112].mxu1 %v6979_v37  ;;  %7333 = vmatpush3.bf16.msra.mxu0 %v8257_v20  ;;  %v9455_v37 = vld [vmem:[%s10007_s5 + $0x18] sm:$0xff]  ;;  %v8282_v17 = vld [vmem:[%s8896_s17 + $0x230] sm:$0xff]  }
 0x1d4   : > { %7373 = vmatpush3.bf16.msra.mxu1 %v8258_v15  ;;  %7334 = vmatprep.subr.bf16.mxu0 %v8259_v2  ;;  %v9460_v20 = vld [vmem:[%s10007_s5 + $0x58] sm:$0xff] }
 0x1d5   : > { %7374 = vmatprep.subr.bf16.mxu1 %v8260_v57  ;;  %5942 = vmatprep.mubr.bf16.mxu0 %v6994_v3  ;;  %v7025_v57 = vcombine.low %v9419_v36, %v9424_v40 }
 0x1d6   : > { %6007 = vmatprep.mubr.bf16.mxu1 %v6996_v0 }
 0x1d7   : > { %7335 = vmatpush3.bf16.msra.mxu0 %v8261_v4 }
 0x1d8   : > { %7375 = vmatpush3.bf16.msra.mxu1 %v8262_v6  ;;  %7336 = vmatprep.subr.bf16.mxu0 %v8263_v9  ;;  %v7027_v9 = vcombine.low %v9430_v39, %v9435_v45  ;;  %v8285_v39 = vld [vmem:[%s8896_s17 + $0x1b8] sm:$0xff]   ;;  %v9493_v45 = vpop.xlane.xlu1 %1121 }
 0x1d9   : > { %7376 = vmatprep.subr.bf16.mxu1 %v8264_v11  ;;  %v8281_v11 = vld [vmem:[%s8896_s17 + $0x1b0] sm:$0xff]  }
 0x1da   : > { %5943 = vmatmul.mubr.bf16.gmra.mrb[116].mxu0 %v6993_v25  ;;  %v9474_v25 = vld [vmem:[%s10007_s5 + $0x20] sm:$0xff] }
 0x1db   : > { %6008 = vmatmul.mubr.bf16.gmra.mrb[116].mxu1 %v6995_v14  ;;  %7337 = vmatpush3.bf16.msra.mxu0 %v8265_v56 }
 0x1dc   : > { %7377 = vmatpush3.bf16.msra.mxu1 %v8266_v18  ;;  %7338 = vmatprep.subr.bf16.mxu0 %v8267_v19  ;;  %v8283_v19 = vld [vmem:[%s8896_s17 + $0x1f8] sm:$0xff]  }
 0x1dd   : > { %7378 = vmatprep.subr.bf16.mxu1 %v8268_v21  ;;  %5950 = vmatprep.mubr.bf16.mxu0 %v7010_v22  ;;  %v6982_v21 = vcombine.high %v9455_v37, %v9460_v20 }
 0x1de   : > { %6015 = vmatprep.mubr.bf16.mxu1 %v7012_v23 }
 0x1df   : > { %7339 = vmatpush3.bf16.msra.mxu0 %v8269_v24 }
 0x1e0   : > { %7379 = vmatpush3.bf16.msra.mxu1 %v8270_v26  ;;  %7340 = vmatprep.subr.bf16.mxu0 %v8271_v5  ;;  %v8284_v5 = vld [vmem:[%s8896_s17 + $0x278] sm:$0xff]  }
 0x1e1   : > { %7380 = vmatprep.subr.bf16.mxu1 %v8272_v32 }
 0x1e2   : > { %5951 = vmatmul.mubr.bf16.gmra.mrb[120].mxu0 %v7009_v34  ;;  %v6984_v34 = vcombine.high %v9474_v25, %v9479_v35 }
 0x1e3   : > { %6016 = vmatmul.mubr.bf16.gmra.mrb[120].mxu1 %v7011_v41  ;;  %7341 = vmatpush3.bf16.msra.mxu0 %v8273_v38 }
 0x1e4   : > { %7381 = vmatpush3.bf16.msra.mxu1 %v8274_v46  ;;  %7342 = vmatprep.subr.bf16.mxu0 %v8275_v47  ;;  %v9495_v46 = vpop.xlane.xlu0 %1131  ;;  %v8286_v47 = vld [vmem:[%s8896_s17 + $0x238] sm:$0xff]  }
 0x1e5   : > { %v2799_v55 = vpop.f32.mrb[48].mxu0  ;;  %7382 = vmatprep.subr.bf16.mxu1 %v8276_v63  ;;  %v2872_v59 = vpop.f32.mrb[48].mxu1  ;;  %5958 = vmatprep.mubr.bf16.mxu0 %v7026_v49  ;;  %v8287_v63 = vld [vmem:[%s8896_s17 + $0x2c0] sm:$0xff]  }
 0x1e6   : > { %v2800_v1 = vadd.f32 %v2799_v55, %v8891_v50  ;;  %v2801_v51 = vpop.f32.mrb[49].mxu0  ;;  %v2873_v15 = vadd.f32 %v2872_v59, %v8891_v50  ;;  %v2874_v2 = vpop.f32.mrb[49].mxu1  ;;  %6023 = vmatprep.mubr.bf16.mxu1 %v7028_v10  ;;  %v8288_v55 = vld [vmem:[%s8896_s17 + $0x340] sm:$0xff]  }
 0x1e7   : > { %v2802_v3 = vadd.f32 %v2801_v51, %v8891_v50  ;;  %v2803_v0 = vpop.f32.mrb[50].mxu0  ;;  %7343 = vmatpush3.bf16.msra.mxu0 %v8277_v58  ;;  %v2875_v4 = vadd.f32 %v2874_v2, %v8891_v50  ;;  %v2876_v6 = vpop.f32.mrb[50].mxu1  ;;  %v6983_v2 = vcombine.low %v9474_v25, %v9479_v35  ;;  %v9524_v25 = vld [vmem:[%s10007_s5 + $0xa0] sm:$0xff] }
 0x1e8   : > { %v2911_v13 = vmax.f32 %v2800_v1, 0.0  ;;  %v2804_v14 = vadd.f32 %v2803_v0, %v8910_v42  ;;  %7383 = vmatpush3.bf16.msra.mxu1 %v8278_v31  ;;  %v2805_v56 = vpop.f32.mrb[51].mxu0  ;;  %v2877_v16 = vadd.f32 %v2876_v6, %v8910_v42  ;;  %7344 = vmatprep.subr.bf16.mxu0 %v8279_v29  ;;  %v2878_v18 = vpop.f32.mrb[51].mxu1  ;;  %v2913_v24 = vmax.f32 %v2873_v15, 0.0  ;;  %v9529_v35 = vld [vmem:[%s10007_s5 + $0xe0] sm:$0xff] }
 0x1e9   : > { %v2912_v22 = vmax.f32 %v2802_v3, 0.0  ;;  %v2806_v23 = vadd.f32 %v2805_v56, %v8910_v42  ;;  %7384 = vmatprep.subr.bf16.mxu1 %v8280_v60  ;;  %v2879_v26 = vadd.f32 %v2878_v18, %v8910_v42  ;;  %v2914_v41 = vmax.f32 %v2875_v4, 0.0  ;;  %v9510_v3 = vld [vmem:[%s10007_s5 + $0x98] sm:$0xff] }
 0x1ea   : > { %v2915_v32 = vmax.f32 %v2804_v14, 0.0  ;;  %5959 = vmatmul.mubr.bf16.gmra.mrb[124].mxu0 %v7025_v57  ;;  %v2917_v38 = vmax.f32 %v2877_v16, 0.0  ;;  %v6981_v15 = vcombine.low %v9455_v37, %v9460_v20  ;;  %v8289_v57 = vld [vmem:[%s8896_s17 + $0x280] sm:$0xff]  }
 0x1eb   : > { %v2943_v36 = vadd.f32 %v2912_v22, %v2911_v13  ;;  %v2916_v40 = vmax.f32 %v2806_v23, 0.0  ;;  %6024 = vmatmul.mubr.bf16.gmra.mrb[124].mxu1 %v7027_v9  ;;  %7345 = vmatpush3.bf16.msra.mxu0 %v8281_v11  ;;  %v2918_v58 = vmax.f32 %v2879_v26, 0.0  ;;  %v9519_v11 = vld [vmem:[%s10007_s5 + $0xd8] sm:$0xff]  ;;  %v8292_v26 = vld [vmem:[%s8896_s17 + $0x348] sm:$0xff]  }
 0x1ec   : > { %7385 = vmatpush3.bf16.msra.mxu1 %v8282_v17  ;;  %7346 = vmatprep.subr.bf16.mxu0 %v8283_v19  ;;  %v8290_v17 = vld [vmem:[%s8896_s17 + $0x300] sm:$0xff]  }
 0x1ed   : > { %v2948_v49 = vadd.f32 %v2916_v40, %v2915_v32  ;;  %v2944_v10 = vadd.f32 %v2943_v36, %v2913_v24  ;;  %v2809_v31 = vpop.f32.mrb[52].mxu0  ;;  %7386 = vmatprep.subr.bf16.mxu1 %v8284_v5  ;;  %v2882_v29 = vpop.f32.mrb[52].mxu1  ;;  %6064 = vmatprep.mubr.bf16.mxu0 %v6982_v21  ;;  %v8291_v24 = vld [vmem:[%s8896_s17 + $0x2c8] sm:$0xff]   ;;  %v7000_v36 = vcombine.high %v9524_v25, %v9529_v35 }
 0x1ee   : > { %v2810_v59 = vadd.f32 %v2809_v31, %v8920_v62  ;;  %v2811_v60 = vpop.f32.mrb[53].mxu0  ;;  %v2883_v1 = vadd.f32 %v2882_v29, %v8920_v62  ;;  %v2884_v51 = vpop.f32.mrb[53].mxu1  ;;  %6129 = vmatprep.mubr.bf16.mxu1 %v6984_v34  ;;  %v6998_v34 = vcombine.high %v9510_v3, %v9519_v11 }
 0x1ef   : > { %v2949_v0 = vadd.f32 %v2948_v49, %v2917_v38  ;;  %v2812_v4 = vadd.f32 %v2811_v60, %v8920_v62  ;;  %v2813_v6 = vpop.f32.mrb[54].mxu0  ;;  %7347 = vmatpush3.bf16.msra.mxu0 %v8285_v39  ;;  %v9514_v9 = vadd.f32 %v2884_v51, %v8920_v62  ;;  %v2945_v37 = vadd.f32 %v2944_v10, %v2914_v41  ;;  %v2886_v20 = vpop.f32.mrb[54].mxu1  ;;  %v8294_v10 = vld [vmem:[%s8896_s17 + $0x308] sm:$0xff]   ;;  %v8296_v51 = vld [vmem:[%s8896_s17 + $0x350] sm:$0xff]  }
 0x1f0   : > { %v2919_v13 = vmax.f32 %v2810_v59, 0.0  ;;  %v2814_v14 = vadd.f32 %v2813_v6, %v8918_v61  ;;  %7387 = vmatpush3.bf16.msra.mxu1 %v8286_v47  ;;  %v2815_v56 = vpop.f32.mrb[55].mxu0  ;;  %v2887_v16 = vadd.f32 %v2886_v20, %v8918_v61  ;;  %7412 = vmatprep.subr.bf16.mxu0 %v8287_v63  ;;  %v2888_v18 = vpop.f32.mrb[55].mxu1  ;;  %v2921_v22 = vmax.f32 %v2883_v1, 0.0  ;;  %v8293_v47 = vld [vmem:[%s8896_s17 + $0x288] sm:$0xff]   ;;  %v8297_v6 = vld [vmem:[%s8896_s17 + $0x290] sm:$0xff]  }
 0x1f1   : > { %v2920_v19 = vmax.f32 %v2812_v4, 0.0  ;;  %v2816_v21 = vadd.f32 %v2815_v56, %v8918_v61  ;;  %2946 = vadd.xlane.f32.xlu1 %v2945_v37  ;;  %7452 = vmatprep.subr.bf16.mxu1 %v8288_v55  ;;  %v2950_v23 = vadd.f32 %v2949_v0, %v2918_v58  ;;  %v2889_v32 = vadd.f32 %v2888_v18, %v8918_v61  ;;  %v9544_v63 = vpop.xlane.xlu1 %1126  ;;  %v9546_v49 = vpop.xlane.xlu0 %1141  ;;  %v8295_v58 = vld [vmem:[%s8896_s17 + $0x2d0] sm:$0xff]   ;;  %v9580_v56 = vld [vmem:[%s10007_s5 + $0x160] sm:$0xff] }
 0x1f2   : > { %v2923_v5 = vmax.f32 %v2814_v14, 0.0  ;;  %6065 = vmatmul.mubr.bf16.vlgmr.msra.gmra.mrb[128].mxu0 %v6981_v15  ;;  %v2922_v38 = vmax.f32 %v9514_v9, 0.0  ;;  %v2925_v39 = vmax.f32 %v2887_v16, 0.0  ;;  %v6997_v1 = vcombine.low %v9510_v3, %v9519_v11  ;;  %v9561_v9 = vld [vmem:[%s10007_s5 + $0x118] sm:$0xff] }
 0x1f3   : > { %v2953_v40 = vadd.f32 %v2920_v19, %v2919_v13  ;;  %v2924_v41 = vmax.f32 %v2816_v21, 0.0  ;;  %6130 = vmatmul.mubr.bf16.vlgmr.msra.gmra.mrb[128].mxu1 %v6983_v2  ;;  %7413 = vmatpush3.bf16.msra.mxu0 %v8289_v57  ;;  %v2926_v55 = vmax.f32 %v2889_v32, 0.0  ;;  %v6999_v4 = vcombine.low %v9524_v25, %v9529_v35  ;;  %v9570_v25 = vld [vmem:[%s10007_s5 + $0x158] sm:$0xff]  ;;  %v9575_v35 = vld [vmem:[%s10007_s5 + $0x120] sm:$0xff]  ;;  %v8298_v21 = vld [vmem:[%s8896_s17 + $0x310] sm:$0xff]  }
 0x1f4   : > { %7453 = vmatpush3.bf16.msra.mxu1 %v8290_v17  ;;  %2951 = vadd.xlane.f32.xlu0 %v2950_v23  ;;  %v8299_v32 = vld [vmem:[%s8896_s17 + $0x2d8] sm:$0xff]  }
 0x1f5   : > { %v2958_v31 = vadd.f32 %v2924_v41, %v2923_v5  ;;  %v2954_v29 = vadd.f32 %v2953_v40, %v2921_v22  ;;  %v2819_v59 = vpop.f32.mrb[56].mxu0  ;;  %7414 = vmatprep.subr.bf16.mxu0 %v8291_v24  ;;  %7454 = vmatprep.subr.bf16.mxu1 %v8292_v26  ;;  %v2892_v60 = vpop.f32.mrb[56].mxu1  ;;  %v7014_v41 = vcombine.high %v9561_v9, %v9570_v25 }
 0x1f6   : > { %v2820_v15 = vadd.f32 %v2819_v59, %v8956_v44  ;;  %v2821_v2 = vpop.f32.mrb[57].mxu0  ;;  %v2893_v57 = vadd.f32 %v2892_v60, %v8956_v44  ;;  %v2894_v0 = vpop.f32.mrb[57].mxu1  ;;  %6072 = vmatprep.mubr.bf16.mxu0 %v6998_v34  ;;  %6137 = vmatprep.mubr.bf16.mxu1 %v7000_v36  ;;  %v8300_v34 = vld [vmem:[%s8896_s17 + $0x358] sm:$0xff]   ;;  %v8303_v60 = vld [vmem:[%s8896_s17 + $0x2e0] sm:$0xff]  }
 0x1f7   : > { %v2959_v37 = vadd.f32 %v2958_v31, %v2925_v39  ;;  %v2822_v3 = vadd.f32 %v2821_v2, %v8956_v44  ;;  %v2823_v20 = vpop.f32.mrb[58].mxu0  ;;  %7415 = vmatpush3.bf16.msra.mxu0 %v8293_v47  ;;  %v9565_v11 = vadd.f32 %v2894_v0, %v8956_v44  ;;  %v2955_v13 = vadd.f32 %v2954_v29, %v2922_v38  ;;  %v2896_v14 = vpop.f32.mrb[58].mxu1  ;;  %v8301_v29 = vld [vmem:[%s8896_s17 + $0x298] sm:$0xff]   ;;  %v8304_v0 = vld [vmem:[%s8896_s17 + $0x360] sm:$0xff]  }
 0x1f8   : > { %v2927_v16 = vmax.f32 %v2820_v15, 0.0  ;;  %v2824_v17 = vadd.f32 %v2823_v20, %v8954_v43  ;;  %7455 = vmatpush3.bf16.msra.mxu1 %v8294_v10  ;;  %v2825_v18 = vpop.f32.mrb[59].mxu0  ;;  %v2897_v19 = vadd.f32 %v2896_v14, %v8954_v43  ;;  %7416 = vmatprep.subr.bf16.mxu0 %v8295_v58  ;;  %v2898_v22 = vpop.f32.mrb[59].mxu1  ;;  %v2929_v26 = vmax.f32 %v2893_v57, 0.0  ;;  %v8302_v59 = vld [vmem:[%s8896_s17 + $0x318] sm:$0xff]  }
 0x1f9   : > { %v2928_v23 = vmax.f32 %v2822_v3, 0.0  ;;  %v2826_v24 = vadd.f32 %v2825_v18, %v8954_v43  ;;  %2956 = vadd.xlane.f32.xlu1 %v2955_v13  ;;  %7456 = vmatprep.subr.bf16.mxu1 %v8296_v51  ;;  %v2960_v5 = vadd.f32 %v2959_v37, %v2926_v55  ;;  %v9589_v40 = vadd.f32 %v2898_v22, %v8954_v43  ;;  %v9595_v47 = vpop.xlane.xlu0 %1151  ;;  %v9599_v55 = vpop.xlane.xlu1 %1136  ;;  %v9627_v22 = vld [vmem:[%s10007_s5 + $0x1a0] sm:$0xff] }
 0x1fa   : > { %v2931_v36 = vmax.f32 %v2824_v17, 0.0  ;;  %6073 = vmatmul.mubr.bf16.gmra.mrb[132].mxu0 %v6997_v1  ;;  %v7016_v38 = vcombine.high %v9575_v35, %v9580_v56  ;;  %v2930_v58 = vmax.f32 %v9565_v11, 0.0  ;;  %v2933_v31 = vmax.f32 %v2897_v19, 0.0 }
 0x1fb   : > { %v2963_v39 = vadd.f32 %v2928_v23, %v2927_v16  ;;  %v2932_v10 = vmax.f32 %v2826_v24, 0.0  ;;  %6138 = vmatmul.mubr.bf16.gmra.mrb[132].mxu1 %v6999_v4  ;;  %7417 = vmatpush3.bf16.msra.mxu0 %v8297_v6  ;;  %v7013_v57 = vcombine.low %v9561_v9, %v9570_v25  ;;  %v9609_v4 = vld [vmem:[%s10007_s5 + $0x198] sm:$0xff]  ;;  %v2934_v37 = vmax.f32 %v9589_v40, 0.0 }
 0x1fc   : > { %7457 = vmatpush3.bf16.msra.mxu1 %v8298_v21  ;;  %2961 = vadd.xlane.f32.xlu0 %v2960_v5  ;;  %v9614_v6 = vld [vmem:[%s10007_s5 + $0x1d8] sm:$0xff]  ;;  %v7015_v13 = vcombine.low %v9575_v35, %v9580_v56  ;;  %v8305_v21 = vld [vmem:[%s8896_s17 + $0x2a0] sm:$0xff]  }
 0x1fd   : > { %v2968_v1 = vadd.f32 %v2932_v10, %v2931_v36  ;;  %v2964_v51 = vadd.f32 %v2963_v39, %v2929_v26  ;;  %v2829_v15 = vpop.f32.mrb[60].mxu0  ;;  %7418 = vmatprep.subr.bf16.mxu0 %v8299_v32  ;;  %7458 = vmatprep.subr.bf16.mxu1 %v8300_v34  ;;  %v2902_v2 = vpop.f32.mrb[60].mxu1  ;;  %v9632_v35 = vld [vmem:[%s10007_s5 + $0x1e0] sm:$0xff]  ;;  %v7030_v34 = vcombine.high %v9609_v4, %v9614_v6  ;;  %v8307_v39 = vld [vmem:[%s8896_s17 + $0x2e8] sm:$0xff]  }
 0x1fe   : > { %v2830_v3 = vadd.f32 %v2829_v15, %v9000_v12  ;;  %v2831_v20 = vpop.f32.mrb[61].mxu0  ;;  %v2903_v11 = vadd.f32 %v2902_v2, %v9000_v12  ;;  %v2904_v9 = vpop.f32.mrb[61].mxu1  ;;  %6080 = vmatprep.mubr.bf16.mxu0 %v7014_v41  ;;  %6145 = vmatprep.mubr.bf16.mxu1 %v7016_v38  ;;  %v8306_v32 = vld [vmem:[%s8896_s17 + $0x320] sm:$0xff]   ;;  %v8308_v10 = vld [vmem:[%s8896_s17 + $0x368] sm:$0xff]  }
 0x1ff   : > { %v2969_v14 = vadd.f32 %v2968_v1, %v2933_v31  ;;  %v2832_v25 = vadd.f32 %v2831_v20, %v9000_v12  ;;  %v1727_v16 = vpop.xlane.xlu0 %1726  ;;  %v2833_v17 = vpop.f32.mrb[62].mxu0  ;;  %7419 = vmatpush3.bf16.msra.mxu0 %v8301_v29  ;;  %v2905_v18 = vadd.f32 %v2904_v9, %v9000_v12  ;;  %v2965_v19 = vadd.f32 %v2964_v51, %v2930_v58  ;;  %v8311_v20 = vld [vmem:[%s8896_s17 + $0x2f0] sm:$0xff]  }
 0x200   : > { %v2935_v56 = vmax.f32 %v2830_v3, 0.0  ;;  %v9635_v23 = vadd.f32 %v1727_v16, %v9447_v53  ;;  %v2834_v24 = vadd.f32 %v2833_v17, %v9003_v30  ;;  %7459 = vmatpush3.bf16.msra.mxu1 %v8302_v59  ;;  %v2835_v26 = vpop.f32.mrb[63].mxu0  ;;  %v2906_v5 = vpop.f32.mrb[62].mxu1  ;;  %7420 = vmatprep.subr.bf16.mxu0 %v8303_v60  ;;  %v2937_v41 = vmax.f32 %v2903_v11, 0.0  ;;  %v8310_v3 = vld [vmem:[%s8896_s17 + $0x328] sm:$0xff]   ;;  %v8313_v16 = vld [vmem:[%s8896_s17 + $0x2b0] sm:$0xff]  }
 0x201   : > { %v2936_v36 = vmax.f32 %v2832_v25, 0.0  ;;  %v2836_v40 = vadd.f32 %v2835_v26, %v9003_v30  ;;  %2966 = vadd.xlane.f32.xlu1 %v2965_v19  ;;  %v2907_v38 = vadd.f32 %v2906_v5, %v9003_v30  ;;  %7460 = vmatprep.subr.bf16.mxu1 %v8304_v0  ;;  %v2908_v53 = vpop.f32.mrb[63].mxu1  ;;  %v2970_v31 = vadd.f32 %v2969_v14, %v2934_v37  ;;  %v9648_v60 = vpop.xlane.xlu1 %1146  ;;  %v8312_v25 = vld [vmem:[%s8896_s17 + $0x370] sm:$0xff]   ;;  %v8315_v5 = vld [vmem:[%s8896_s17 + $0x2f8] sm:$0xff]  }
 0x202   : > { %v2939_v58 = vmax.f32 %v2834_v24, 0.0  ;;  %6081 = vmatmul.mubr.bf16.gmra.mrb[136].mxu0 %v7013_v57  ;;  %v2909_v29 = vadd.f32 %v2908_v53, %v9003_v30  ;;  %v7032_v59 = vcombine.high %v9627_v22, %v9632_v35  ;;  %v2938_v15 = vmax.f32 %v2905_v18, 0.0  ;;  %v8309_v57 = vld [vmem:[%s8896_s17 + $0x2a8] sm:$0xff]   ;;  %v8314_v26 = vld [vmem:[%s8896_s17 + $0x330] sm:$0xff]  }
 0x203   : > { %v2973_v1 = vadd.f32 %v2936_v36, %v2935_v56  ;;  %v2940_v51 = vmax.f32 %v2836_v40, 0.0  ;;  %v2941_v2 = vmax.f32 %v2907_v38, 0.0  ;;  %6146 = vmatmul.mubr.bf16.gmra.mrb[136].mxu1 %v7015_v13  ;;  %v1732_v0 = vpop.xlane.xlu0 %1731  ;;  %7421 = vmatpush3.bf16.msra.mxu0 %v8305_v21  ;;  %v7029_v13 = vcombine.low %v9609_v4, %v9614_v6  ;;  %v408_v56 = vld [vmem:[%s10007_s5 + $0x68] sm:$0xff]  ;;  %v401_v4 = vld [vmem:[%s10007_s5 + $0x30] sm:$0xff]  ;;  %v8319_v38 = vld [vmem:[%s8896_s17 + $0x3c0] sm:$0xff]  }
 0x204   : > { %v9652_v37 = vadd.f32 %v1732_v0, %v9493_v45  ;;  %7461 = vmatpush3.bf16.msra.mxu1 %v8306_v32  ;;  %2971 = vadd.xlane.f32.xlu0 %v2970_v31  ;;  %v2942_v14 = vmax.f32 %v2909_v29, 0.0  ;;  %v400_v45 = vld [vmem:[%s10007_s5 + $0x28] sm:$0xff]  ;;  %v7031_v21 = vcombine.low %v9627_v22, %v9632_v35  ;;  %v409_v6 = vld [vmem:[%s10007_s5 + $0x70] sm:$0xff]  ;;  %v8316_v32 = vld [vmem:[%s8896_s17 + $0x378] sm:$0xff]  }
 0x205   : > { %v2978_v11 = vadd.f32 %v2940_v51, %v2939_v58  ;;  %v2974_v9 = vadd.f32 %v2973_v1, %v2937_v41  ;;  %7422 = vmatprep.subr.bf16.mxu0 %v8307_v39  ;;  %7462 = vmatprep.subr.bf16.mxu1 %v8308_v10  ;;  %v6986_v36 = vcombine.high %v400_v45, %v408_v56  ;;  %v8318_v41 = vld [vmem:[%s8896_s17 + $0x338] sm:$0xff]   ;;  %v424_v39 = vld [vmem:[%s10007_s5 + $0xe8] sm:$0xff]  ;;  %v8320_v31 = vld [vmem:[%s8896_s17 + $0x380] sm:$0xff]  }
 0x206   : > { %6088 = vmatprep.mubr.bf16.mxu0 %v7030_v34  ;;  %6153 = vmatprep.mubr.bf16.mxu1 %v7032_v59  ;;  %v6988_v40 = vcombine.high %v401_v4, %v409_v6  ;;  %v6985_v53 = vcombine.low %v400_v45, %v408_v56  ;;  %v6987_v58 = vcombine.low %v401_v4, %v409_v6  ;;  %v417_v29 = vld [vmem:[%s10007_s5 + $0xb0] sm:$0xff]  ;;  %v8321_v51 = vld [vmem:[%s8896_s17 + $0x3c8] sm:$0xff]   ;;  %v8326_v56 = vld [vmem:[%s8896_s17 + $0x398] sm:$0xff]  }
 0x207   : > { %v2979_v17 = vadd.f32 %v2978_v11, %v2941_v2  ;;  %v1737_v18 = vpop.xlane.xlu1 %1736  ;;  %7423 = vmatpush3.bf16.msra.mxu0 %v8309_v57  ;;  %v2975_v19 = vadd.f32 %v2974_v9, %v2938_v15  ;;  %v425_v59 = vld [vmem:[%s10007_s5 + $0xf0] sm:$0xff]  ;;  %v440_v9 = vld [vmem:[%s10007_s5 + $0x168] sm:$0xff]  ;;  %v8327_v4 = vld [vmem:[%s8896_s17 + $0x3e0] sm:$0xff]  }
 0x208   : > { %v9675_v24 = vadd.f32 %v1737_v18, %v9544_v63  ;;  %7463 = vmatpush3.bf16.msra.mxu1 %v8310_v3  ;;  %7424 = vmatprep.subr.bf16.mxu0 %v8311_v20  ;;  %v8317_v63 = vld [vmem:[%s8896_s17 + $0x2b8] sm:$0xff]   ;;  %v7004_v57 = vcombine.high %v417_v29, %v425_v59  ;;  %v8322_v3 = vld [vmem:[%s8896_s17 + $0x388] sm:$0xff]   ;;  %v8323_v20 = vld [vmem:[%s8896_s17 + $0x3d0] sm:$0xff]  }
 0x209   : > { %v1742_v22 = vpop.xlane.xlu0 %1741  ;;  %2976 = vadd.xlane.f32.xlu1 %v2975_v19  ;;  %7464 = vmatprep.subr.bf16.mxu1 %v8312_v25  ;;  %v2980_v35 = vadd.f32 %v2979_v17, %v2942_v14  ;;  %v7003_v25 = vcombine.low %v417_v29, %v425_v59  ;;  %v441_v45 = vld [vmem:[%s10007_s5 + $0x170] sm:$0xff]  ;;  %v8325_v17 = vld [vmem:[%s8896_s17 + $0x3d8] sm:$0xff]  }
 0x20a   : > { %v9681_v34 = vadd.f32 %v1742_v22, %v9495_v46  ;;  %6089 = vmatmul.mubr.bf16.gmra.mrb[140].mxu0 %v7029_v13  ;;  %v416_v46 = vld [vmem:[%s10007_s5 + $0xa8] sm:$0xff]  ;;  %v8324_v13 = vld [vmem:[%s8896_s17 + $0x390] sm:$0xff]  }
 0x20b   : > { %6154 = vmatmul.mubr.bf16.gmra.mrb[140].mxu1 %v7031_v21  ;;  %7425 = vmatpush3.bf16.msra.mxu0 %v8313_v16  ;;  %v7002_v2 = vcombine.high %v416_v46, %v424_v39  ;;  %v7001_v11 = vcombine.low %v416_v46, %v424_v39  ;;  %v433_v16 = vld [vmem:[%s10007_s5 + $0x130] sm:$0xff]  ;;  %v9749_v39 = vld [vmem:[%s10007_s5 + $0x38] sm:$0xff] }
 0x20c   : > { %7465 = vmatpush3.bf16.msra.mxu1 %v8314_v26  ;;  %2981 = vadd.xlane.f32.xlu0 %v2980_v35  ;;  %v7020_v21 = vcombine.high %v433_v16, %v441_v45  ;;  %v448_v26 = vld [vmem:[%s10007_s5 + $0x1a8] sm:$0xff]  ;;  %v7019_v22 = vcombine.low %v433_v16, %v441_v45  ;;  %v8328_v35 = vld [vmem:[%s8896_s17 + $0x3a0] sm:$0xff]  }
 0x20d   : > { %7426 = vmatprep.subr.bf16.mxu0 %v8315_v5  ;;  %7466 = vmatprep.subr.bf16.mxu1 %v8316_v32  ;;  %v449_v5 = vld [vmem:[%s10007_s5 + $0x1b0] sm:$0xff] }
 0x20e   : > { %6194 = vmatprep.mubr.bf16.mxu0 %v6986_v36  ;;  %6259 = vmatprep.mubr.bf16.mxu1 %v6988_v40  ;;  %v457_v32 = vld [vmem:[%s10007_s5 + $0x1f0] sm:$0xff]  ;;  %v8329_v36 = vld [vmem:[%s8896_s17 + $0x3e8] sm:$0xff]  }
 0x20f   : > { %v1747_v10 = vpop.xlane.xlu1 %1746  ;;  %7427 = vmatpush3.bf16.msra.mxu0 %v8317_v63  ;;  %v7036_v63 = vcombine.high %v449_v5, %v457_v32 }
 0x210   : > { %v9700_v1 = vadd.f32 %v1747_v10, %v9599_v55  ;;  %7467 = vmatpush3.bf16.msra.mxu1 %v8318_v41  ;;  %7492 = vmatprep.subr.bf16.mxu0 %v8319_v38  ;;  %v8330_v41 = vld [vmem:[%s8896_s17 + $0x3a8] sm:$0xff]   ;;  %v9754_v10 = vld [vmem:[%s10007_s5 + $0x78] sm:$0xff] }
 0x211   : > { %v1752_v15 = vpop.xlane.xlu0 %1751  ;;  %7572 = vmatprep.subr.bf16.mxu1 %v8319_v38  ;;  %v8331_v38 = vld [vmem:[%s8896_s17 + $0x3f0] sm:$0xff]  }
 0x212   : > { %v9704_v0 = vadd.f32 %v1752_v15, %v9546_v49  ;;  %6195 = vmatmul.mubr.bf16.vlgmr.msra.gmra.mrb[144].mxu0 %v6985_v53  ;;  %v432_v49 = vld [vmem:[%s10007_s5 + $0x128] sm:$0xff] }
 0x213   : > { %6260 = vmatmul.mubr.bf16.vlgmr.msra.gmra.mrb[144].mxu1 %v6987_v58  ;;  %7493 = vmatpush3.bf16.msra.mxu0 %v8320_v31  ;;  %v7017_v6 = vcombine.low %v432_v49, %v440_v9 }
 0x214   : > { %7580 = vmatpush3.bf16.msra.mxu1 %v8320_v31  ;;  %7494 = vmatprep.subr.bf16.mxu0 %v8321_v51 }
 0x215   : > { %7573 = vmatprep.subr.bf16.mxu1 %v8321_v51  ;;  %6202 = vmatprep.mubr.bf16.mxu0 %v7002_v2 }
 0x216   : > { %v1757_v55 = vpop.xlane.xlu1 %1756  ;;  %6267 = vmatprep.mubr.bf16.mxu1 %v7004_v57 }
 0x217   : > { %v9715_v14 = vadd.f32 %v1757_v55, %v9648_v60  ;;  %7495 = vmatpush3.bf16.msra.mxu0 %v8322_v3  ;;  %v7018_v60 = vcombine.high %v432_v49, %v440_v9  ;;  %v8332_v55 = vld [vmem:[%s8896_s17 + $0x3b0] sm:$0xff]   ;;  %v9769_v49 = vld [vmem:[%s10007_s5 + $0x178] sm:$0xff] }
 0x218   : > { %7581 = vmatpush3.bf16.msra.mxu1 %v8322_v3  ;;  %7496 = vmatprep.subr.bf16.mxu0 %v8323_v20 }
 0x219   : > { %v1762_v18 = vpop.xlane.xlu0 %1761  ;;  %7574 = vmatprep.subr.bf16.mxu1 %v8323_v20  ;;  %v7035_v20 = vcombine.low %v449_v5, %v457_v32  ;;  %v8334_v32 = vld [vmem:[%s8896_s17 + $0x3b8] sm:$0xff]  }
 0x21a   : > { %v9726_v19 = vadd.f32 %v1762_v18, %v9595_v47  ;;  %6203 = vmatmul.mubr.bf16.gmra.mrb[148].mxu0 %v7001_v11  ;;  %v456_v47 = vld [vmem:[%s10007_s5 + $0x1e8] sm:$0xff]  ;;  %v9764_v11 = vld [vmem:[%s10007_s5 + $0x138] sm:$0xff]  ;;  %v6990_v18 = vcombine.high %v9749_v39, %v9754_v10 }
 0x21b   : > { %6268 = vmatmul.mubr.bf16.gmra.mrb[148].mxu1 %v7003_v25  ;;  %7497 = vmatpush3.bf16.msra.mxu0 %v8324_v13  ;;  %v7034_v40 = vcombine.high %v448_v26, %v456_v47  ;;  %v7033_v51 = vcombine.low %v448_v26, %v456_v47  ;;  %v7022_v26 = vcombine.high %v9764_v11, %v9769_v49 }
 0x21c   : > { %7582 = vmatpush3.bf16.msra.mxu1 %v8324_v13  ;;  %7498 = vmatprep.subr.bf16.mxu0 %v8325_v17 }
 0x21d   : > { %7575 = vmatprep.subr.bf16.mxu1 %v8325_v17  ;;  %6210 = vmatprep.mubr.bf16.mxu0 %v7018_v60  ;;  %v8333_v17 = vld [vmem:[%s8896_s17 + $0x3f8] sm:$0xff]  }
 0x21e   : > { %6275 = vmatprep.mubr.bf16.mxu1 %v7020_v21 }
 0x21f   : > { %7499 = vmatpush3.bf16.msra.mxu0 %v8326_v56 }
 0x220   : > { %7583 = vmatpush3.bf16.msra.mxu1 %v8326_v56  ;;  %7500 = vmatprep.subr.bf16.mxu0 %v8327_v4 }
 0x221   : > { %7576 = vmatprep.subr.bf16.mxu1 %v8327_v4 }
 0x222   : > { %6211 = vmatmul.mubr.bf16.gmra.mrb[152].mxu0 %v7017_v6 }
 0x223   : > { %6276 = vmatmul.mubr.bf16.gmra.mrb[152].mxu1 %v7019_v22  ;;  %7501 = vmatpush3.bf16.msra.mxu0 %v8328_v35 }
 0x224   : > { %7584 = vmatpush3.bf16.msra.mxu1 %v8328_v35  ;;  %7502 = vmatprep.subr.bf16.mxu0 %v8329_v36 }
 0x225   : > { %v3409_v53 = vpop.f32.mrb[64].mxu0  ;;  %7577 = vmatprep.subr.bf16.mxu1 %v8329_v36  ;;  %v3482_v46 = vpop.f32.mrb[64].mxu1  ;;  %6218 = vmatprep.mubr.bf16.mxu0 %v7034_v40  ;;  %v9784_v36 = vld [vmem:[%s10007_s5 + $0xb8] sm:$0xff] }
 0x226   : > { %v3410_v58 = vadd.f32 %v3409_v53, %v8891_v50  ;;  %v3411_v31 = vpop.f32.mrb[65].mxu0  ;;  %v3483_v29 = vadd.f32 %v3482_v46, %v8891_v50  ;;  %v3484_v59 = vpop.f32.mrb[65].mxu1  ;;  %6283 = vmatprep.mubr.bf16.mxu1 %v7036_v63  ;;  %v9789_v40 = vld [vmem:[%s10007_s5 + $0xf8] sm:$0xff] }
 0x227   : > { %v3412_v15 = vadd.f32 %v3411_v31, %v8891_v50  ;;  %v3413_v2 = vpop.f32.mrb[66].mxu0  ;;  %7503 = vmatpush3.bf16.msra.mxu0 %v8330_v41  ;;  %v3485_v57 = vadd.f32 %v3484_v59, %v8891_v50  ;;  %v3486_v3 = vpop.f32.mrb[66].mxu1  ;;  %v9796_v31 = vld [vmem:[%s10007_s5 + $0x1b8] sm:$0xff] }
 0x228   : > { %v3521_v9 = vmax.f32 %v3410_v58, 0.0  ;;  %v3414_v25 = vadd.f32 %v3413_v2, %v8910_v42  ;;  %7585 = vmatpush3.bf16.msra.mxu1 %v8330_v41  ;;  %v3415_v13 = vpop.f32.mrb[67].mxu0  ;;  %v3487_v16 = vadd.f32 %v3486_v3, %v8910_v42  ;;  %7504 = vmatprep.subr.bf16.mxu0 %v8331_v38  ;;  %v3488_v45 = vpop.f32.mrb[67].mxu1  ;;  %v3523_v56 = vmax.f32 %v3483_v29, 0.0  ;;  %v9801_v29 = vld [vmem:[%s10007_s5 + $0x1f8] sm:$0xff] }
 0x229   : > { %v3522_v60 = vmax.f32 %v3412_v15, 0.0  ;;  %v3416_v21 = vadd.f32 %v3415_v13, %v8910_v42  ;;  %7578 = vmatprep.subr.bf16.mxu1 %v8331_v38  ;;  %v3489_v4 = vadd.f32 %v3488_v45, %v8910_v42  ;;  %v3524_v35 = vmax.f32 %v3485_v57, 0.0 }
 0x22a   : > { %v3525_v6 = vmax.f32 %v3414_v25, 0.0  ;;  %6219 = vmatmul.mubr.bf16.gmra.mrb[156].mxu0 %v7033_v51  ;;  %v3527_v5 = vmax.f32 %v3487_v16, 0.0  ;;  %v6989_v58 = vcombine.low %v9749_v39, %v9754_v10  ;;  %v7021_v39 = vcombine.low %v9764_v11, %v9769_v49 }
 0x22b   : > { %v3553_v47 = vadd.f32 %v3522_v60, %v3521_v9  ;;  %v3526_v22 = vmax.f32 %v3416_v21, 0.0  ;;  %6284 = vmatmul.mubr.bf16.gmra.mrb[156].mxu1 %v7035_v20  ;;  %7505 = vmatpush3.bf16.msra.mxu0 %v8332_v55  ;;  %v3528_v38 = vmax.f32 %v3489_v4, 0.0  ;;  %v7006_v10 = vcombine.high %v9784_v36, %v9789_v40 }
 0x22c   : > { %7586 = vmatpush3.bf16.msra.mxu1 %v8332_v55  ;;  %7506 = vmatprep.subr.bf16.mxu0 %v8333_v17 }
 0x22d   : > { %v3558_v63 = vadd.f32 %v3526_v22, %v3525_v6  ;;  %v3554_v41 = vadd.f32 %v3553_v47, %v3523_v56  ;;  %v3419_v53 = vpop.f32.mrb[68].mxu0  ;;  %7579 = vmatprep.subr.bf16.mxu1 %v8333_v17  ;;  %v3492_v46 = vpop.f32.mrb[68].mxu1  ;;  %6324 = vmatprep.mubr.bf16.mxu0 %v6990_v18  ;;  %v7038_v17 = vcombine.high %v9796_v31, %v9801_v29 }
 0x22e   : > { %v3420_v59 = vadd.f32 %v3419_v53, %v8920_v62  ;;  %v3421_v51 = vpop.f32.mrb[69].mxu0  ;;  %v3493_v15 = vadd.f32 %v3492_v46, %v8920_v62  ;;  %v3494_v2 = vpop.f32.mrb[69].mxu1  ;;  %6340 = vmatprep.mubr.bf16.mxu1 %v7022_v26 }
 0x22f   : > { %v3559_v57 = vadd.f32 %v3558_v63, %v3527_v5  ;;  %v3422_v3 = vadd.f32 %v3421_v51, %v8920_v62  ;;  %v3423_v20 = vpop.f32.mrb[70].mxu0  ;;  %7507 = vmatpush3.bf16.msra.mxu0 %v8334_v32  ;;  %v3495_v55 = vadd.f32 %v3494_v2, %v8920_v62  ;;  %v3555_v9 = vadd.f32 %v3554_v41, %v3524_v35  ;;  %v3496_v25 = vpop.f32.mrb[70].mxu1 }
 0x230   : > { %v3529_v13 = vmax.f32 %v3420_v59, 0.0  ;;  %v3424_v16 = vadd.f32 %v3423_v20, %v8918_v61  ;;  %7587 = vmatpush3.bf16.msra.mxu1 %v8334_v32  ;;  %v3425_v45 = vpop.f32.mrb[71].mxu0  ;;  %v3497_v11 = vadd.f32 %v3496_v25, %v8918_v61  ;;  %v3498_v49 = vpop.f32.mrb[71].mxu1  ;;  %v3531_v21 = vmax.f32 %v3493_v15, 0.0 }
 0x231   : > { %v3530_v18 = vmax.f32 %v3422_v3, 0.0  ;;  %v3426_v60 = vadd.f32 %v3425_v45, %v8918_v61  ;;  %3556 = vadd.xlane.f32.xlu1 %v3555_v9  ;;  %v3560_v56 = vadd.f32 %v3559_v57, %v3528_v38  ;;  %v3499_v6 = vadd.f32 %v3498_v49, %v8918_v61 }
 0x232   : > { %v3533_v4 = vmax.f32 %v3424_v16, 0.0  ;;  %6325 = vmatmul.mubr.bf16.vlgmr.msra.gmra.mrb[160].mxu0 %v6989_v58  ;;  %v3532_v22 = vmax.f32 %v3495_v55, 0.0  ;;  %v3535_v35 = vmax.f32 %v3497_v11, 0.0  ;;  %v7005_v51 = vcombine.low %v9784_v36, %v9789_v40 }
 0x233   : > { %v3563_v26 = vadd.f32 %v3530_v18, %v3529_v13  ;;  %v3534_v47 = vmax.f32 %v3426_v60, 0.0  ;;  %6341 = vmatmul.mubr.bf16.vlgmr.msra.gmra.mrb[160].mxu1 %v7021_v39  ;;  %3561 = vadd.xlane.f32.xlu0 %v3560_v56  ;;  %v3536_v63 = vmax.f32 %v3499_v6, 0.0  ;;  %v7037_v15 = vcombine.low %v9796_v31, %v9801_v29 }
 0x234   : > { %6332 = vmatprep.mubr.bf16.mxu0 %v7006_v10  ;;  %6348 = vmatprep.mubr.bf16.mxu1 %v7038_v17 }
 0x235   : > { %v3568_v5 = vadd.f32 %v3534_v47, %v3533_v4  ;;  %v3564_v32 = vadd.f32 %v3563_v26, %v3531_v21  ;;  %v3429_v41 = vpop.f32.mrb[72].mxu0  ;;  %v3502_v53 = vpop.f32.mrb[72].mxu1 }
 0x236   : > { %v3430_v46 = vadd.f32 %v3429_v41, %v8956_v44  ;;  %v3431_v38 = vpop.f32.mrb[73].mxu0  ;;  %v3503_v58 = vadd.f32 %v3502_v53, %v8956_v44  ;;  %v3504_v59 = vpop.f32.mrb[73].mxu1 }
 0x237   : > { %v3569_v2 = vadd.f32 %v3568_v5, %v3535_v35  ;;  %v3432_v39 = vadd.f32 %v3431_v38, %v8956_v44  ;;  %v3433_v10 = vpop.f32.mrb[74].mxu0  ;;  %v3505_v57 = vadd.f32 %v3504_v59, %v8956_v44  ;;  %v3565_v3 = vadd.f32 %v3564_v32, %v3532_v22  ;;  %v3506_v20 = vpop.f32.mrb[74].mxu1 }
 0x238   : > { %v3537_v55 = vmax.f32 %v3430_v46, 0.0  ;;  %v3434_v9 = vadd.f32 %v3433_v10, %v8954_v43  ;;  %v3435_v25 = vpop.f32.mrb[75].mxu0  ;;  %v3507_v13 = vadd.f32 %v3506_v20, %v8954_v43  ;;  %v3508_v16 = vpop.f32.mrb[75].mxu1  ;;  %v3539_v40 = vmax.f32 %v3503_v58, 0.0 }
 0x239   : > { %v3538_v45 = vmax.f32 %v3432_v39, 0.0  ;;  %v3436_v36 = vadd.f32 %v3435_v25, %v8954_v43  ;;  %3566 = vadd.xlane.f32.xlu1 %v3565_v3  ;;  %v3570_v31 = vadd.f32 %v3569_v2, %v3536_v63  ;;  %v3509_v11 = vadd.f32 %v3508_v16, %v8954_v43 }
 0x23a   : > { %v3541_v29 = vmax.f32 %v3434_v9, 0.0  ;;  %6333 = vmatmul.mubr.bf16.gmra.mrb[164].mxu0 %v7005_v51  ;;  %v3540_v18 = vmax.f32 %v3505_v57, 0.0  ;;  %v3543_v60 = vmax.f32 %v3507_v13, 0.0 }
 0x23b   : > { %v3573_v49 = vadd.f32 %v3538_v45, %v3537_v55  ;;  %v3542_v17 = vmax.f32 %v3436_v36, 0.0  ;;  %6349 = vmatmul.mubr.bf16.gmra.mrb[164].mxu1 %v7037_v15  ;;  %3571 = vadd.xlane.f32.xlu0 %v3570_v31  ;;  %v3544_v26 = vmax.f32 %v3509_v11, 0.0 }
 0x23d   : > { %v3578_v21 = vadd.f32 %v3542_v17, %v3541_v29  ;;  %v3574_v56 = vadd.f32 %v3573_v49, %v3539_v40  ;;  %v3439_v4 = vpop.f32.mrb[76].mxu0  ;;  %v3512_v6 = vpop.f32.mrb[76].mxu1 }
 0x23e   : > { %v3440_v47 = vadd.f32 %v3439_v4, %v9000_v12  ;;  %v3441_v22 = vpop.f32.mrb[77].mxu0  ;;  %v3513_v35 = vadd.f32 %v3512_v6, %v9000_v12  ;;  %v3514_v5 = vpop.f32.mrb[77].mxu1 }
 0x23f   : > { %v3579_v32 = vadd.f32 %v3578_v21, %v3543_v60  ;;  %v3442_v63 = vadd.f32 %v3441_v22, %v9000_v12  ;;  %v2337_v41 = vpop.xlane.xlu1 %2336  ;;  %v3443_v53 = vpop.f32.mrb[78].mxu0  ;;  %v3515_v46 = vadd.f32 %v3514_v5, %v9000_v12  ;;  %v3575_v38 = vadd.f32 %v3574_v56, %v3540_v18 }
 0x240   : > { %v3545_v58 = vmax.f32 %v3440_v47, 0.0  ;;  %v9834_v59 = vadd.f32 %v2337_v41, %v9635_v23  ;;  %v3444_v51 = vadd.f32 %v3443_v53, %v9003_v30  ;;  %v3445_v15 = vpop.f32.mrb[79].mxu0  ;;  %v3516_v2 = vpop.f32.mrb[78].mxu1  ;;  %v3547_v57 = vmax.f32 %v3513_v35, 0.0 }
 0x241   : > { %v3546_v39 = vmax.f32 %v3442_v63, 0.0  ;;  %v3446_v10 = vadd.f32 %v3445_v15, %v9003_v30  ;;  %v2342_v3 = vpop.xlane.xlu0 %2341  ;;  %3576 = vadd.xlane.f32.xlu1 %v3575_v38  ;;  %v3517_v20 = vadd.f32 %v3516_v2, %v9003_v30  ;;  %v3518_v55 = vpop.f32.mrb[79].mxu1  ;;  %v3580_v13 = vadd.f32 %v3579_v32, %v3544_v26 }
 0x242   : > { %v3549_v9 = vmax.f32 %v3444_v51, 0.0  ;;  %v9840_v25 = vadd.f32 %v2342_v3, %v9652_v37  ;;  %v3519_v23 = vadd.f32 %v3518_v55, %v9003_v30  ;;  %v3548_v36 = vmax.f32 %v3515_v46, 0.0 }
 0x243   : > { %v3583_v16 = vadd.f32 %v3546_v39, %v3545_v58  ;;  %v3550_v45 = vmax.f32 %v3446_v10, 0.0  ;;  %v3551_v40 = vmax.f32 %v3517_v20, 0.0  ;;  %3581 = vadd.xlane.f32.xlu0 %v3580_v13 }
 0x244   : > { %v3552_v11 = vmax.f32 %v3519_v23, 0.0 }
 0x245   : > { %v3588_v31 = vadd.f32 %v3550_v45, %v3549_v9  ;;  %v3584_v29 = vadd.f32 %v3583_v16, %v3547_v57 }
 0x246   : > { %v2347_v49 = vpop.xlane.xlu1 %2346 }
 0x247   : > { %v3589_v17 = vadd.f32 %v3588_v31, %v3551_v40  ;;  %v9844_v18 = vadd.f32 %v2347_v49, %v9675_v24  ;;  %v3585_v60 = vadd.f32 %v3584_v29, %v3548_v36 }
 0x249   : > { %v2352_v21 = vpop.xlane.xlu0 %2351  ;;  %3586 = vadd.xlane.f32.xlu1 %v3585_v60  ;;  %v3590_v37 = vadd.f32 %v3589_v17, %v3552_v11 }
 0x24a   : > { %v9847_v56 = vadd.f32 %v2352_v21, %v9681_v34 }
 0x24b   : > { %3591 = vadd.xlane.f32.xlu0 %v3590_v37 }
 0x24e   : > { %v2357_v4 = vpop.xlane.xlu1 %2356 }
 0x24f   : > { %v9850_v6 = vadd.f32 %v2357_v4, %v9700_v1 }
 0x251   : > { %v2362_v26 = vpop.xlane.xlu0 %2361 }
 0x252   : > { %v9853_v47 = vadd.f32 %v2362_v26, %v9704_v0 }
 0x256   : > { %v2367_v22 = vpop.xlane.xlu1 %2366 }
 0x257   : > { %v9856_v24 = vadd.f32 %v2367_v22, %v9715_v14 }
 0x259   : > { %v2372_v35 = vpop.xlane.xlu0 %2371 }
 0x25a   : > { %v9859_v5 = vadd.f32 %v2372_v35, %v9726_v19 }
 0x265   : > { %v4019_v32 = vpop.f32.mrb[80].mxu0  ;;  %v4092_v34 = vpop.f32.mrb[80].mxu1 }
 0x266   : > { %v4020_v63 = vadd.f32 %v4019_v32, %v8891_v50  ;;  %v4021_v41 = vpop.f32.mrb[81].mxu0  ;;  %v4093_v1 = vadd.f32 %v4092_v34, %v8891_v50  ;;  %v4094_v53 = vpop.f32.mrb[81].mxu1 }
 0x267   : > { %v4022_v46 = vadd.f32 %v4021_v41, %v8891_v50  ;;  %v4023_v0 = vpop.f32.mrb[82].mxu0  ;;  %v4095_v38 = vadd.f32 %v4094_v53, %v8891_v50  ;;  %v4096_v58 = vpop.f32.mrb[82].mxu1 }
 0x268   : > { %v4131_v14 = vmax.f32 %v4020_v63, 0.0  ;;  %v4024_v51 = vadd.f32 %v4023_v0, %v8910_v42  ;;  %v4025_v15 = vpop.f32.mrb[83].mxu0  ;;  %v4097_v19 = vadd.f32 %v4096_v58, %v8910_v42  ;;  %v4098_v2 = vpop.f32.mrb[83].mxu1  ;;  %v4133_v57 = vmax.f32 %v4093_v1, 0.0 }
 0x269   : > { %v4132_v39 = vmax.f32 %v4022_v46, 0.0  ;;  %v4026_v10 = vadd.f32 %v4025_v15, %v8910_v42  ;;  %v4099_v3 = vadd.f32 %v4098_v2, %v8910_v42  ;;  %v4134_v13 = vmax.f32 %v4095_v38, 0.0 }
 0x26a   : > { %v4135_v20 = vmax.f32 %v4024_v51, 0.0  ;;  %v4137_v23 = vmax.f32 %v4097_v19, 0.0 }
 0x26b   : > { %v4163_v55 = vadd.f32 %v4132_v39, %v4131_v14  ;;  %v4136_v9 = vmax.f32 %v4026_v10, 0.0  ;;  %v4138_v36 = vmax.f32 %v4099_v3, 0.0 }
 0x26d   : > { %v4168_v16 = vadd.f32 %v4136_v9, %v4135_v20  ;;  %v4164_v45 = vadd.f32 %v4163_v55, %v4133_v57  ;;  %v4029_v40 = vpop.f32.mrb[84].mxu0  ;;  %v4102_v31 = vpop.f32.mrb[84].mxu1 }
 0x26e   : > { %v4030_v29 = vadd.f32 %v4029_v40, %v8920_v62  ;;  %v4031_v11 = vpop.f32.mrb[85].mxu0  ;;  %v4103_v49 = vadd.f32 %v4102_v31, %v8920_v62  ;;  %v4104_v17 = vpop.f32.mrb[85].mxu1 }
 0x26f   : > { %v4169_v60 = vadd.f32 %v4168_v16, %v4137_v23  ;;  %v4032_v21 = vadd.f32 %v4031_v11, %v8920_v62  ;;  %v4033_v37 = vpop.f32.mrb[86].mxu0  ;;  %v4105_v4 = vadd.f32 %v4104_v17, %v8920_v62  ;;  %v4165_v26 = vadd.f32 %v4164_v45, %v4134_v13  ;;  %v4106_v22 = vpop.f32.mrb[86].mxu1 }
 0x270   : > { %v4139_v35 = vmax.f32 %v4030_v29, 0.0  ;;  %v4034_v32 = vadd.f32 %v4033_v37, %v8918_v61  ;;  %v4035_v34 = vpop.f32.mrb[87].mxu0  ;;  %v4107_v63 = vadd.f32 %v4106_v22, %v8918_v61  ;;  %v4108_v41 = vpop.f32.mrb[87].mxu1  ;;  %v4141_v46 = vmax.f32 %v4103_v49, 0.0 }
 0x271   : > { %v4140_v1 = vmax.f32 %v4032_v21, 0.0  ;;  %v4036_v53 = vadd.f32 %v4035_v34, %v8918_v61  ;;  %4166 = vadd.xlane.f32.xlu1 %v4165_v26  ;;  %v4170_v0 = vadd.f32 %v4169_v60, %v4138_v36  ;;  %v4109_v58 = vadd.f32 %v4108_v41, %v8918_v61 }
 0x272   : > { %v4143_v38 = vmax.f32 %v4034_v32, 0.0  ;;  %v4142_v15 = vmax.f32 %v4105_v4, 0.0  ;;  %v4145_v19 = vmax.f32 %v4107_v63, 0.0 }
 0x273   : > { %v4173_v14 = vadd.f32 %v4140_v1, %v4139_v35  ;;  %v4144_v51 = vmax.f32 %v4036_v53, 0.0  ;;  %4171 = vadd.xlane.f32.xlu0 %v4170_v0  ;;  %v4146_v10 = vmax.f32 %v4109_v58, 0.0 }
 0x275   : > { %v4178_v2 = vadd.f32 %v4144_v51, %v4143_v38  ;;  %v4174_v39 = vadd.f32 %v4173_v14, %v4141_v46  ;;  %v4039_v57 = vpop.f32.mrb[88].mxu0  ;;  %v4112_v3 = vpop.f32.mrb[88].mxu1 }
 0x276   : > { %v4040_v20 = vadd.f32 %v4039_v57, %v8956_v44  ;;  %v4041_v55 = vpop.f32.mrb[89].mxu0  ;;  %v4113_v9 = vadd.f32 %v4112_v3, %v8956_v44  ;;  %v4114_v13 = vpop.f32.mrb[89].mxu1 }
 0x277   : > { %v4179_v23 = vadd.f32 %v4178_v2, %v4145_v19  ;;  %v4042_v16 = vadd.f32 %v4041_v55, %v8956_v44  ;;  %v4043_v45 = vpop.f32.mrb[90].mxu0  ;;  %v4115_v36 = vadd.f32 %v4114_v13, %v8956_v44  ;;  %v4175_v40 = vadd.f32 %v4174_v39, %v4142_v15  ;;  %v4116_v31 = vpop.f32.mrb[90].mxu1 }
 0x278   : > { %v4147_v29 = vmax.f32 %v4040_v20, 0.0  ;;  %v4044_v11 = vadd.f32 %v4043_v45, %v8954_v43  ;;  %v4045_v49 = vpop.f32.mrb[91].mxu0  ;;  %v4117_v17 = vadd.f32 %v4116_v31, %v8954_v43  ;;  %v4118_v60 = vpop.f32.mrb[91].mxu1  ;;  %v4149_v4 = vmax.f32 %v4113_v9, 0.0 }
 0x279   : > { %v4148_v21 = vmax.f32 %v4042_v16, 0.0  ;;  %v4046_v37 = vadd.f32 %v4045_v49, %v8954_v43  ;;  %4176 = vadd.xlane.f32.xlu1 %v4175_v40  ;;  %v4180_v26 = vadd.f32 %v4179_v23, %v4146_v10  ;;  %v4119_v35 = vadd.f32 %v4118_v60, %v8954_v43 }
 0x27a   : > { %v4151_v22 = vmax.f32 %v4044_v11, 0.0  ;;  %v4150_v63 = vmax.f32 %v4115_v36, 0.0  ;;  %v4153_v41 = vmax.f32 %v4117_v17, 0.0 }
 0x27b   : > { %v4183_v32 = vadd.f32 %v4148_v21, %v4147_v29  ;;  %v4152_v34 = vmax.f32 %v4046_v37, 0.0  ;;  %4181 = vadd.xlane.f32.xlu0 %v4180_v26  ;;  %v4154_v46 = vmax.f32 %v4119_v35, 0.0 }
 0x27d   : > { %v4188_v1 = vadd.f32 %v4152_v34, %v4151_v22  ;;  %v4184_v53 = vadd.f32 %v4183_v32, %v4149_v4  ;;  %v4049_v0 = vpop.f32.mrb[92].mxu0  ;;  %v4122_v38 = vpop.f32.mrb[92].mxu1 }
 0x27e   : > { %v4050_v58 = vadd.f32 %v4049_v0, %v9000_v12  ;;  %v4051_v14 = vpop.f32.mrb[93].mxu0  ;;  %v4123_v51 = vadd.f32 %v4122_v38, %v9000_v12  ;;  %v4124_v39 = vpop.f32.mrb[93].mxu1 }
 0x27f   : > { %v4189_v15 = vadd.f32 %v4188_v1, %v4153_v41  ;;  %v4052_v19 = vadd.f32 %v4051_v14, %v9000_v12  ;;  %v4053_v2 = vpop.f32.mrb[94].mxu0  ;;  %v4185_v10 = vadd.f32 %v4184_v53, %v4150_v63  ;;  %v4125_v9 = vadd.f32 %v4124_v39, %v9000_v12  ;;  %v4126_v13 = vpop.f32.mrb[94].mxu1 }
 0x280   : > { %v4155_v57 = vmax.f32 %v4050_v58, 0.0  ;;  %v4054_v3 = vadd.f32 %v4053_v2, %v9003_v30  ;;  %v4055_v20 = vpop.f32.mrb[95].mxu0  ;;  %v4157_v55 = vmax.f32 %v4123_v51, 0.0  ;;  %v4127_v45 = vadd.f32 %v4126_v13, %v9003_v30  ;;  %v4128_v40 = vpop.f32.mrb[95].mxu1 }
 0x281   : > { %v4156_v23 = vmax.f32 %v4052_v19, 0.0  ;;  %v4056_v16 = vadd.f32 %v4055_v20, %v9003_v30  ;;  %4186 = vadd.xlane.f32.xlu1 %v4185_v10  ;;  %v4190_v36 = vadd.f32 %v4189_v15, %v4154_v46  ;;  %v4129_v29 = vadd.f32 %v4128_v40, %v9003_v30 }
 0x282   : > { %v4159_v31 = vmax.f32 %v4054_v3, 0.0  ;;  %v4158_v17 = vmax.f32 %v4125_v9, 0.0  ;;  %v4161_v60 = vmax.f32 %v4127_v45, 0.0 }
 0x283   : > { %v4193_v11 = vadd.f32 %v4156_v23, %v4155_v57  ;;  %v4160_v49 = vmax.f32 %v4056_v16, 0.0  ;;  %4191 = vadd.xlane.f32.xlu0 %v4190_v36  ;;  %v4162_v4 = vmax.f32 %v4129_v29, 0.0 }
 0x285   : > { %v4198_v21 = vadd.f32 %v4160_v49, %v4159_v31  ;;  %v4194_v37 = vadd.f32 %v4193_v11, %v4157_v55  ;;  %v7188_v26 = vpop.f32.mrb[96].mxu0 }
 0x286   : > { %v7189_v22 = vpop.f32.mrb[97].mxu0  ;;  %v7228_v35 = vpop.f32.mrb[96].mxu1 }
 0x287   : > { %v4199_v32 = vadd.f32 %v4198_v21, %v4161_v60  ;;  %v7190_v34 = vadd.f32 %v7189_v22, %v7188_v26  ;;  %v7191_v63 = vpop.f32.mrb[98].mxu0  ;;  %v4195_v41 = vadd.f32 %v4194_v37, %v4158_v17  ;;  %v7229_v1 = vpop.f32.mrb[97].mxu1 }
 0x288   : > { %v7192_v53 = vpop.f32.mrb[99].mxu0  ;;  %v9894_v0 = vadd.f32 %v7229_v1, %v7228_v35  ;;  %v7231_v58 = vpop.f32.mrb[98].mxu1 }
 0x289   : > { %v4374_v46 = vadd.f32 %v7190_v34, %v8891_v50  ;;  %v7193_v38 = vadd.f32 %v7192_v53, %v7191_v63  ;;  %4196 = vadd.xlane.f32.xlu1 %v4195_v41  ;;  %v4200_v14 = vadd.f32 %v4199_v32, %v4162_v4  ;;  %v7232_v51 = vpop.f32.mrb[99].mxu1 }
 0x28a   : > { %v9897_v19 = vadd.f32 %v7232_v51, %v7231_v58 }
 0x28b   : > { %v4377_v15 = vadd.f32 %v7193_v38, %v8910_v42  ;;  %4201 = vadd.xlane.f32.xlu0 %v4200_v14  ;;  %v4404_v2 = vmax.f32 %v4374_v46, 0.0 }
 0x28d   : > { %v7194_v39 = vpop.f32.mrb[100].mxu0  ;;  %v4413_v10 = vsel %vm4412_vm0, %v4404_v2, 0.0  ;;  %v4405_v57 = vmax.f32 %v4377_v15, 0.0 }
 0x28e   : > { %v7234_v3 = vpop.f32.mrb[100].mxu1  ;;  %v7195_v50 = vpop.f32.mrb[101].mxu0  ;;  %4414 = vadd.xlane.f32.xlu1 %v4413_v10 }
 0x28f   : > { %v7196_v20 = vadd.f32 %v7195_v50, %v7194_v39  ;;  %v7235_v55 = vpop.f32.mrb[101].mxu1  ;;  %v4416_v9 = vsel %vm4412_vm0, %v4405_v57, 0.0  ;;  %v7197_v23 = vpop.f32.mrb[102].mxu0 }
 0x290   : > { %v9901_v13 = vadd.f32 %v7235_v55, %v7234_v3  ;;  %v7237_v16 = vpop.f32.mrb[102].mxu1  ;;  %4417 = vadd.xlane.f32.xlu0 %v4416_v9  ;;  %v7198_v45 = vpop.f32.mrb[103].mxu0 }
 0x291   : > { %v4382_v42 = vadd.f32 %v7196_v20, %v8920_v62  ;;  %v7238_v36 = vpop.f32.mrb[103].mxu1  ;;  %v7199_v40 = vadd.f32 %v7198_v45, %v7197_v23 }
 0x292   : > { %v9904_v31 = vadd.f32 %v7238_v36, %v7237_v16 }
 0x293   : > { %v4406_v29 = vmax.f32 %v4382_v42, 0.0  ;;  %v4385_v11 = vadd.f32 %v7199_v40, %v8918_v61 }
 0x295   : > { %v7200_v49 = vpop.f32.mrb[104].mxu0  ;;  %v4419_v17 = vsel %vm4412_vm0, %v4406_v29, 0.0  ;;  %v4407_v37 = vmax.f32 %v4385_v11, 0.0  ;;  %v5872_v11 = vadd.f32 %v9894_v0, %v8887_v48 }
 0x296   : > { %v7240_v60 = vpop.f32.mrb[104].mxu1  ;;  %v7201_v21 = vpop.f32.mrb[105].mxu0  ;;  %4420 = vadd.xlane.f32.xlu1 %v4419_v17 }
 0x297   : > { %v7202_v4 = vadd.f32 %v7201_v21, %v7200_v49  ;;  %v7241_v26 = vpop.f32.mrb[105].mxu1  ;;  %v7203_v62 = vpop.f32.mrb[106].mxu0  ;;  %v4422_v32 = vsel %vm4412_vm0, %v4407_v37, 0.0 }
 0x298   : > { %v9908_v22 = vadd.f32 %v7241_v26, %v7240_v60  ;;  %v7243_v35 = vpop.f32.mrb[106].mxu1  ;;  %v7204_v63 = vpop.f32.mrb[107].mxu0  ;;  %4423 = vadd.xlane.f32.xlu0 %v4422_v32 }
 0x299   : > { %v4390_v34 = vadd.f32 %v7202_v4, %v8956_v44  ;;  %v7244_v41 = vpop.f32.mrb[107].mxu1  ;;  %v7205_v61 = vadd.f32 %v7204_v63, %v7203_v62  ;;  %v5875_v4 = vadd.f32 %v9897_v19, %v8904_v54 }
 0x29a   : > { %v9912_v1 = vadd.f32 %v7244_v41, %v7243_v35 }
 0x29b   : > { %v4408_v53 = vmax.f32 %v4390_v34, 0.0  ;;  %v4393_v46 = vadd.f32 %v7205_v61, %v8954_v43 }
 0x29d   : > { %v7206_v38 = vpop.f32.mrb[108].mxu0  ;;  %v4425_v58 = vsel %vm4412_vm0, %v4408_v53, 0.0  ;;  %v4409_v15 = vmax.f32 %v4393_v46, 0.0  ;;  %v5880_v53 = vadd.f32 %v9901_v13, %v8932_v8  ;;  %v5888_v13 = vadd.f32 %v9908_v22, %v8983_v28 }
 0x29e   : > { %v7246_v14 = vpop.f32.mrb[108].mxu1  ;;  %v7207_v51 = vpop.f32.mrb[109].mxu0  ;;  %4426 = vadd.xlane.f32.xlu1 %v4425_v58 }
 0x29f   : > { %v7208_v2 = vadd.f32 %v7207_v51, %v7206_v38  ;;  %v7247_v39 = vpop.f32.mrb[109].mxu1  ;;  %v7209_v10 = vpop.f32.mrb[110].mxu0  ;;  %v4428_v50 = vsel %vm4412_vm0, %v4409_v15, 0.0  ;;  %v5883_v51 = vadd.f32 %v9904_v31, %v8930_v7  ;;  %v5891_v31 = vadd.f32 %v9912_v1, %v8981_v27 }
 0x2a0   : > { %v9916_v44 = vadd.f32 %v7247_v39, %v7246_v14  ;;  %v7249_v57 = vpop.f32.mrb[110].mxu1  ;;  %v7210_v3 = vpop.f32.mrb[111].mxu0  ;;  %4429 = vadd.xlane.f32.xlu0 %v4428_v50 }
 0x2a1   : > { %v4398_v20 = vadd.f32 %v7208_v2, %v9000_v12  ;;  %v7211_v55 = vadd.f32 %v7210_v3, %v7209_v10  ;;  %v7250_v43 = vpop.f32.mrb[111].mxu1 }
 0x2a2   : > { %v9920_v9 = vadd.f32 %v7250_v43, %v7249_v57  ;;  %v5896_v28 = vadd.f32 %v9916_v44, %v9414_v33 }
 0x2a3   : > { %v4401_v23 = vadd.f32 %v7211_v55, %v9003_v30  ;;  %v4410_v16 = vmax.f32 %v4398_v20, 0.0 }
 0x2a4   : > { %v5899_v27 = vadd.f32 %v9920_v9, %v9445_v52 }
 0x2a5   : > { %v7268_v42 = vpop.f32.mrb[112].mxu0  ;;  %v4431_v45 = vsel %vm4412_vm0, %v4410_v16, 0.0  ;;  %v4411_v36 = vmax.f32 %v4401_v23, 0.0 }
 0x2a6   : > { %v7269_v40 = vpop.f32.mrb[113].mxu0  ;;  %4432 = vadd.xlane.f32.xlu1 %v4431_v45  ;;  %v7308_v29 = vpop.f32.mrb[112].mxu1 }
 0x2a7   : > { %v7270_v49 = vadd.f32 %v7269_v40, %v7268_v42  ;;  %v7271_v12 = vpop.f32.mrb[114].mxu0  ;;  %v7309_v17 = vpop.f32.mrb[113].mxu1  ;;  %v4434_v60 = vsel %vm4412_vm0, %v4411_v36, 0.0 }
 0x2a8   : > { %v7272_v21 = vpop.f32.mrb[115].mxu0  ;;  %v7310_v37 = vadd.f32 %v7309_v17, %v7308_v29  ;;  %4435 = vadd.xlane.f32.xlu0 %v4434_v60  ;;  %v7311_v30 = vpop.f32.mrb[114].mxu1 }
 0x2a9   : > { %v5937_v26 = vadd.f32 %v7270_v49, %v5872_v11  ;;  %v7273_v62 = vadd.f32 %v7272_v21, %v7271_v12  ;;  %v7312_v35 = vpop.f32.mrb[115].mxu1 }
 0x2aa   : > { %v7313_v32 = vadd.f32 %v7312_v35, %v7311_v30 }
 0x2ab   : > { %v5940_v34 = vadd.f32 %v7273_v62, %v5875_v4  ;;  %v9929_v63 = vadd.f32 %v7310_v37, %v5937_v26 }
 0x2ad   : > { %v9931_v48 = vadd.f32 %v7313_v32, %v5940_v34  ;;  %v7274_v0 = vpop.f32.mrb[116].mxu0 }
 0x2ae   : > { %v7275_v41 = vpop.f32.mrb[117].mxu0  ;;  %v7314_v61 = vpop.f32.mrb[116].mxu1 }
 0x2af   : > { %v7276_v46 = vadd.f32 %v7275_v41, %v7274_v0  ;;  %v7277_v38 = vpop.f32.mrb[118].mxu0  ;;  %v7315_v58 = vpop.f32.mrb[117].mxu1 }
 0x2b0   : > { %v7278_v14 = vpop.f32.mrb[119].mxu0  ;;  %v7316_v54 = vadd.f32 %v7315_v58, %v7314_v61  ;;  %v7317_v19 = vpop.f32.mrb[118].mxu1 }
 0x2b1   : > { %v5945_v15 = vadd.f32 %v7276_v46, %v5880_v53  ;;  %v7279_v2 = vadd.f32 %v7278_v14, %v7277_v38  ;;  %v7318_v39 = vpop.f32.mrb[119].mxu1 }
 0x2b2   : > { %v7319_v10 = vadd.f32 %v7318_v39, %v7317_v19 }
 0x2b3   : > { %v5948_v57 = vadd.f32 %v7279_v2, %v5883_v51  ;;  %v6010_v3 = vadd.f32 %v7316_v54, %v5945_v15 }
 0x2b5   : > { %v9937_v50 = vadd.f32 %v7319_v10, %v5948_v57  ;;  %v7280_v20 = vpop.f32.mrb[120].mxu0 }
 0x2b6   : > { %v7281_v55 = vpop.f32.mrb[121].mxu0  ;;  %v7320_v8 = vpop.f32.mrb[120].mxu1 }
 0x2b7   : > { %v7282_v43 = vadd.f32 %v7281_v55, %v7280_v20  ;;  %v7283_v23 = vpop.f32.mrb[122].mxu0  ;;  %v7321_v16 = vpop.f32.mrb[121].mxu1 }
 0x2b8   : > { %v7284_v42 = vpop.f32.mrb[123].mxu0  ;;  %v7322_v45 = vadd.f32 %v7321_v16, %v7320_v8  ;;  %v7323_v7 = vpop.f32.mrb[122].mxu1 }
 0x2b9   : > { %v5953_v36 = vadd.f32 %v7282_v43, %v5888_v13  ;;  %v7285_v40 = vadd.f32 %v7284_v42, %v7283_v23  ;;  %v7324_v29 = vpop.f32.mrb[123].mxu1 }
 0x2ba   : > { %v7325_v11 = vadd.f32 %v7324_v29, %v7323_v7 }
 0x2bb   : > { %v5956_v49 = vadd.f32 %v7285_v40, %v5891_v31  ;;  %v6018_v12 = vadd.f32 %v7322_v45, %v5953_v36 }
 0x2bd   : > { %v9943_v17 = vadd.f32 %v7325_v11, %v5956_v49  ;;  %v7286_v60 = vpop.f32.mrb[124].mxu0 }
 0x2be   : > { %v7287_v21 = vpop.f32.mrb[125].mxu0  ;;  %v7326_v30 = vpop.f32.mrb[124].mxu1 }
 0x2bf   : > { %v7288_v22 = vadd.f32 %v7287_v21, %v7286_v60  ;;  %v7289_v37 = vpop.f32.mrb[126].mxu0  ;;  %v7327_v26 = vpop.f32.mrb[125].mxu1 }
 0x2c0   : > { %v7290_v4 = vpop.f32.mrb[127].mxu0  ;;  %v7328_v35 = vadd.f32 %v7327_v26, %v7326_v30  ;;  %v7329_v32 = vpop.f32.mrb[126].mxu1 }
 0x2c1   : > { %v5961_v1 = vadd.f32 %v7288_v22, %v5896_v28  ;;  %v7291_v62 = vadd.f32 %v7290_v4, %v7289_v37  ;;  %v7330_v34 = vpop.f32.mrb[127].mxu1 }
 0x2c2   : > { %v7331_v61 = vadd.f32 %v7330_v34, %v7329_v32 }
 0x2c3   : > { %v5964_v0 = vadd.f32 %v7291_v62, %v5899_v27  ;;  %v6026_v41 = vadd.f32 %v7328_v35, %v5961_v1 }
 0x2c5   : > { %v6029_v53 = vadd.f32 %v7331_v61, %v5964_v0  ;;  %v7348_v46 = vpop.f32.mrb[128].mxu0 }
 0x2c6   : > { %v7349_v38 = vpop.f32.mrb[129].mxu0  ;;  %v7388_v58 = vpop.f32.mrb[128].mxu1 }
 0x2c7   : > { %v7350_v33 = vadd.f32 %v7349_v38, %v7348_v46  ;;  %v7351_v44 = vpop.f32.mrb[130].mxu0  ;;  %v7389_v54 = vpop.f32.mrb[129].mxu1 }
 0x2c8   : > { %v7352_v14 = vpop.f32.mrb[131].mxu0  ;;  %v7390_v52 = vadd.f32 %v7389_v54, %v7388_v58  ;;  %v7391_v9 = vpop.f32.mrb[130].mxu1 }
 0x2c9   : > { %v6067_v19 = vadd.f32 %v7350_v33, %v9929_v63  ;;  %v7353_v51 = vadd.f32 %v7352_v14, %v7351_v44  ;;  %v7392_v15 = vpop.f32.mrb[131].mxu1 }
 0x2ca   : > { %v7393_v10 = vadd.f32 %v7392_v15, %v7391_v9 }
 0x2cb   : > { %v6070_v2 = vadd.f32 %v7353_v51, %v9931_v48  ;;  %v6132_v39 = vadd.f32 %v7390_v52, %v6067_v19 }
 0x2cd   : > { %v6135_v57 = vadd.f32 %v7393_v10, %v6070_v2  ;;  %v7354_v20 = vpop.f32.mrb[132].mxu0 }
 0x2ce   : > { %v7355_v55 = vpop.f32.mrb[133].mxu0  ;;  %v7394_v43 = vpop.f32.mrb[132].mxu1 }
 0x2cf   : > { %v7356_v8 = vadd.f32 %v7355_v55, %v7354_v20  ;;  %v7357_v13 = vpop.f32.mrb[134].mxu0  ;;  %v7395_v16 = vpop.f32.mrb[133].mxu1 }
 0x2d0   : > { %v7358_v23 = vpop.f32.mrb[135].mxu0  ;;  %v7396_v7 = vadd.f32 %v7395_v16, %v7394_v43  ;;  %v7397_v63 = vpop.f32.mrb[134].mxu1 }
 0x2d1   : > { %v6075_v42 = vadd.f32 %v7356_v8, %v6010_v3  ;;  %v7359_v45 = vadd.f32 %v7358_v23, %v7357_v13  ;;  %v7398_v31 = vpop.f32.mrb[135].mxu1 }
 0x2d2   : > { %v7399_v29 = vadd.f32 %v7398_v31, %v7397_v63 }
 0x2d3   : > { %v6078_v36 = vadd.f32 %v7359_v45, %v9937_v50  ;;  %v6140_v40 = vadd.f32 %v7396_v7, %v6075_v42 }
 0x2d5   : > { %v6143_v48 = vadd.f32 %v7399_v29, %v6078_v36  ;;  %v7360_v11 = vpop.f32.mrb[136].mxu0 }
 0x2d6   : > { %v7361_v49 = vpop.f32.mrb[137].mxu0  ;;  %v7400_v28 = vpop.f32.mrb[136].mxu1 }
 0x2d7   : > { %v7362_v60 = vadd.f32 %v7361_v49, %v7360_v11  ;;  %v7363_v21 = vpop.f32.mrb[138].mxu0  ;;  %v7401_v37 = vpop.f32.mrb[137].mxu1 }
 0x2d8   : > { %v7364_v22 = vpop.f32.mrb[139].mxu0  ;;  %v7402_v26 = vadd.f32 %v7401_v37, %v7400_v28  ;;  %v7403_v3 = vpop.f32.mrb[138].mxu1 }
 0x2d9   : > { %v6083_v30 = vadd.f32 %v7362_v60, %v6018_v12  ;;  %v7365_v4 = vadd.f32 %v7364_v22, %v7363_v21  ;;  %v7404_v27 = vpop.f32.mrb[139].mxu1 }
 0x2da   : > { %v7405_v35 = vadd.f32 %v7404_v27, %v7403_v3 }
 0x2db   : > { %v6086_v1 = vadd.f32 %v7365_v4, %v9943_v17  ;;  %v6148_v62 = vadd.f32 %v7402_v26, %v6083_v30 }
 0x2dd   : > { %v6151_v50 = vadd.f32 %v7405_v35, %v6086_v1  ;;  %v7366_v32 = vpop.f32.mrb[140].mxu0 }
 0x2de   : > { %v7367_v34 = vpop.f32.mrb[141].mxu0  ;;  %v7406_v0 = vpop.f32.mrb[140].mxu1 }
 0x2df   : > { %v7368_v61 = vadd.f32 %v7367_v34, %v7366_v32  ;;  %v7369_v46 = vpop.f32.mrb[142].mxu0  ;;  %v7407_v38 = vpop.f32.mrb[141].mxu1 }
 0x2e0   : > { %v7370_v33 = vpop.f32.mrb[143].mxu0  ;;  %v7408_v44 = vadd.f32 %v7407_v38, %v7406_v0  ;;  %v7409_v58 = vpop.f32.mrb[142].mxu1 }
 0x2e1   : > { %v6091_v14 = vadd.f32 %v7368_v61, %v6026_v41  ;;  %v7371_v12 = vadd.f32 %v7370_v33, %v7369_v46  ;;  %v7410_v54 = vpop.f32.mrb[143].mxu1 }
 0x2e2   : > { %v7411_v19 = vadd.f32 %v7410_v54, %v7409_v58 }
 0x2e3   : > { %v6094_v51 = vadd.f32 %v7371_v12, %v6029_v53  ;;  %v6156_v52 = vadd.f32 %v7408_v44, %v6091_v14 }
 0x2e5   : > { %v6159_v9 = vadd.f32 %v7411_v19, %v6094_v51  ;;  %v7428_v17 = vpop.f32.mrb[144].mxu0 }
 0x2e6   : > { %v7429_v15 = vpop.f32.mrb[145].mxu0  ;;  %v7468_v2 = vpop.f32.mrb[144].mxu1 }
 0x2e7   : > { %v7430_v10 = vadd.f32 %v7429_v15, %v7428_v17  ;;  %v7431_v20 = vpop.f32.mrb[146].mxu0  ;;  %v7469_v55 = vpop.f32.mrb[145].mxu1 }
 0x2e8   : > { %v7432_v8 = vpop.f32.mrb[147].mxu0  ;;  %v7470_v13 = vadd.f32 %v7469_v55, %v7468_v2  ;;  %v7471_v43 = vpop.f32.mrb[146].mxu1 }
 0x2e9   : > { %v6197_v23 = vadd.f32 %v7430_v10, %v6132_v39  ;;  %v7433_v16 = vadd.f32 %v7432_v8, %v7431_v20  ;;  %v7472_v42 = vpop.f32.mrb[147].mxu1 }
 0x2ea   : > { %v7473_v45 = vadd.f32 %v7472_v42, %v7471_v43 }
 0x2eb   : > { %v6200_v41 = vadd.f32 %v7433_v16, %v6135_v57  ;;  %v6262_v7 = vadd.f32 %v7470_v13, %v6197_v23 }
 0x2ed   : > { %v9953_v63 = vadd.f32 %v7473_v45, %v6200_v41  ;;  %v7434_v53 = vpop.f32.mrb[148].mxu0 }
 0x2ee   : > { %v7435_v31 = vpop.f32.mrb[149].mxu0  ;;  %v7474_v36 = vpop.f32.mrb[148].mxu1 }
 0x2ef   : > { %v7436_v29 = vadd.f32 %v7435_v31, %v7434_v53  ;;  %v7437_v11 = vpop.f32.mrb[150].mxu0  ;;  %v7475_v49 = vpop.f32.mrb[149].mxu1 }
 0x2f0   : > { %v7438_v60 = vpop.f32.mrb[151].mxu0  ;;  %v7476_v21 = vadd.f32 %v7475_v49, %v7474_v36  ;;  %v7477_v28 = vpop.f32.mrb[150].mxu1 }
 0x2f1   : > { %v6205_v22 = vadd.f32 %v7436_v29, %v6140_v40  ;;  %v7439_v37 = vadd.f32 %v7438_v60, %v7437_v11  ;;  %v7478_v30 = vpop.f32.mrb[151].mxu1 }
 0x2f2   : > { %v7479_v39 = vadd.f32 %v7478_v30, %v7477_v28 }
 0x2f3   : > { %v6208_v4 = vadd.f32 %v7439_v37, %v6143_v48  ;;  %v9955_v26 = vadd.f32 %v7476_v21, %v6205_v22 }
 0x2f5   : > { %v9957_v57 = vadd.f32 %v7479_v39, %v6208_v4  ;;  %v7440_v3 = vpop.f32.mrb[152].mxu0 }
 0x2f6   : > { %v7441_v27 = vpop.f32.mrb[153].mxu0  ;;  %v7480_v1 = vpop.f32.mrb[152].mxu1 }
 0x2f7   : > { %v7442_v35 = vadd.f32 %v7441_v27, %v7440_v3  ;;  %v7443_v32 = vpop.f32.mrb[154].mxu0  ;;  %v7481_v34 = vpop.f32.mrb[153].mxu1 }
 0x2f8   : > { %v7444_v0 = vpop.f32.mrb[155].mxu0  ;;  %v7482_v61 = vadd.f32 %v7481_v34, %v7480_v1  ;;  %v7483_v46 = vpop.f32.mrb[154].mxu1 }
 0x2f9   : > { %v6213_v38 = vadd.f32 %v7442_v35, %v6148_v62  ;;  %v7445_v33 = vadd.f32 %v7444_v0, %v7443_v32  ;;  %v7484_v40 = vpop.f32.mrb[155].mxu1 }
 0x2fa   : > { %v7485_v44 = vadd.f32 %v7484_v40, %v7483_v46 }
 0x2fb   : > { %v6216_v58 = vadd.f32 %v7445_v33, %v6151_v50  ;;  %v6278_v14 = vadd.f32 %v7482_v61, %v6213_v38 }
 0x2fd   : > { %v6281_v48 = vadd.f32 %v7485_v44, %v6216_v58  ;;  %v7446_v12 = vpop.f32.mrb[156].mxu0 }
 0x2fe   : > { %v7447_v54 = vpop.f32.mrb[157].mxu0  ;;  %v7486_v17 = vpop.f32.mrb[156].mxu1 }
 0x2ff   : > { %v7448_v19 = vadd.f32 %v7447_v54, %v7446_v12  ;;  %v7449_v51 = vpop.f32.mrb[158].mxu0  ;;  %v7487_v2 = vpop.f32.mrb[157].mxu1 }
 0x300   : > { %v7450_v15 = vpop.f32.mrb[159].mxu0  ;;  %v7488_v55 = vadd.f32 %v7487_v2, %v7486_v17  ;;  %v7489_v8 = vpop.f32.mrb[158].mxu1 }
 0x301   : > { %v6221_v10 = vadd.f32 %v7448_v19, %v6156_v52  ;;  %v7451_v20 = vadd.f32 %v7450_v15, %v7449_v51  ;;  %v7490_v13 = vpop.f32.mrb[159].mxu1 }
 0x302   : > { %v7491_v23 = vadd.f32 %v7490_v13, %v7489_v8 }
 0x303   : > { %v6224_v43 = vadd.f32 %v7451_v20, %v6159_v9  ;;  %v6286_v62 = vadd.f32 %v7488_v55, %v6221_v10  ;;  %v7167_v9 = vld [vmem:[%s10004_s2] ss:$0 sm:$0xff] }
 0x305   : > { %v6289_v16 = vadd.f32 %v7491_v23, %v6224_v43  ;;  %v7508_v42 = vpop.f32.mrb[160].mxu0 }
 0x306   : > { %v7520_v50 = vpop.f32.mrb[160].mxu1  ;;  %v7509_v45 = vpop.f32.mrb[161].mxu0 }
 0x307   : > { %v7510_v41 = vadd.f32 %v7509_v45, %v7508_v42  ;;  %v7521_v53 = vpop.f32.mrb[161].mxu1  ;;  %v7511_v36 = vpop.f32.mrb[162].mxu0  ;;  %v8370_v45 = vmov 0.0  }
 0x308   : > { %v7522_v31 = vadd.f32 %v7521_v53, %v7520_v50  ;;  %v7523_v29 = vpop.f32.mrb[162].mxu1  ;;  %v7512_v49 = vpop.f32.mrb[163].mxu0  ;;  %v8368_v50 = vmov 0.0|0.0   ;;  %7557 = vmatprep.mubr.msk.f32.mxu1 %vm8369_vm2, %v8370_v45 }
 0x309   : > { %v6327_v11 = vadd.f32 %v7510_v41, %v6262_v7  ;;  %v7524_v60 = vpop.f32.mrb[163].mxu1  ;;  %v7513_v21 = vadd.f32 %v7512_v49, %v7511_v36  ;;  %7560 = vmatprep.subr.bf16.mxu1 %v8368_v50  ;;  %v2947_v41 = vpop.xlane.xlu1 %2946 }
 0x30a   : > { %v6343_v52 = vadd.f32 %v7522_v31, %v6278_v14  ;;  %v7525_v28 = vadd.f32 %v7524_v60, %v7523_v29  ;;  %v2952_v53 = vpop.xlane.xlu0 %2951 }
 0x30b   : > { %v6357_v22 = vmax.f32 %v6327_v11, 0.0  ;;  %v6330_v37 = vadd.f32 %v7513_v21, %v9953_v63 }
 0x30c   : > { %v6346_v30 = vadd.f32 %v7525_v28, %v6281_v48  ;;  %v6361_v48 = vmax.f32 %v6343_v52, 0.0 }
 0x30d   : > { %v7514_v39 = vpop.f32.mrb[164].mxu0  ;;  %v6371_v4 = vmul.f32 %v7167_v9, %v6357_v22  ;;  %v6358_v3 = vmax.f32 %v6330_v37, 0.0  ;;  %v2957_v31 = vpop.xlane.xlu1 %2956 }
 0x30e   : > { %v7526_v27 = vpop.f32.mrb[164].mxu1  ;;  %v7515_v1 = vpop.f32.mrb[165].mxu0  ;;  %v6362_v17 = vmax.f32 %v6346_v30, 0.0 }
 0x30f   : > { %v7516_v7 = vadd.f32 %v7515_v1, %v7514_v39  ;;  %v7527_v35 = vpop.f32.mrb[165].mxu1  ;;  %v6380_v32 = vsel %vm6379_vm1, %v6371_v4, 0.0  ;;  %v7517_v0 = vpop.f32.mrb[166].mxu0  ;;  %v6372_v46 = vmul.f32 %v7167_v9, %v6358_v3 }
 0x310   : > { %v7528_v34 = vadd.f32 %v7527_v35, %v7526_v27  ;;  %v7529_v61 = vpop.f32.mrb[166].mxu1  ;;  %6381 = vadd.xlane.f32.xlu1 %v6380_v32  ;;  %v7518_v33 = vpop.f32.mrb[167].mxu0  ;;  %v6376_v13 = vmul.f32 %v7167_v9, %v6362_v17 }
 0x311   : > { %v6335_v38 = vadd.f32 %v7516_v7, %v9955_v26  ;;  %v7530_v63 = vpop.f32.mrb[167].mxu1  ;;  %v7519_v44 = vadd.f32 %v7518_v33, %v7517_v0  ;;  %v6383_v14 = vsel %vm6379_vm1, %v6372_v46, 0.0  ;;  %v6375_v26 = vmul.f32 %v7167_v9, %v6361_v48  ;;  %v2962_v36 = vpop.xlane.xlu0 %2961 }
 0x312   : > { %v6351_v40 = vadd.f32 %v7528_v34, %v6286_v62  ;;  %v7531_v58 = vadd.f32 %v7530_v63, %v7529_v61  ;;  %6384 = vadd.xlane.f32.xlu0 %v6383_v14  ;;  %v2967_v29 = vpop.xlane.xlu1 %2966  ;;  %v2983_v33 = vadd.f32 %v2947_v41, %v9834_v59  ;;  %v2984_v63 = vadd.f32 %v2952_v53, %v9840_v25 }
 0x313   : > { %v6359_v12 = vmax.f32 %v6335_v38, 0.0  ;;  %v6338_v54 = vadd.f32 %v7519_v44, %v9957_v57  ;;  %v6392_v43 = vsel %vm6379_vm1, %v6375_v26, 0.0  ;;  %v6395_v57 = vsel %vm6379_vm1, %v6376_v13, 0.0 }
 0x314   : > { %v6354_v19 = vadd.f32 %v7531_v58, %v6289_v16  ;;  %v6363_v2 = vmax.f32 %v6351_v40, 0.0  ;;  %v2987_v25 = vadd.f32 %v2967_v29, %v9850_v6 }
 0x315   : > { %v6373_v51 = vmul.f32 %v7167_v9, %v6359_v12  ;;  %v6360_v15 = vmax.f32 %v6338_v54, 0.0  ;;  %v2972_v11 = vpop.xlane.xlu0 %2971 }
 0x316   : > { %v6364_v55 = vmax.f32 %v6354_v19, 0.0  ;;  %v6377_v62 = vmul.f32 %v7167_v9, %v6363_v2  ;;  %v2977_v49 = vpop.xlane.xlu1 %2976  ;;  %v2986_v2 = vadd.f32 %v2962_v36, %v9847_v56 }
 0x317   : > { %v6386_v10 = vsel %vm6379_vm1, %v6373_v51, 0.0  ;;  %v6374_v20 = vmul.f32 %v7167_v9, %v6360_v15  ;;  %v2985_v15 = vadd.f32 %v2957_v31, %v9844_v18  ;;  %v2989_v56 = vadd.f32 %v2977_v49, %v9856_v24 }
 0x318   : > { %6387 = vadd.xlane.f32.xlu1 %v6386_v10  ;;  %v6378_v23 = vmul.f32 %v7167_v9, %v6364_v55  ;;  %v6398_v16 = vsel %vm6379_vm1, %v6377_v62, 0.0 }
 0x319   : > { %v6389_v8 = vsel %vm6379_vm1, %v6374_v20, 0.0  ;;  %v2982_v60 = vpop.xlane.xlu0 %2981 }
 0x31a   : > { %6390 = vadd.xlane.f32.xlu0 %v6389_v8  ;;  %v6401_v42 = vsel %vm6379_vm1, %v6378_v23, 0.0  ;;  %v3557_v52 = vpop.xlane.xlu1 %3556  ;;  %v2988_v8 = vadd.f32 %v2972_v11, %v9853_v47  ;;  %v2990_v31 = vadd.f32 %v2982_v60, %v9859_v5 }
 0x31b   : > { %v3593_v44 = vadd.f32 %v3557_v52, %v2983_v33 }
 0x31c   : > { %6393 = vadd.xlane.f32.xlu1 %v6392_v43 }
 0x31d   : > { %v3562_v21 = vpop.xlane.xlu0 %3561 }
 0x31e   : > { %6396 = vadd.xlane.f32.xlu0 %v6395_v57  ;;  %v3567_v28 = vpop.xlane.xlu1 %3566  ;;  %v3594_v58 = vadd.f32 %v3562_v21, %v2984_v63  ;;  %v468_v63 = vld [vmem:[%s10009_s7] sm:$0xff] }
 0x31f   : > { %v3595_v26 = vadd.f32 %v3567_v28, %v2985_v15 }
 0x320   : > { %6399 = vadd.xlane.f32.xlu1 %v6398_v16 }
 0x321   : > { %v3572_v9 = vpop.xlane.xlu0 %3571 }
 0x322   : > { %6402 = vadd.xlane.f32.xlu0 %v6401_v42  ;;  %v3577_v22 = vpop.xlane.xlu1 %3576  ;;  %v3596_v20 = vadd.f32 %v3572_v9, %v2986_v2 }
 0x323   : > { %v3597_v16 = vadd.f32 %v3577_v22, %v2987_v25 }
 0x325   : > { %v3582_v37 = vpop.xlane.xlu0 %3581 }
 0x326   : > { %v3587_v30 = vpop.xlane.xlu1 %3586  ;;  %v3598_v42 = vadd.f32 %v3582_v37, %v2988_v8 }
 0x327   : > { %v3599_v29 = vadd.f32 %v3587_v30, %v2989_v56 }
 0x329   : > { %v3592_v39 = vpop.xlane.xlu0 %3591 }
 0x32a   : > { %v4167_v4 = vpop.xlane.xlu1 %4166  ;;  %v3600_v11 = vadd.f32 %v3592_v39, %v2990_v31 }
 0x32b   : > { %v4203_v48 = vadd.f32 %v4167_v4, %v3593_v44 }
 0x32d   : > { %v4172_v3 = vpop.xlane.xlu0 %4171 }
 0x32e   : > { %v4177_v27 = vpop.xlane.xlu1 %4176  ;;  %v4204_v12 = vadd.f32 %v4172_v3, %v3594_v58 }
 0x32f   : > { %v4205_v43 = vadd.f32 %v4177_v27, %v3595_v26 }
 0x331   : > { %v4182_v1 = vpop.xlane.xlu0 %4181 }
 0x332   : > { %v4187_v7 = vpop.xlane.xlu1 %4186  ;;  %v4206_v62 = vadd.f32 %v4182_v1, %v3596_v20 }
 0x333   : > { %v4207_v53 = vadd.f32 %v4187_v7, %v3597_v16 }
 0x335   : > { %v4192_v35 = vpop.xlane.xlu0 %4191 }
 0x336   : > { %v4197_v32 = vpop.xlane.xlu1 %4196  ;;  %v4208_v36 = vadd.f32 %v4192_v35, %v3598_v42 }
 0x337   : > { %v4209_v22 = vadd.f32 %v4197_v32, %v3599_v29 }
 0x339   : > { %v4202_v34 = vpop.xlane.xlu0 %4201 }
 0x33a   : > { %v4415_v0 = vpop.xlane.xlu1 %4414  ;;  %v4210_v37 = vadd.f32 %v4202_v34, %v3600_v11 }
 0x33b   : > { %v4437_v19 = vadd.f32 %v4415_v0, %v4203_v48 }
 0x33d   : > { %v4418_v61 = vpop.xlane.xlu0 %4417  ;;  %v4445_v59 = vmul.f32 0.00031887754, %v4437_v19 }
 0x33e   : > { %v4421_v46 = vpop.xlane.xlu1 %4420  ;;  %v4438_v51 = vadd.f32 %v4418_v61, %v4204_v12 }
 0x33f   : > { %v4439_v45 = vadd.f32 %v4421_v46, %v4205_v43 }
 0x340   : > { %v4446_v55 = vmul.f32 0.00031887754, %v4438_v51 }
 0x341   : > { %v4424_v38 = vpop.xlane.xlu0 %4423  ;;  %v4447_v52 = vmul.f32 0.00031887754, %v4439_v45 }
 0x342   : > { %v4427_v40 = vpop.xlane.xlu1 %4426  ;;  %v4440_v18 = vadd.f32 %v4424_v38, %v4206_v62 }
 0x343   : > { %v4441_v47 = vadd.f32 %v4427_v40, %v4207_v53  ;;  %v469_v40 = vld [vmem:[%s10010_s8] sm:$0xf] }
 0x344   : > { %v4448_v21 = vmul.f32 0.00031887754, %v4440_v18 }
 0x345   : > { %v4430_v14 = vpop.xlane.xlu0 %4429  ;;  %v4449_v49 = vmul.f32 0.00031887754, %v4441_v47 }
 0x346   : > { %v4433_v54 = vpop.xlane.xlu1 %4432  ;;  %v4442_v28 = vadd.f32 %v4430_v14, %v4208_v36 }
 0x347   : > { %v4443_v5 = vadd.f32 %v4433_v54, %v4209_v22 }
 0x348   : > { %v4450_v27 = vmul.f32 0.00031887754, %v4442_v28 }
 0x349   : > { %v4436_v17 = vpop.xlane.xlu0 %4435  ;;  %v4451_v39 = vmul.f32 0.00031887754, %v4443_v5 }
 0x34a   : > { %v4444_v60 = vadd.f32 %v4436_v17, %v4210_v37 }
 0x34c   : > { %v4452_v61 = vmul.f32 0.00031887754, %v4444_v60 }
 0x39d   : > { %v6382_v10 = vpop.xlane.xlu1 %6381 }
 0x39e   : > { %v6404_v57 = vadd.f32 %v6382_v10, %v4445_v59 }
 0x39f   : > { %v6385_v13 = vpop.xlane.xlu0 %6384 }
 0x3a0   : > { %v6405_v23 = vadd.f32 %v6385_v13, %v4446_v55 }
 0x3a2   : > { %v7561_v41 = vpack.c.bf16 %v6405_v23, %v6404_v57 }
 0x3a4   : > { %7562 = vmatpush3.bf16.msra.mxu1 %v7561_v41 }
 0x3a5   : > { %v6388_v6 = vpop.xlane.xlu1 %6387  ;;  %7563 = vmatprep.subr.bf16.mxu1 %v8368_v50 }
 0x3a6   : > { %v6406_v4 = vadd.f32 %v6388_v6, %v4447_v52 }
 0x3a7   : > { %v6391_v9 = vpop.xlane.xlu0 %6390 }
 0x3a8   : > { %v6407_v3 = vadd.f32 %v6391_v9, %v4448_v21 }
 0x3a9   : > { %v6394_v24 = vpop.xlane.xlu1 %6393 }
 0x3aa   : > { %v7564_v1 = vpack.c.bf16 %v6407_v3, %v6406_v4  ;;  %v6408_v30 = vadd.f32 %v6394_v24, %v4449_v49 }
 0x3ab   : > { %v6397_v7 = vpop.xlane.xlu0 %6396 }
 0x3ac   : > { %v6409_v35 = vadd.f32 %v6397_v7, %v4450_v27  ;;  %7565 = vmatpush3.bf16.msra.mxu1 %v7564_v1 }
 0x3ad   : > { %v6400_v0 = vpop.xlane.xlu1 %6399  ;;  %7566 = vmatprep.subr.bf16.mxu1 %v8368_v50 }
 0x3ae   : > { %v7567_v32 = vpack.c.bf16 %v6409_v35, %v6408_v30  ;;  %v6410_v46 = vadd.f32 %v6400_v0, %v4451_v39 }
 0x3af   : > { %v6403_v34 = vpop.xlane.xlu0 %6402 }
 0x3b0   : > { %v6411_v38 = vadd.f32 %v6403_v34, %v4452_v61  ;;  %7568 = vmatpush3.bf16.msra.mxu1 %v7567_v32 }
 0x3b1   : > { %7569 = vmatprep.subr.bf16.mxu1 %v8368_v50  ;;  %v470_v50 = vld [vmem:[%s10011_s9] sm:$0xf] }
 0x3b2   : > { %v7570_v33 = vpack.c.bf16 %v6411_v38, %v6410_v46 }
 0x3b4   : > { %7571 = vmatpush3.bf16.msra.mxu1 %v7570_v33 }
 0x3b7   : > { %7558 = vmatmul.mubr.msk.f32.vlgmr.msra.gmra.mrb[168].mxu1 %vm4412_vm0, %v468_v63 }
 0x48a   : > { %v6481_v44 = vpop.f32.mrb[168].mxu1 }
 0x48b   : > { %v6485_v58 = vadd.f32 %v6481_v44, %v469_v40  ;;  %v6487_v14 = vrot.slane %v6481_v44, 4  ;;  %v7559_v48 = vpop.f32.mrb[169].mxu1 }
 0x48d   : > { %v6489_v12 = vmul.f32 %v6487_v14, %v6485_v58 }
 0x48f   : > { %v6490_v54 = vadd.f32 %v6489_v12, %v470_v50 }
 0x491   : > { %6492 = vst.msk [vmem:[%s377_s19] sm:$0xf] %vm6491_vm3, %v6490_v54 }
 0x492 PF: > { %s20_s13 = sadd.s32 1, %s8365_s13  }
 0x493   : > { %p17_p4 = scmp.ge.s32.totalorder %s20_s13, 4  }
 0x495   :  { %19 = sbr.rel (!%p17_p4) target bundleno = 1 (0x1), region = 93 }

</bundles_post_ra>
